<compile_context>
chip_gen: v7x
topology: tpu7x:2x2x1
jax: 0.10.0
libtpu: 0.0.40
codegen_flags: <defaults>
</compile_context>

<pallas_src>
import functools

import jax
import jax.numpy as jnp
from jax.experimental import pallas as pl
from jax.experimental.pallas import tpu as pltpu


def _round_up(x, m):
    return ((x + m - 1) // m) * m


# ---------------------------------------------------------------------------
# Pallas kernel: fused (row-tile @ weights) + bias (+ ReLU)
# ---------------------------------------------------------------------------
def _matmul_bias_act_kernel(p_ref, w_ref, b_ref, o_ref, *, relu):
    acc = jnp.dot(p_ref[...], w_ref[...], preferred_element_type=jnp.float32)
    acc = acc + b_ref[...]
    if relu:
        acc = jnp.maximum(acc, 0.0)
    o_ref[...] = acc.astype(o_ref.dtype)


def matmul_bias_act_pallas(p, w, b, *, relu, out_dtype=jnp.float32):
    """[M, K] @ [K, N] + b (optional ReLU) on the MXU.

    p, w are bf16 (f32 accumulation); b is f32 [1, N].  K and N are taken at
    full extent (block dim == array dim), so no activation-side padding or
    output slicing is materialized.  M is a single tile for M <= 2048, else
    ~1024-row tiles (16-row aligned for bf16 sublane packing).
    """
    M, K = p.shape
    K2, N = w.shape
    assert K2 == K
    assert b.shape == (1, N)

    if M <= 2048:
        grid_m, tm, Mp = 1, M, M
    else:
        grid_m = pl.cdiv(M, 1024)
        tm = _round_up(pl.cdiv(M, grid_m), 16)
        Mp = tm * grid_m

    if Mp != M:
        p = jnp.pad(p, ((0, Mp - M), (0, 0)))

    out = pl.pallas_call(
        functools.partial(_matmul_bias_act_kernel, relu=relu),
        out_shape=jax.ShapeDtypeStruct((Mp, N), out_dtype),
        grid=(grid_m,),
        in_specs=[
            pl.BlockSpec((tm, K), lambda i: (i, 0)),
            pl.BlockSpec((K, N), lambda i: (0, 0)),   # weights resident
            pl.BlockSpec((1, N), lambda i: (0, 0)),   # bias resident
        ],
        out_specs=pl.BlockSpec((tm, N), lambda i: (i, 0)),
        compiler_params=pltpu.CompilerParams(
            dimension_semantics=("parallel",)),
    )(p, w, b)

    if Mp != M:
        out = out[:M]
    return out


# ---------------------------------------------------------------------------
# Conv (BN folded offline) + ReLU as an im2col Pallas matmul, NHWC layout
# ---------------------------------------------------------------------------
def _im2col_nhwc(x, kh, kw):
    """NHWC, VALID, stride 1 -> patch matrix [N*OH*OW, kh*kw*C], K=(i, j, c)."""
    N, H, W, C = x.shape
    OH, OW = H - kh + 1, W - kw + 1
    cols = []
    for i in range(kh):
        for j in range(kw):
            cols.append(x[:, i:i + OH, j:j + OW, :])
    patches = jnp.concatenate(cols, axis=-1)          # [N, OH, OW, kh*kw*C]
    return patches.reshape(N * OH * OW, kh * kw * C), OH, OW


def conv_relu_pallas(x_nhwc, w2, b, kh, kw):
    """Conv2d(valid, stride 1) + (pre-folded) bias + ReLU; NHWC in/out, bf16."""
    N = x_nhwc.shape[0]
    patches, OH, OW = _im2col_nhwc(x_nhwc, kh, kw)    # bf16 patch matrix
    out = matmul_bias_act_pallas(patches, w2, b, relu=True,
                                 out_dtype=jnp.bfloat16)
    return out.reshape(N, OH, OW, w2.shape[1])


def maxpool2x2_nhwc(x):
    # Cheap memory-bound reshuffle; left as a fused XLA reduce.
    N, H, W, C = x.shape
    return x.reshape(N, H // 2, 2, W // 2, 2, C).max(axis=(2, 4))


# ---------------------------------------------------------------------------
# One-time parameter preparation (BN fold, layout permutes, padding, bf16)
# ---------------------------------------------------------------------------
def prepare_params(params, eps=1e-4):
    def fold_conv(w, b, g, be, m, v):
        # y = s*(conv(x, W) + b - m) + be = conv(x, s*W) + (s*(b - m) + be)
        scale = g / jnp.sqrt(v + eps)
        w_f = w * scale[:, None, None, None]
        b_f = (b - m) * scale + be
        O, C, KH, KW = w.shape
        w2 = w_f.transpose(2, 3, 1, 0).reshape(KH * KW * C, O)  # K = (i, j, c)
        return w2.astype(jnp.bfloat16), b_f.reshape(1, O).astype(jnp.float32)

    c1w, c1b = fold_conv(params["conv1_w"], params["conv1_b"],
                         params["bn1_gamma"], params["bn1_beta"],
                         params["bn1_mean"], params["bn1_var"])
    c2w, c2b = fold_conv(params["conv2_w"], params["conv2_b"],
                         params["bn2_gamma"], params["bn2_beta"],
                         params["bn2_mean"], params["bn2_var"])

    # FC1: PyTorch flattens NCHW as (c, h, w); our activation is NHWC -> (h, w, c).
    C2, PH, PW = 50, 5, 5                              # 50 * 5 * 5 per the module
    O1 = params["fc1_w"].shape[0]
    fc1 = params["fc1_w"].reshape(O1, C2, PH, PW)
    fc1 = fc1.transpose(0, 2, 3, 1).reshape(O1, PH * PW * C2)
    O1p = _round_up(O1, 128)                           # 500 -> 512 (lane-dense)
    fc1_w = jnp.pad(fc1.T, ((0, 0), (0, O1p - O1))).astype(jnp.bfloat16)
    fc1_b = jnp.pad(params["fc1_b"], (0, O1p - O1)).reshape(1, O1p)
    fc1_b = fc1_b.astype(jnp.float32)

    # FC2: zero-pad K rows once so the padded FC1 output feeds it directly.
    O2 = params["fc2_w"].shape[0]
    fc2_w = jnp.pad(params["fc2_w"].T, ((0, O1p - O1), (0, 0)))
    fc2_w = fc2_w.astype(jnp.bfloat16)                 # [512, 10]
    fc2_b = params["fc2_b"].reshape(1, O2).astype(jnp.float32)

    return {"conv1_w": c1w, "conv1_b": c1b,
            "conv2_w": c2w, "conv2_b": c2b,
            "fc1_w": fc1_w, "fc1_b": fc1_b,
            "fc2_w": fc2_w, "fc2_b": fc2_b}


# ---------------------------------------------------------------------------
# Full forward pass of `normal` (eval mode)
# ---------------------------------------------------------------------------
@jax.jit
def lenet_forward(x, prepped):
    N = x.shape[0]
    h = jnp.transpose(x, (0, 2, 3, 1)).astype(jnp.bfloat16)  # NCHW->NHWC once

    h = conv_relu_pallas(h, prepped["conv1_w"], prepped["conv1_b"], 5, 5)
    h = maxpool2x2_nhwc(h)                                   # [N, 14, 14, 20]
    h = conv_relu_pallas(h, prepped["conv2_w"], prepped["conv2_b"], 5, 5)
    h = maxpool2x2_nhwc(h)                                   # [N, 5, 5, 50]

    feat = h.reshape(N, -1)                                  # (h, w, c) order, bf16
    h = matmul_bias_act_pallas(feat, prepped["fc1_w"], prepped["fc1_b"],
                               relu=True, out_dtype=jnp.bfloat16)   # [N, 512]
    out = matmul_bias_act_pallas(h, prepped["fc2_w"], prepped["fc2_b"],
                                 relu=False, out_dtype=jnp.float32)  # [N, 10]
    return out


# ---------------------------------------------------------------------------
# Plain-JAX f32 reference (mirrors the PyTorch module exactly, NCHW)
# ---------------------------------------------------------------------------
def lenet_reference(x, params, eps=1e-4):
    def conv_bn_relu(h, w, b, g, be, m, v):
        y = jax.lax.conv_general_dilated(
            h, w, window_strides=(1, 1), padding="VALID",
            dimension_numbers=("NCHW", "OIHW", "NCHW"))
        y = y + b[None, :, None, None]
        s = g / jnp.sqrt(v + eps)
        y = (y - m[None, :, None, None]) * s[None, :, None, None] \
            + be[None, :, None, None]
        return jnp.maximum(y, 0.0)

    def pool(h):
        N, C, H, W = h.shape
        return h.reshape(N, C, H // 2, 2, W // 2, 2).max(axis=(3, 5))

    h = pool(conv_bn_relu(x, params["conv1_w"], params["conv1_b"],
                          params["bn1_gamma"], params["bn1_beta"],
                          params["bn1_mean"], params["bn1_var"]))
    h = pool(conv_bn_relu(h, params["conv2_w"], params["conv2_b"],
                          params["bn2_gamma"], params["bn2_beta"],
                          params["bn2_mean"], params["bn2_var"]))
    h = h.reshape(h.shape[0], -1)                    # NCHW flatten: (c, h, w)
    h = jnp.maximum(h @ params["fc1_w"].T + params["fc1_b"], 0.0)
    return h @ params["fc2_w"].T + params["fc2_b"]


# ---------------------------------------------------------------------------
# Main
# ---------------------------------------------------------------------------
if __name__ == "__main__":
    # normal(num_classes=10): input 3x32x32 (implied by the 50*5*5 flatten).
    N, C, H, W = 2, 3, 32, 32
    C1, C2, KH, KW = 20, 50, 5, 5
    HIDDEN, NUM_CLASSES = 500, 10

    key = jax.random.PRNGKey(0)
    keys = jax.random.split(key, 16)

    def rnd(k, shape, scale=1.0):
        return scale * jax.random.normal(k, shape, dtype=jnp.float32)

    x = rnd(keys[0], (N, C, H, W))
    params = {
        "conv1_w": rnd(keys[1], (C1, C, KH, KW), 0.1),
        "conv1_b": rnd(keys[2], (C1,), 0.1),
        "bn1_gamma": 1.0 + rnd(keys[3], (C1,), 0.1),
        "bn1_beta": rnd(keys[4], (C1,), 0.1),
        "bn1_mean": rnd(keys[5], (C1,), 0.1),
        "bn1_var": jax.random.uniform(keys[6], (C1,), jnp.float32, 0.5, 1.5),
        "conv2_w": rnd(keys[7], (C2, C1, KH, KW), 0.05),
        "conv2_b": rnd(keys[8], (C2,), 0.1),
        "bn2_gamma": 1.0 + rnd(keys[9], (C2,), 0.1),
        "bn2_beta": rnd(keys[10], (C2,), 0.1),
        "bn2_mean": rnd(keys[11], (C2,), 0.1),
        "bn2_var": jax.random.uniform(keys[12], (C2,), jnp.float32, 0.5, 1.5),
        "fc1_w": rnd(keys[13], (HIDDEN, C2 * 5 * 5), 0.03),
        "fc1_b": rnd(keys[14], (HIDDEN,), 0.1),
        "fc2_w": rnd(keys[15], (NUM_CLASSES, HIDDEN), 0.05),
        "fc2_b": jnp.zeros((NUM_CLASSES,), jnp.float32),
    }

    # One-time offline parameter prep (BN fold, permutes, padding, bf16 cast).
    prepped = jax.tree_util.tree_map(jax.block_until_ready,
                                     prepare_params(params))

    out = lenet_forward(x, prepped)
    out = jax.block_until_ready(out)
    assert out.shape == (N, NUM_CLASSES), out.shape

    ref = lenet_reference(x, params)
    max_err = float(jnp.max(jnp.abs(out - ref)))
    # bf16 MXU operands: tolerance loosened from 1e-3 (f32) per the review.
    assert jnp.allclose(out, ref, atol=5e-2, rtol=5e-2), max_err

    print("KERNEL_OK")
</pallas_src>

<mosaic_0001>
module attributes {stable_mosaic.version = 11 : i64} {
  func.func @_matmul_bias_act_kernel(%arg0: i32, %arg1: memref<1568x75xbf16, #tpu.memory_space<vmem>>, %arg2: memref<75x20xbf16, #tpu.memory_space<vmem>>, %arg3: memref<1x20xf32, #tpu.memory_space<vmem>>, %arg4: memref<1568x20xbf16, #tpu.memory_space<vmem>>) attributes {dimension_semantics = [#tpu.dimension_semantics<parallel>], iteration_bounds = array<i64: 1>, scalar_prefetch = 0 : i64, scratch_operands = 0 : i64, tpu.core_type = #tpu.core_type<tc>, window_params = [{transform_indices = @transform_0, window_bounds = array<i64: 1568, 75>}, {pipeline_mode = #tpu.pipeline_mode<synchronous>, transform_indices = @transform_1, window_bounds = array<i64: 75, 20>}, {pipeline_mode = #tpu.pipeline_mode<synchronous>, transform_indices = @transform_2, window_bounds = array<i64: 1, 20>}, {transform_indices = @transform_3, window_bounds = array<i64: 1568, 20>}]} {
    %c0 = arith.constant 0 : index
    %c0_0 = arith.constant 0 : index
    %0 = vector.load %arg1[%c0, %c0_0] : memref<1568x75xbf16, #tpu.memory_space<vmem>>, vector<1568x75xbf16>
    %c0_1 = arith.constant 0 : index
    %c0_2 = arith.constant 0 : index
    %1 = vector.load %arg2[%c0_1, %c0_2] : memref<75x20xbf16, #tpu.memory_space<vmem>>, vector<75x20xbf16>
    %cst = arith.constant dense<0.000000e+00> : vector<1568x20xf32>
    %2 = tpu.matmul %0, %1, %cst {dimension_numbers = #tpu.dot_dimension_numbers<[1], [0], [0], [1], [0, 0, 1, 1], [], []>} : vector<1568x75xbf16>, vector<75x20xbf16>, vector<1568x20xf32> -> vector<1568x20xf32>
    %c0_3 = arith.constant 0 : index
    %c0_4 = arith.constant 0 : index
    %3 = vector.load %arg3[%c0_3, %c0_4] : memref<1x20xf32, #tpu.memory_space<vmem>>, vector<1x20xf32>
    %4 = vector.broadcast %3 : vector<1x20xf32> to vector<1568x20xf32>
    %5 = arith.addf %2, %4 : vector<1568x20xf32>
    %cst_5 = arith.constant 0.000000e+00 : f32
    %6 = vector.broadcast %cst_5 : f32 to vector<1568x20xf32>
    %7 = arith.maximumf %5, %6 : vector<1568x20xf32>
    %8 = arith.truncf %7 : vector<1568x20xf32> to vector<1568x20xbf16>
    %c0_6 = arith.constant 0 : index
    %c0_7 = arith.constant 0 : index
    %9 = vector.load %arg4[%c0_6, %c0_7] : memref<1568x20xbf16, #tpu.memory_space<vmem>>, vector<1568x20xbf16>
    tpu.vector_store %arg4[%c0_6, %c0_7], %8 {strides = array<i32>} : memref<1568x20xbf16, #tpu.memory_space<vmem>>, vector<1568x20xbf16>,
    return
  }
  func.func @transform_0(%arg0: i32) -> (i32, i32) {
    %c0_i32 = arith.constant 0 : i32
    %c0_i32_0 = arith.constant 0 : i32
    return %arg0, %c0_i32 : i32, i32
  }
  func.func @transform_1(%arg0: i32) -> (i32, i32) {
    %c0_i32 = arith.constant 0 : i32
    %c0_i32_0 = arith.constant 0 : i32
    %c0_i32_1 = arith.constant 0 : i32
    return %c0_i32, %c0_i32_0 : i32, i32
  }
  func.func @transform_2(%arg0: i32) -> (i32, i32) {
    %c0_i32 = arith.constant 0 : i32
    %c0_i32_0 = arith.constant 0 : i32
    %c0_i32_1 = arith.constant 0 : i32
    return %c0_i32, %c0_i32_0 : i32, i32
  }
  func.func @transform_3(%arg0: i32) -> (i32, i32) {
    %c0_i32 = arith.constant 0 : i32
    %c0_i32_0 = arith.constant 0 : i32
    return %arg0, %c0_i32 : i32, i32
  }
}

module attributes {stable_mosaic.version = 11 : i64} {
  func.func @_matmul_bias_act_kernel(%arg0: i32, %arg1: memref<200x500xbf16, #tpu.memory_space<vmem>>, %arg2: memref<500x50xbf16, #tpu.memory_space<vmem>>, %arg3: memref<1x50xf32, #tpu.memory_space<vmem>>, %arg4: memref<200x50xbf16, #tpu.memory_space<vmem>>) attributes {dimension_semantics = [#tpu.dimension_semantics<parallel>], iteration_bounds = array<i64: 1>, scalar_prefetch = 0 : i64, scratch_operands = 0 : i64, tpu.core_type = #tpu.core_type<tc>, window_params = [{transform_indices = @transform_0, window_bounds = array<i64: 200, 500>}, {pipeline_mode = #tpu.pipeline_mode<synchronous>, transform_indices = @transform_1, window_bounds = array<i64: 500, 50>}, {pipeline_mode = #tpu.pipeline_mode<synchronous>, transform_indices = @transform_2, window_bounds = array<i64: 1, 50>}, {transform_indices = @transform_3, window_bounds = array<i64: 200, 50>}]} {
    %c0 = arith.constant 0 : index
    %c0_0 = arith.constant 0 : index
    %0 = vector.load %arg1[%c0, %c0_0] : memref<200x500xbf16, #tpu.memory_space<vmem>>, vector<200x500xbf16>
    %c0_1 = arith.constant 0 : index
    %c0_2 = arith.constant 0 : index
    %1 = vector.load %arg2[%c0_1, %c0_2] : memref<500x50xbf16, #tpu.memory_space<vmem>>, vector<500x50xbf16>
    %cst = arith.constant dense<0.000000e+00> : vector<200x50xf32>
    %2 = tpu.matmul %0, %1, %cst {dimension_numbers = #tpu.dot_dimension_numbers<[1], [0], [0], [1], [0, 0, 1, 1], [], []>} : vector<200x500xbf16>, vector<500x50xbf16>, vector<200x50xf32> -> vector<200x50xf32>
    %c0_3 = arith.constant 0 : index
    %c0_4 = arith.constant 0 : index
    %3 = vector.load %arg3[%c0_3, %c0_4] : memref<1x50xf32, #tpu.memory_space<vmem>>, vector<1x50xf32>
    %4 = vector.broadcast %3 : vector<1x50xf32> to vector<200x50xf32>
    %5 = arith.addf %2, %4 : vector<200x50xf32>
    %cst_5 = arith.constant 0.000000e+00 : f32
    %6 = vector.broadcast %cst_5 : f32 to vector<200x50xf32>
    %7 = arith.maximumf %5, %6 : vector<200x50xf32>
    %8 = arith.truncf %7 : vector<200x50xf32> to vector<200x50xbf16>
    %c0_6 = arith.constant 0 : index
    %c0_7 = arith.constant 0 : index
    %9 = vector.load %arg4[%c0_6, %c0_7] : memref<200x50xbf16, #tpu.memory_space<vmem>>, vector<200x50xbf16>
    tpu.vector_store %arg4[%c0_6, %c0_7], %8 {strides = array<i32>} : memref<200x50xbf16, #tpu.memory_space<vmem>>, vector<200x50xbf16>,
    return
  }
  func.func @transform_0(%arg0: i32) -> (i32, i32) {
    %c0_i32 = arith.constant 0 : i32
    %c0_i32_0 = arith.constant 0 : i32
    return %arg0, %c0_i32 : i32, i32
  }
  func.func @transform_1(%arg0: i32) -> (i32, i32) {
    %c0_i32 = arith.constant 0 : i32
    %c0_i32_0 = arith.constant 0 : i32
    %c0_i32_1 = arith.constant 0 : i32
    return %c0_i32, %c0_i32_0 : i32, i32
  }
  func.func @transform_2(%arg0: i32) -> (i32, i32) {
    %c0_i32 = arith.constant 0 : i32
    %c0_i32_0 = arith.constant 0 : i32
    %c0_i32_1 = arith.constant 0 : i32
    return %c0_i32, %c0_i32_0 : i32, i32
  }
  func.func @transform_3(%arg0: i32) -> (i32, i32) {
    %c0_i32 = arith.constant 0 : i32
    %c0_i32_0 = arith.constant 0 : i32
    return %arg0, %c0_i32 : i32, i32
  }
}

module attributes {stable_mosaic.version = 11 : i64} {
  func.func @_matmul_bias_act_kernel(%arg0: i32, %arg1: memref<2x1250xbf16, #tpu.memory_space<vmem>>, %arg2: memref<1250x512xbf16, #tpu.memory_space<vmem>>, %arg3: memref<1x512xf32, #tpu.memory_space<vmem>>, %arg4: memref<2x512xbf16, #tpu.memory_space<vmem>>) attributes {dimension_semantics = [#tpu.dimension_semantics<parallel>], iteration_bounds = array<i64: 1>, scalar_prefetch = 0 : i64, scratch_operands = 0 : i64, tpu.core_type = #tpu.core_type<tc>, window_params = [{transform_indices = @transform_0, window_bounds = array<i64: 2, 1250>}, {pipeline_mode = #tpu.pipeline_mode<synchronous>, transform_indices = @transform_1, window_bounds = array<i64: 1250, 512>}, {pipeline_mode = #tpu.pipeline_mode<synchronous>, transform_indices = @transform_2, window_bounds = array<i64: 1, 512>}, {transform_indices = @transform_3, window_bounds = array<i64: 2, 512>}]} {
    %c0 = arith.constant 0 : index
    %c0_0 = arith.constant 0 : index
    %0 = vector.load %arg1[%c0, %c0_0] : memref<2x1250xbf16, #tpu.memory_space<vmem>>, vector<2x1250xbf16>
    %c0_1 = arith.constant 0 : index
    %c0_2 = arith.constant 0 : index
    %1 = vector.load %arg2[%c0_1, %c0_2] : memref<1250x512xbf16, #tpu.memory_space<vmem>>, vector<1250x512xbf16>
    %cst = arith.constant dense<0.000000e+00> : vector<2x512xf32>
    %2 = tpu.matmul %0, %1, %cst {dimension_numbers = #tpu.dot_dimension_numbers<[1], [0], [0], [1], [0, 0, 1, 1], [], []>} : vector<2x1250xbf16>, vector<1250x512xbf16>, vector<2x512xf32> -> vector<2x512xf32>
    %c0_3 = arith.constant 0 : index
    %c0_4 = arith.constant 0 : index
    %3 = vector.load %arg3[%c0_3, %c0_4] : memref<1x512xf32, #tpu.memory_space<vmem>>, vector<1x512xf32>
    %4 = vector.broadcast %3 : vector<1x512xf32> to vector<2x512xf32>
    %5 = arith.addf %2, %4 : vector<2x512xf32>
    %cst_5 = arith.constant 0.000000e+00 : f32
    %6 = vector.broadcast %cst_5 : f32 to vector<2x512xf32>
    %7 = arith.maximumf %5, %6 : vector<2x512xf32>
    %8 = arith.truncf %7 : vector<2x512xf32> to vector<2x512xbf16>
    %c0_6 = arith.constant 0 : index
    %c0_7 = arith.constant 0 : index
    %9 = vector.load %arg4[%c0_6, %c0_7] : memref<2x512xbf16, #tpu.memory_space<vmem>>, vector<2x512xbf16>
    tpu.vector_store %arg4[%c0_6, %c0_7], %8 {strides = array<i32>} : memref<2x512xbf16, #tpu.memory_space<vmem>>, vector<2x512xbf16>,
    return
  }
  func.func @transform_0(%arg0: i32) -> (i32, i32) {
    %c0_i32 = arith.constant 0 : i32
    %c0_i32_0 = arith.constant 0 : i32
    return %arg0, %c0_i32 : i32, i32
  }
  func.func @transform_1(%arg0: i32) -> (i32, i32) {
    %c0_i32 = arith.constant 0 : i32
    %c0_i32_0 = arith.constant 0 : i32
    %c0_i32_1 = arith.constant 0 : i32
    return %c0_i32, %c0_i32_0 : i32, i32
  }
  func.func @transform_2(%arg0: i32) -> (i32, i32) {
    %c0_i32 = arith.constant 0 : i32
    %c0_i32_0 = arith.constant 0 : i32
    %c0_i32_1 = arith.constant 0 : i32
    return %c0_i32, %c0_i32_0 : i32, i32
  }
  func.func @transform_3(%arg0: i32) -> (i32, i32) {
    %c0_i32 = arith.constant 0 : i32
    %c0_i32_0 = arith.constant 0 : i32
    return %arg0, %c0_i32 : i32, i32
  }
}

module attributes {stable_mosaic.version = 11 : i64} {
  func.func @_matmul_bias_act_kernel(%arg0: i32, %arg1: memref<2x512xbf16, #tpu.memory_space<vmem>>, %arg2: memref<512x10xbf16, #tpu.memory_space<vmem>>, %arg3: memref<1x10xf32, #tpu.memory_space<vmem>>, %arg4: memref<2x10xf32, #tpu.memory_space<vmem>>) attributes {dimension_semantics = [#tpu.dimension_semantics<parallel>], iteration_bounds = array<i64: 1>, scalar_prefetch = 0 : i64, scratch_operands = 0 : i64, tpu.core_type = #tpu.core_type<tc>, window_params = [{transform_indices = @transform_0, window_bounds = array<i64: 2, 512>}, {pipeline_mode = #tpu.pipeline_mode<synchronous>, transform_indices = @transform_1, window_bounds = array<i64: 512, 10>}, {pipeline_mode = #tpu.pipeline_mode<synchronous>, transform_indices = @transform_2, window_bounds = array<i64: 1, 10>}, {transform_indices = @transform_3, window_bounds = array<i64: 2, 10>}]} {
    %c0 = arith.constant 0 : index
    %c0_0 = arith.constant 0 : index
    %0 = vector.load %arg1[%c0, %c0_0] : memref<2x512xbf16, #tpu.memory_space<vmem>>, vector<2x512xbf16>
    %c0_1 = arith.constant 0 : index
    %c0_2 = arith.constant 0 : index
    %1 = vector.load %arg2[%c0_1, %c0_2] : memref<512x10xbf16, #tpu.memory_space<vmem>>, vector<512x10xbf16>
    %cst = arith.constant dense<0.000000e+00> : vector<2x10xf32>
    %2 = tpu.matmul %0, %1, %cst {dimension_numbers = #tpu.dot_dimension_numbers<[1], [0], [0], [1], [0, 0, 1, 1], [], []>} : vector<2x512xbf16>, vector<512x10xbf16>, vector<2x10xf32> -> vector<2x10xf32>
    %c0_3 = arith.constant 0 : index
    %c0_4 = arith.constant 0 : index
    %3 = vector.load %arg3[%c0_3, %c0_4] : memref<1x10xf32, #tpu.memory_space<vmem>>, vector<1x10xf32>
    %4 = vector.broadcast %3 : vector<1x10xf32> to vector<2x10xf32>
    %5 = arith.addf %2, %4 : vector<2x10xf32>
    %c0_5 = arith.constant 0 : index
    %c0_6 = arith.constant 0 : index
    %6 = vector.load %arg4[%c0_5, %c0_6] : memref<2x10xf32, #tpu.memory_space<vmem>>, vector<2x10xf32>
    tpu.vector_store %arg4[%c0_5, %c0_6], %5 {strides = array<i32>} : memref<2x10xf32, #tpu.memory_space<vmem>>, vector<2x10xf32>,
    return
  }
  func.func @transform_0(%arg0: i32) -> (i32, i32) {
    %c0_i32 = arith.constant 0 : i32
    %c0_i32_0 = arith.constant 0 : i32
    return %arg0, %c0_i32 : i32, i32
  }
  func.func @transform_1(%arg0: i32) -> (i32, i32) {
    %c0_i32 = arith.constant 0 : i32
    %c0_i32_0 = arith.constant 0 : i32
    %c0_i32_1 = arith.constant 0 : i32
    return %c0_i32, %c0_i32_0 : i32, i32
  }
  func.func @transform_2(%arg0: i32) -> (i32, i32) {
    %c0_i32 = arith.constant 0 : i32
    %c0_i32_0 = arith.constant 0 : i32
    %c0_i32_1 = arith.constant 0 : i32
    return %c0_i32, %c0_i32_0 : i32, i32
  }
  func.func @transform_3(%arg0: i32) -> (i32, i32) {
    %c0_i32 = arith.constant 0 : i32
    %c0_i32_0 = arith.constant 0 : i32
    return %arg0, %c0_i32 : i32, i32
  }
}

</mosaic_0001>

<bundles_post_ra>
// kernel: lenet_forward.4
= control target key start
LH: loop header
LB: loop body
LE: loop exit
PB: predicated region body
PF: predicated region fallthrough
CT: control target
= control target key end

     0   :  { %vm1042_vm0 = vcmask 1044480   ;;  %vm1043_vm1 = vcmask 1045504   ;;  %vm747_vm2 = vcmask 613376   ;;  %v4065_v5 = vmov 65535   ;;  %s5483_s1 = inlined_call_operand.vmem [shape: bf16[75,20], index: 1, kind: input, shape index: {}]   ;;  %s5484_s0 = inlined_call_operand.vmem [shape: bf16[1568,75], index: 0, kind: input, shape index: {}]   ;;  %s5485_s2 = inlined_call_operand.vmem [shape: f32[1,20], index: 2, kind: input, shape index: {}]   ;;  %s5486_s3 = inlined_call_operand.vmem [shape: bf16[1568,20], index: 3, kind: output, shape index: {}]  }
   0x1   :  { %v3961_v0 = vld [vmem:[%s5483_s1] sm:$0xff]   ;;  %v3962_v1 = vld [vmem:[%s5483_s1 + $0x8] sm:$0xff]   ;;  %v3963_v2 = vld [vmem:[%s5483_s1 + $0x10] sm:$0xff]   ;;  %v1044_v6 = vsel %vm1042_vm0, 4294967295, %v4065_v5  ;;  %vm2846_vm3 = vcmask 158720  }
   0x2   :  { %3744 = vmatprep.subr.bf16.mxu0 %v3961_v0  ;;  %3950 = vmatprep.subr.bf16.mxu1 %v3961_v0  ;;  %v3966_v3 = vld [vmem:[%s5484_s0] sm:$0xff]   ;;  %v3964_v4 = vld [vmem:[%s5483_s1 + $0x18] sm:$0xff]   ;;  %v3968_v7 = vld [vmem:[%s5484_s0 + $0x190] sm:$0xff]   ;;  %v1045_v9 = vsel %vm1043_vm1, %v1044_v6, 0 }
   0x3   :  { %3745 = vmatpush3.bf16.msra.mxu0 %v3961_v0  ;;  %3955 = vmatpush3.bf16.msra.mxu1 %v3961_v0  ;;  %v3965_v8 = vld [vmem:[%s5483_s1 + $0x20] sm:$0x3f]   ;;  %v3967_v11 = vld [vmem:[%s5484_s0 + $0x8] sm:$0xff]   ;;  %v3969_v12 = vld [vmem:[%s5484_s0 + $0x198] sm:$0xff]  }
   0x4   :  { %3746 = vmatprep.subr.bf16.mxu0 %v3962_v1  ;;  %3951 = vmatprep.subr.bf16.mxu1 %v3962_v1  ;;  %v1047_v10 = vand.u32 %v3965_v8, %v1045_v9  ;;  %v3970_v13 = vld [vmem:[%s5484_s0 + $0x10] sm:$0xff]   ;;  %v3972_v14 = vld [vmem:[%s5484_s0 + $0x1a0] sm:$0xff]   ;;  %v3971_v15 = vld [vmem:[%s5484_s0 + $0x18] sm:$0xff]  }
   0x5   :  { %3754 = vmatprep.mubr.msk.bf16.mxu0 %vm747_vm2, %v3966_v3  ;;  %3854 = vmatprep.mubr.msk.bf16.mxu1 %vm747_vm2, %v3968_v7  ;;  %v3973_v16 = vld [vmem:[%s5484_s0 + $0x1a8] sm:$0xff]   ;;  %v3974_v17 = vld [vmem:[%s5484_s0 + $0x20] sm:$0xff]   ;;  %v3976_v18 = vld [vmem:[%s5484_s0 + $0x1b0] sm:$0xff]  }
   0x6   :  { %v3975_v19 = vld [vmem:[%s5484_s0 + $0x28] sm:$0xff]   ;;  %v3977_v20 = vld [vmem:[%s5484_s0 + $0x1b8] sm:$0xff]   ;;  %v3978_v21 = vld [vmem:[%s5484_s0 + $0x30] sm:$0xff]  }
   0x7   :  { %3747 = vmatpush3.bf16.msra.mxu0 %v3962_v1  ;;  %3956 = vmatpush3.bf16.msra.mxu1 %v3962_v1  ;;  %v3980_v22 = vld [vmem:[%s5484_s0 + $0x1c0] sm:$0xff]   ;;  %v3979_v23 = vld [vmem:[%s5484_s0 + $0x38] sm:$0xff]   ;;  %v3981_v24 = vld [vmem:[%s5484_s0 + $0x1c8] sm:$0xff]  }
   0x8   :  { %3748 = vmatprep.subr.bf16.mxu0 %v3963_v2  ;;  %3952 = vmatprep.subr.bf16.mxu1 %v3963_v2  ;;  %v3982_v25 = vld [vmem:[%s5484_s0 + $0x40] sm:$0xff]   ;;  %v3984_v26 = vld [vmem:[%s5484_s0 + $0x1d0] sm:$0xff]   ;;  %v3983_v27 = vld [vmem:[%s5484_s0 + $0x48] sm:$0xff]  }
   0x9   :  { %v3985_v28 = vld [vmem:[%s5484_s0 + $0x1d8] sm:$0xff]   ;;  %v3986_v29 = vld [vmem:[%s5484_s0 + $0x50] sm:$0xff]   ;;  %v3988_v30 = vld [vmem:[%s5484_s0 + $0x1e0] sm:$0xff]  }
   0xa   :  { %v3987_v31 = vld [vmem:[%s5484_s0 + $0x58] sm:$0xff]   ;;  %v3989_v32 = vld [vmem:[%s5484_s0 + $0x1e8] sm:$0xff]   ;;  %v3990_v33 = vld [vmem:[%s5484_s0 + $0x60] sm:$0xff]  }
   0xb   :  { %3749 = vmatpush3.bf16.msra.mxu0 %v3963_v2  ;;  %3957 = vmatpush3.bf16.msra.mxu1 %v3963_v2  ;;  %v3992_v34 = vld [vmem:[%s5484_s0 + $0x1f0] sm:$0xff]   ;;  %v3991_v35 = vld [vmem:[%s5484_s0 + $0x68] sm:$0xff]   ;;  %v3993_v36 = vld [vmem:[%s5484_s0 + $0x1f8] sm:$0xff]  }
   0xc   :  { %3750 = vmatprep.subr.bf16.mxu0 %v3964_v4  ;;  %3953 = vmatprep.subr.bf16.mxu1 %v3964_v4  ;;  %v3994_v37 = vld [vmem:[%s5484_s0 + $0x70] sm:$0xff]   ;;  %v3996_v38 = vld [vmem:[%s5484_s0 + $0x200] sm:$0xff]   ;;  %v3995_v39 = vld [vmem:[%s5484_s0 + $0x78] sm:$0xff]  }
   0xd   :  { %v3997_v40 = vld [vmem:[%s5484_s0 + $0x208] sm:$0xff]   ;;  %v3998_v41 = vld [vmem:[%s5484_s0 + $0x80] sm:$0xff]   ;;  %v4000_v42 = vld [vmem:[%s5484_s0 + $0x210] sm:$0xff]  }
   0xe   :  { %v3999_v43 = vld [vmem:[%s5484_s0 + $0x88] sm:$0xff]   ;;  %v4001_v44 = vld [vmem:[%s5484_s0 + $0x218] sm:$0xff]   ;;  %v4002_v45 = vld [vmem:[%s5484_s0 + $0x90] sm:$0xff]  }
   0xf   :  { %3751 = vmatpush3.bf16.msra.mxu0 %v3964_v4  ;;  %3958 = vmatpush3.bf16.msra.mxu1 %v3964_v4  ;;  %v4004_v46 = vld [vmem:[%s5484_s0 + $0x220] sm:$0xff]   ;;  %v4003_v47 = vld [vmem:[%s5484_s0 + $0x98] sm:$0xff]   ;;  %v4005_v48 = vld [vmem:[%s5484_s0 + $0x228] sm:$0xff]  }
  0x10   :  { %3752 = vmatprep.subr.bf16.mxu0 %v1047_v10  ;;  %3954 = vmatprep.subr.bf16.mxu1 %v1047_v10  ;;  %v4006_v49 = vld [vmem:[%s5484_s0 + $0xa0] sm:$0xff]   ;;  %v4008_v50 = vld [vmem:[%s5484_s0 + $0x230] sm:$0xff]   ;;  %v4007_v51 = vld [vmem:[%s5484_s0 + $0xa8] sm:$0xff]  }
  0x11   :  { %v4009_v52 = vld [vmem:[%s5484_s0 + $0x238] sm:$0xff]   ;;  %v4010_v53 = vld [vmem:[%s5484_s0 + $0xb0] sm:$0xff]   ;;  %v4012_v54 = vld [vmem:[%s5484_s0 + $0x240] sm:$0xff]  }
  0x12   :  { %v4011_v55 = vld [vmem:[%s5484_s0 + $0xb8] sm:$0xff]   ;;  %v4013_v56 = vld [vmem:[%s5484_s0 + $0x248] sm:$0xff]   ;;  %v4014_v57 = vld [vmem:[%s5484_s0 + $0xc0] sm:$0xff]  }
  0x13   :  { %3753 = vmatpush3.bf16.msra.mxu0 %v1047_v10  ;;  %3959 = vmatpush3.bf16.msra.mxu1 %v1047_v10  ;;  %v4016_v58 = vld [vmem:[%s5484_s0 + $0x250] sm:$0xff]   ;;  %v4015_v59 = vld [vmem:[%s5484_s0 + $0xc8] sm:$0xff]   ;;  %v4017_v60 = vld [vmem:[%s5484_s0 + $0x258] sm:$0xff]  }
  0x14   :  { %v4018_v61 = vld [vmem:[%s5484_s0 + $0xd0] sm:$0xff]   ;;  %v4020_v62 = vld [vmem:[%s5484_s0 + $0x260] sm:$0xff]   ;;  %v4019_v63 = vld [vmem:[%s5484_s0 + $0xd8] sm:$0xff]  }
  0x15   :  { %v4021_v0 = vld [vmem:[%s5484_s0 + $0x268] sm:$0xff]   ;;  %v4022_v1 = vld [vmem:[%s5484_s0 + $0xe0] sm:$0xff]   ;;  %v4024_v2 = vld [vmem:[%s5484_s0 + $0x270] sm:$0xff]  }
  0x16   :  { %3755 = vmatmul.mubr.msk.bf16.vlgmr.msra.gmra.mrb[0].mxu0 %vm747_vm2, %v3967_v11  ;;  %3855 = vmatmul.mubr.msk.bf16.vlgmr.msra.gmra.mrb[0].mxu1 %vm747_vm2, %v3969_v12  ;;  %v4023_v3 = vld [vmem:[%s5484_s0 + $0xe8] sm:$0xff]   ;;  %v4025_v4 = vld [vmem:[%s5484_s0 + $0x278] sm:$0xff]   ;;  %v4026_v5 = vld [vmem:[%s5484_s0 + $0xf0] sm:$0xff]  }
  0x17   :  { %3758 = vmatprep.mubr.msk.bf16.mxu0 %vm747_vm2, %v3970_v13  ;;  %3858 = vmatprep.mubr.msk.bf16.mxu1 %vm747_vm2, %v3972_v14  ;;  %v4028_v6 = vld [vmem:[%s5484_s0 + $0x280] sm:$0xff]   ;;  %v4027_v7 = vld [vmem:[%s5484_s0 + $0xf8] sm:$0xff]   ;;  %v4029_v8 = vld [vmem:[%s5484_s0 + $0x288] sm:$0xff]  }
  0x18   :  { %v4030_v9 = vld [vmem:[%s5484_s0 + $0x100] sm:$0xff]   ;;  %v4032_v10 = vld [vmem:[%s5484_s0 + $0x290] sm:$0xff]   ;;  %v4031_v11 = vld [vmem:[%s5484_s0 + $0x108] sm:$0xff]  }
  0x19   :  { %v4033_v12 = vld [vmem:[%s5484_s0 + $0x298] sm:$0xff]   ;;  %v4034_v13 = vld [vmem:[%s5484_s0 + $0x110] sm:$0xff]   ;;  %v4036_v14 = vld [vmem:[%s5484_s0 + $0x2a0] sm:$0xff]  }
  0x1e   :  { %3759 = vmatmul.mubr.msk.bf16.gmra.mrb[4].mxu0 %vm747_vm2, %v3971_v15  ;;  %3859 = vmatmul.mubr.msk.bf16.gmra.mrb[4].mxu1 %vm747_vm2, %v3973_v16  ;;  %v4035_v15 = vld [vmem:[%s5484_s0 + $0x118] sm:$0xff]   ;;  %v4037_v16 = vld [vmem:[%s5484_s0 + $0x2a8] sm:$0xff]  }
  0x1f   :  { %3762 = vmatprep.mubr.msk.bf16.mxu0 %vm747_vm2, %v3974_v17  ;;  %3862 = vmatprep.mubr.msk.bf16.mxu1 %vm747_vm2, %v3976_v18  ;;  %v4038_v17 = vld [vmem:[%s5484_s0 + $0x120] sm:$0xff]   ;;  %v4040_v18 = vld [vmem:[%s5484_s0 + $0x2b0] sm:$0xff]  }
  0x26   :  { %3763 = vmatmul.mubr.msk.bf16.gmra.mrb[8].mxu0 %vm747_vm2, %v3975_v19  ;;  %3863 = vmatmul.mubr.msk.bf16.gmra.mrb[8].mxu1 %vm747_vm2, %v3977_v20  ;;  %v4039_v19 = vld [vmem:[%s5484_s0 + $0x128] sm:$0xff]   ;;  %v4041_v20 = vld [vmem:[%s5484_s0 + $0x2b8] sm:$0xff]  }
  0x27   :  { %3766 = vmatprep.mubr.msk.bf16.mxu0 %vm747_vm2, %v3978_v21  ;;  %3866 = vmatprep.mubr.msk.bf16.mxu1 %vm747_vm2, %v3980_v22  ;;  %v4042_v21 = vld [vmem:[%s5484_s0 + $0x130] sm:$0xff]   ;;  %v4044_v22 = vld [vmem:[%s5484_s0 + $0x2c0] sm:$0xff]  }
  0x2e   :  { %3767 = vmatmul.mubr.msk.bf16.gmra.mrb[12].mxu0 %vm747_vm2, %v3979_v23  ;;  %3867 = vmatmul.mubr.msk.bf16.gmra.mrb[12].mxu1 %vm747_vm2, %v3981_v24  ;;  %v4043_v23 = vld [vmem:[%s5484_s0 + $0x138] sm:$0xff]   ;;  %v4045_v24 = vld [vmem:[%s5484_s0 + $0x2c8] sm:$0xff]  }
  0x2f   :  { %3770 = vmatprep.mubr.msk.bf16.mxu0 %vm747_vm2, %v3982_v25  ;;  %3870 = vmatprep.mubr.msk.bf16.mxu1 %vm747_vm2, %v3984_v26  ;;  %v4046_v25 = vld [vmem:[%s5484_s0 + $0x140] sm:$0xff]   ;;  %v4048_v26 = vld [vmem:[%s5484_s0 + $0x2d0] sm:$0xff]  }
  0x36   :  { %3771 = vmatmul.mubr.msk.bf16.gmra.mrb[16].mxu0 %vm747_vm2, %v3983_v27  ;;  %3871 = vmatmul.mubr.msk.bf16.gmra.mrb[16].mxu1 %vm747_vm2, %v3985_v28  ;;  %v4047_v27 = vld [vmem:[%s5484_s0 + $0x148] sm:$0xff]   ;;  %v4049_v28 = vld [vmem:[%s5484_s0 + $0x2d8] sm:$0xff]  }
  0x37   :  { %3774 = vmatprep.mubr.msk.bf16.mxu0 %vm747_vm2, %v3986_v29  ;;  %3874 = vmatprep.mubr.msk.bf16.mxu1 %vm747_vm2, %v3988_v30  ;;  %v4050_v29 = vld [vmem:[%s5484_s0 + $0x150] sm:$0xff]   ;;  %v4052_v30 = vld [vmem:[%s5484_s0 + $0x2e0] sm:$0xff]  }
  0x3e   :  { %3775 = vmatmul.mubr.msk.bf16.gmra.mrb[20].mxu0 %vm747_vm2, %v3987_v31  ;;  %3875 = vmatmul.mubr.msk.bf16.gmra.mrb[20].mxu1 %vm747_vm2, %v3989_v32  ;;  %v4051_v31 = vld [vmem:[%s5484_s0 + $0x158] sm:$0xff]   ;;  %v4053_v32 = vld [vmem:[%s5484_s0 + $0x2e8] sm:$0xff]  }
  0x3f   :  { %3778 = vmatprep.mubr.msk.bf16.mxu0 %vm747_vm2, %v3990_v33  ;;  %3878 = vmatprep.mubr.msk.bf16.mxu1 %vm747_vm2, %v3992_v34  ;;  %v4054_v33 = vld [vmem:[%s5484_s0 + $0x160] sm:$0xff]   ;;  %v4056_v34 = vld [vmem:[%s5484_s0 + $0x2f0] sm:$0xff]  }
  0x46   :  { %3779 = vmatmul.mubr.msk.bf16.gmra.mrb[24].mxu0 %vm747_vm2, %v3991_v35  ;;  %3879 = vmatmul.mubr.msk.bf16.gmra.mrb[24].mxu1 %vm747_vm2, %v3993_v36  ;;  %v4055_v35 = vld [vmem:[%s5484_s0 + $0x168] sm:$0xff]   ;;  %v4057_v36 = vld [vmem:[%s5484_s0 + $0x2f8] sm:$0xff]  }
  0x47   :  { %3782 = vmatprep.mubr.msk.bf16.mxu0 %vm747_vm2, %v3994_v37  ;;  %3882 = vmatprep.mubr.msk.bf16.mxu1 %vm747_vm2, %v3996_v38  ;;  %v4058_v37 = vld [vmem:[%s5484_s0 + $0x170] sm:$0xff]   ;;  %v4060_v38 = vld [vmem:[%s5484_s0 + $0x300] sm:$0xff]  }
  0x4e   :  { %3783 = vmatmul.mubr.msk.bf16.gmra.mrb[28].mxu0 %vm747_vm2, %v3995_v39  ;;  %3883 = vmatmul.mubr.msk.bf16.gmra.mrb[28].mxu1 %vm747_vm2, %v3997_v40  ;;  %v4059_v39 = vld [vmem:[%s5484_s0 + $0x178] sm:$0xff]   ;;  %v4061_v40 = vld [vmem:[%s5484_s0 + $0x308] sm:$0xff]  }
  0x4f   :  { %3786 = vmatprep.mubr.msk.bf16.mxu0 %vm747_vm2, %v3998_v41  ;;  %3886 = vmatprep.mubr.msk.bf16.mxu1 %vm747_vm2, %v4000_v42  ;;  %v4062_v41 = vld [vmem:[%s5484_s0 + $0x180] sm:$0xff]   ;;  %v4063_v42 = vld [vmem:[%s5484_s0 + $0x188] sm:$0xff]  }
  0x56   :  { %3787 = vmatmul.mubr.msk.bf16.gmra.mrb[32].mxu0 %vm747_vm2, %v3999_v43  ;;  %3887 = vmatmul.mubr.msk.bf16.gmra.mrb[32].mxu1 %vm747_vm2, %v4001_v44  ;;  %v4496_v43 = vld [vmem:[%s5485_s2] ss:$0 sm:$0xff] }
  0x57   :  { %3790 = vmatprep.mubr.msk.bf16.mxu0 %vm747_vm2, %v4002_v45  ;;  %3890 = vmatprep.mubr.msk.bf16.mxu1 %vm747_vm2, %v4004_v46 }
  0x5e   :  { %3791 = vmatmul.mubr.msk.bf16.gmra.mrb[36].mxu0 %vm747_vm2, %v4003_v47  ;;  %3891 = vmatmul.mubr.msk.bf16.gmra.mrb[36].mxu1 %vm747_vm2, %v4005_v48 }
  0x5f   :  { %3794 = vmatprep.mubr.msk.bf16.mxu0 %vm747_vm2, %v4006_v49  ;;  %3894 = vmatprep.mubr.msk.bf16.mxu1 %vm747_vm2, %v4008_v50 }
  0x66   :  { %3795 = vmatmul.mubr.msk.bf16.gmra.mrb[40].mxu0 %vm747_vm2, %v4007_v51  ;;  %3895 = vmatmul.mubr.msk.bf16.gmra.mrb[40].mxu1 %vm747_vm2, %v4009_v52 }
  0x67   :  { %3798 = vmatprep.mubr.msk.bf16.mxu0 %vm747_vm2, %v4010_v53  ;;  %3898 = vmatprep.mubr.msk.bf16.mxu1 %vm747_vm2, %v4012_v54 }
  0x6e   :  { %3799 = vmatmul.mubr.msk.bf16.gmra.mrb[44].mxu0 %vm747_vm2, %v4011_v55  ;;  %3899 = vmatmul.mubr.msk.bf16.gmra.mrb[44].mxu1 %vm747_vm2, %v4013_v56 }
  0x6f   :  { %3802 = vmatprep.mubr.msk.bf16.mxu0 %vm747_vm2, %v4014_v57  ;;  %3902 = vmatprep.mubr.msk.bf16.mxu1 %vm747_vm2, %v4016_v58 }
  0x76   :  { %3803 = vmatmul.mubr.msk.bf16.gmra.mrb[48].mxu0 %vm747_vm2, %v4015_v59  ;;  %3903 = vmatmul.mubr.msk.bf16.gmra.mrb[48].mxu1 %vm747_vm2, %v4017_v60 }
  0x77   :  { %3806 = vmatprep.mubr.msk.bf16.mxu0 %vm747_vm2, %v4018_v61  ;;  %3906 = vmatprep.mubr.msk.bf16.mxu1 %vm747_vm2, %v4020_v62 }
  0x7e   :  { %3807 = vmatmul.mubr.msk.bf16.gmra.mrb[52].mxu0 %vm747_vm2, %v4019_v63  ;;  %3907 = vmatmul.mubr.msk.bf16.gmra.mrb[52].mxu1 %vm747_vm2, %v4021_v0 }
  0x7f   :  { %3810 = vmatprep.mubr.msk.bf16.mxu0 %vm747_vm2, %v4022_v1  ;;  %3910 = vmatprep.mubr.msk.bf16.mxu1 %vm747_vm2, %v4024_v2 }
  0x86   :  { %3811 = vmatmul.mubr.msk.bf16.gmra.mrb[56].mxu0 %vm747_vm2, %v4023_v3  ;;  %3911 = vmatmul.mubr.msk.bf16.gmra.mrb[56].mxu1 %vm747_vm2, %v4025_v4 }
  0x87   :  { %3814 = vmatprep.mubr.msk.bf16.mxu0 %vm747_vm2, %v4026_v5  ;;  %3914 = vmatprep.mubr.msk.bf16.mxu1 %vm747_vm2, %v4028_v6 }
  0x8e   :  { %3815 = vmatmul.mubr.msk.bf16.gmra.mrb[60].mxu0 %vm747_vm2, %v4027_v7  ;;  %3915 = vmatmul.mubr.msk.bf16.gmra.mrb[60].mxu1 %vm747_vm2, %v4029_v8 }
  0x8f   :  { %3818 = vmatprep.mubr.msk.bf16.mxu0 %vm747_vm2, %v4030_v9  ;;  %3918 = vmatprep.mubr.msk.bf16.mxu1 %vm747_vm2, %v4032_v10 }
  0x96   :  { %3819 = vmatmul.mubr.msk.bf16.gmra.mrb[64].mxu0 %vm747_vm2, %v4031_v11  ;;  %3919 = vmatmul.mubr.msk.bf16.gmra.mrb[64].mxu1 %vm747_vm2, %v4033_v12 }
  0x97   :  { %3822 = vmatprep.mubr.msk.bf16.mxu0 %vm747_vm2, %v4034_v13  ;;  %3922 = vmatprep.mubr.msk.bf16.mxu1 %vm747_vm2, %v4036_v14 }
  0x9e   :  { %3823 = vmatmul.mubr.msk.bf16.gmra.mrb[68].mxu0 %vm747_vm2, %v4035_v15  ;;  %3923 = vmatmul.mubr.msk.bf16.gmra.mrb[68].mxu1 %vm747_vm2, %v4037_v16 }
  0x9f   :  { %3826 = vmatprep.mubr.msk.bf16.mxu0 %vm747_vm2, %v4038_v17  ;;  %3926 = vmatprep.mubr.msk.bf16.mxu1 %vm747_vm2, %v4040_v18 }
  0xa6   :  { %3827 = vmatmul.mubr.msk.bf16.gmra.mrb[72].mxu0 %vm747_vm2, %v4039_v19  ;;  %3927 = vmatmul.mubr.msk.bf16.gmra.mrb[72].mxu1 %vm747_vm2, %v4041_v20 }
  0xa7   :  { %3830 = vmatprep.mubr.msk.bf16.mxu0 %vm747_vm2, %v4042_v21  ;;  %3930 = vmatprep.mubr.msk.bf16.mxu1 %vm747_vm2, %v4044_v22 }
  0xae   :  { %3831 = vmatmul.mubr.msk.bf16.gmra.mrb[76].mxu0 %vm747_vm2, %v4043_v23  ;;  %3931 = vmatmul.mubr.msk.bf16.gmra.mrb[76].mxu1 %vm747_vm2, %v4045_v24 }
  0xaf   :  { %3834 = vmatprep.mubr.msk.bf16.mxu0 %vm747_vm2, %v4046_v25  ;;  %3934 = vmatprep.mubr.msk.bf16.mxu1 %vm747_vm2, %v4048_v26 }
  0xb6   :  { %3835 = vmatmul.mubr.msk.bf16.gmra.mrb[80].mxu0 %vm747_vm2, %v4047_v27  ;;  %3935 = vmatmul.mubr.msk.bf16.gmra.mrb[80].mxu1 %vm747_vm2, %v4049_v28 }
  0xb7   :  { %3838 = vmatprep.mubr.msk.bf16.mxu0 %vm747_vm2, %v4050_v29  ;;  %3938 = vmatprep.mubr.msk.bf16.mxu1 %vm747_vm2, %v4052_v30 }
  0xbe   :  { %3839 = vmatmul.mubr.msk.bf16.gmra.mrb[84].mxu0 %vm747_vm2, %v4051_v31  ;;  %3939 = vmatmul.mubr.msk.bf16.gmra.mrb[84].mxu1 %vm747_vm2, %v4053_v32 }
  0xbf   :  { %3842 = vmatprep.mubr.msk.bf16.mxu0 %vm747_vm2, %v4054_v33  ;;  %3942 = vmatprep.mubr.msk.bf16.mxu1 %vm747_vm2, %v4056_v34 }
  0xc6   :  { %3843 = vmatmul.mubr.msk.bf16.gmra.mrb[88].mxu0 %vm747_vm2, %v4055_v35  ;;  %3943 = vmatmul.mubr.msk.bf16.gmra.mrb[88].mxu1 %vm747_vm2, %v4057_v36 }
  0xc7   :  { %3846 = vmatprep.mubr.msk.bf16.mxu0 %vm747_vm2, %v4058_v37  ;;  %3946 = vmatprep.mubr.msk.bf16.mxu1 %vm747_vm2, %v4060_v38 }
  0xce   :  { %3847 = vmatmul.mubr.msk.bf16.gmra.mrb[92].mxu0 %vm747_vm2, %v4059_v39  ;;  %3947 = vmatmul.mubr.msk.bf16.gmra.mrb[92].mxu1 %vm747_vm2, %v4061_v40 }
  0xcf   :  { %3850 = vmatprep.mubr.msk.bf16.mxu0 %vm747_vm2, %v4062_v41 }
  0xd6   :  { %3851 = vmatmul.mubr.msk.bf16.gmra.mrb[96].mxu0 %vm747_vm2, %v4063_v42 }
  0xe9   :  { %v3756_v44 = vpop.f32.mrb[0].mxu0  ;;  %v3856_v45 = vpop.f32.mrb[0].mxu1 }
  0xea   :  { %v1092_v46 = vadd.f32 %v3756_v44, %v4496_v43  ;;  %v1083_v47 = vpop.f32.mrb[1].mxu0  ;;  %v1492_v48 = vadd.f32 %v3856_v45, %v4496_v43  ;;  %v1483_v49 = vpop.f32.mrb[1].mxu1 }
  0xeb   :  { %v1084_v50 = vadd.f32 %v4496_v43, %v1083_v47  ;;  %v3757_v51 = vpop.f32.mrb[2].mxu0  ;;  %v1484_v52 = vadd.f32 %v4496_v43, %v1483_v49  ;;  %v3857_v53 = vpop.f32.mrb[2].mxu1 }
  0xec   :  { %v1868_v54 = vmax.f32 %v1092_v46, 0.0  ;;  %v1095_v55 = vadd.f32 %v3757_v51, %v4496_v43  ;;  %v1086_v56 = vpop.f32.mrb[3].mxu0  ;;  %v1968_v57 = vmax.f32 %v1492_v48, 0.0  ;;  %v1495_v58 = vadd.f32 %v3857_v53, %v4496_v43  ;;  %v1486_v59 = vpop.f32.mrb[3].mxu1 }
  0xed   :  { %v1866_v60 = vmax.f32 %v1084_v50, 0.0  ;;  %v1087_v61 = vadd.f32 %v4496_v43, %v1086_v56  ;;  %v1966_v62 = vmax.f32 %v1484_v52, 0.0  ;;  %v1487_v63 = vadd.f32 %v4496_v43, %v1486_v59 }
  0xee   :  { %v3447_v0 = vpack.c.bf16 %v1868_v54, %v1868_v54  ;;  %v1869_v1 = vmax.f32 %v1095_v55, 0.0  ;;  %v3547_v2 = vpack.c.bf16 %v1968_v57, %v1968_v57  ;;  %v1969_v3 = vmax.f32 %v1495_v58, 0.0 }
  0xef   :  { %v3445_v4 = vpack.c.bf16 %v1866_v60, %v1866_v60  ;;  %v1867_v5 = vmax.f32 %v1087_v61, 0.0  ;;  %v3545_v6 = vpack.c.bf16 %v1966_v62, %v1966_v62  ;;  %v1967_v7 = vmax.f32 %v1487_v63, 0.0 }
  0xf0   :  { %2849 = vst.msk [vmem:[%s5486_s3 + $0x8] sm:$0xf] %vm2846_vm3, %v3447_v0  ;;  %v3448_v8 = vpack.c.bf16 %v1869_v1, %v1869_v1  ;;  %2949 = vst.msk [vmem:[%s5486_s3 + $0x198] sm:$0xf] %vm2846_vm3, %v3547_v2  ;;  %v3548_v9 = vpack.c.bf16 %v1969_v3, %v1969_v3 }
  0xf1   :  { %2847 = vst.msk [vmem:[%s5486_s3] sm:$0xf] %vm2846_vm3, %v3445_v4  ;;  %v3446_v10 = vpack.c.bf16 %v1867_v5, %v1867_v5  ;;  %2947 = vst.msk [vmem:[%s5486_s3 + $0x190] sm:$0xf] %vm2846_vm3, %v3545_v6  ;;  %v3760_v11 = vpop.f32.mrb[4].mxu0  ;;  %v3546_v12 = vpack.c.bf16 %v1967_v7, %v1967_v7  ;;  %v3860_v13 = vpop.f32.mrb[4].mxu1 }
  0xf2   :  { %2850 = vst.msk [vmem:[%s5486_s3 + $0xc] sm:$0xf] %vm2846_vm3, %v3448_v8  ;;  %2950 = vst.msk [vmem:[%s5486_s3 + $0x19c] sm:$0xf] %vm2846_vm3, %v3548_v9  ;;  %v1108_v14 = vadd.f32 %v3760_v11, %v4496_v43  ;;  %v1099_v15 = vpop.f32.mrb[5].mxu0  ;;  %v1508_v16 = vadd.f32 %v3860_v13, %v4496_v43  ;;  %v1499_v17 = vpop.f32.mrb[5].mxu1 }
  0xf3   :  { %2848 = vst.msk [vmem:[%s5486_s3 + $0x4] sm:$0xf] %vm2846_vm3, %v3446_v10  ;;  %2948 = vst.msk [vmem:[%s5486_s3 + $0x194] sm:$0xf] %vm2846_vm3, %v3546_v12  ;;  %v1100_v18 = vadd.f32 %v4496_v43, %v1099_v15  ;;  %v3761_v19 = vpop.f32.mrb[6].mxu0  ;;  %v1500_v20 = vadd.f32 %v4496_v43, %v1499_v17  ;;  %v3861_v21 = vpop.f32.mrb[6].mxu1 }
  0xf4   :  { %v1872_v22 = vmax.f32 %v1108_v14, 0.0  ;;  %v1111_v23 = vadd.f32 %v3761_v19, %v4496_v43  ;;  %v1102_v24 = vpop.f32.mrb[7].mxu0  ;;  %v1972_v25 = vmax.f32 %v1508_v16, 0.0  ;;  %v1511_v26 = vadd.f32 %v3861_v21, %v4496_v43  ;;  %v1502_v27 = vpop.f32.mrb[7].mxu1 }
  0xf5   :  { %v1870_v28 = vmax.f32 %v1100_v18, 0.0  ;;  %v1103_v29 = vadd.f32 %v4496_v43, %v1102_v24  ;;  %v1970_v30 = vmax.f32 %v1500_v20, 0.0  ;;  %v1503_v31 = vadd.f32 %v4496_v43, %v1502_v27 }
  0xf6   :  { %v3451_v32 = vpack.c.bf16 %v1872_v22, %v1872_v22  ;;  %v1873_v33 = vmax.f32 %v1111_v23, 0.0  ;;  %v3551_v34 = vpack.c.bf16 %v1972_v25, %v1972_v25  ;;  %v1973_v35 = vmax.f32 %v1511_v26, 0.0 }
  0xf7   :  { %v3449_v36 = vpack.c.bf16 %v1870_v28, %v1870_v28  ;;  %v1871_v37 = vmax.f32 %v1103_v29, 0.0  ;;  %v3549_v38 = vpack.c.bf16 %v1970_v30, %v1970_v30  ;;  %v1971_v39 = vmax.f32 %v1503_v31, 0.0 }
  0xf8   :  { %2853 = vst.msk [vmem:[%s5486_s3 + $0x18] sm:$0xf] %vm2846_vm3, %v3451_v32  ;;  %v3452_v40 = vpack.c.bf16 %v1873_v33, %v1873_v33  ;;  %2953 = vst.msk [vmem:[%s5486_s3 + $0x1a8] sm:$0xf] %vm2846_vm3, %v3551_v34  ;;  %v3552_v41 = vpack.c.bf16 %v1973_v35, %v1973_v35 }
  0xf9   :  { %2851 = vst.msk [vmem:[%s5486_s3 + $0x10] sm:$0xf] %vm2846_vm3, %v3449_v36  ;;  %v3450_v42 = vpack.c.bf16 %v1871_v37, %v1871_v37  ;;  %2951 = vst.msk [vmem:[%s5486_s3 + $0x1a0] sm:$0xf] %vm2846_vm3, %v3549_v38  ;;  %v3764_v44 = vpop.f32.mrb[8].mxu0  ;;  %v3550_v45 = vpack.c.bf16 %v1971_v39, %v1971_v39  ;;  %v3864_v46 = vpop.f32.mrb[8].mxu1 }
  0xfa   :  { %2854 = vst.msk [vmem:[%s5486_s3 + $0x1c] sm:$0xf] %vm2846_vm3, %v3452_v40  ;;  %2954 = vst.msk [vmem:[%s5486_s3 + $0x1ac] sm:$0xf] %vm2846_vm3, %v3552_v41  ;;  %v1124_v47 = vadd.f32 %v3764_v44, %v4496_v43  ;;  %v1115_v48 = vpop.f32.mrb[9].mxu0  ;;  %v1524_v49 = vadd.f32 %v3864_v46, %v4496_v43  ;;  %v1515_v50 = vpop.f32.mrb[9].mxu1 }
  0xfb   :  { %2852 = vst.msk [vmem:[%s5486_s3 + $0x14] sm:$0xf] %vm2846_vm3, %v3450_v42  ;;  %2952 = vst.msk [vmem:[%s5486_s3 + $0x1a4] sm:$0xf] %vm2846_vm3, %v3550_v45  ;;  %v1116_v51 = vadd.f32 %v4496_v43, %v1115_v48  ;;  %v3765_v52 = vpop.f32.mrb[10].mxu0  ;;  %v1516_v53 = vadd.f32 %v4496_v43, %v1515_v50  ;;  %v3865_v54 = vpop.f32.mrb[10].mxu1 }
  0xfc   :  { %v1876_v55 = vmax.f32 %v1124_v47, 0.0  ;;  %v1127_v56 = vadd.f32 %v3765_v52, %v4496_v43  ;;  %v1118_v57 = vpop.f32.mrb[11].mxu0  ;;  %v1976_v58 = vmax.f32 %v1524_v49, 0.0  ;;  %v1527_v59 = vadd.f32 %v3865_v54, %v4496_v43  ;;  %v1518_v60 = vpop.f32.mrb[11].mxu1 }
  0xfd   :  { %v1874_v61 = vmax.f32 %v1116_v51, 0.0  ;;  %v1119_v62 = vadd.f32 %v4496_v43, %v1118_v57  ;;  %v1974_v63 = vmax.f32 %v1516_v53, 0.0  ;;  %v1519_v0 = vadd.f32 %v4496_v43, %v1518_v60 }
  0xfe   :  { %v3455_v1 = vpack.c.bf16 %v1876_v55, %v1876_v55  ;;  %v1877_v2 = vmax.f32 %v1127_v56, 0.0  ;;  %v3555_v3 = vpack.c.bf16 %v1976_v58, %v1976_v58  ;;  %v1977_v4 = vmax.f32 %v1527_v59, 0.0 }
  0xff   :  { %v3453_v5 = vpack.c.bf16 %v1874_v61, %v1874_v61  ;;  %v1875_v6 = vmax.f32 %v1119_v62, 0.0  ;;  %v3553_v7 = vpack.c.bf16 %v1974_v63, %v1974_v63  ;;  %v1975_v8 = vmax.f32 %v1519_v0, 0.0 }
 0x100   :  { %2857 = vst.msk [vmem:[%s5486_s3 + $0x28] sm:$0xf] %vm2846_vm3, %v3455_v1  ;;  %v3456_v9 = vpack.c.bf16 %v1877_v2, %v1877_v2  ;;  %2957 = vst.msk [vmem:[%s5486_s3 + $0x1b8] sm:$0xf] %vm2846_vm3, %v3555_v3  ;;  %v3556_v10 = vpack.c.bf16 %v1977_v4, %v1977_v4 }
 0x101   :  { %2855 = vst.msk [vmem:[%s5486_s3 + $0x20] sm:$0xf] %vm2846_vm3, %v3453_v5  ;;  %v3454_v11 = vpack.c.bf16 %v1875_v6, %v1875_v6  ;;  %2955 = vst.msk [vmem:[%s5486_s3 + $0x1b0] sm:$0xf] %vm2846_vm3, %v3553_v7  ;;  %v3768_v12 = vpop.f32.mrb[12].mxu0  ;;  %v3554_v13 = vpack.c.bf16 %v1975_v8, %v1975_v8  ;;  %v3868_v14 = vpop.f32.mrb[12].mxu1 }
 0x102   :  { %2858 = vst.msk [vmem:[%s5486_s3 + $0x2c] sm:$0xf] %vm2846_vm3, %v3456_v9  ;;  %2958 = vst.msk [vmem:[%s5486_s3 + $0x1bc] sm:$0xf] %vm2846_vm3, %v3556_v10  ;;  %v1140_v15 = vadd.f32 %v3768_v12, %v4496_v43  ;;  %v1131_v16 = vpop.f32.mrb[13].mxu0  ;;  %v1540_v17 = vadd.f32 %v3868_v14, %v4496_v43  ;;  %v1531_v18 = vpop.f32.mrb[13].mxu1 }
 0x103   :  { %2856 = vst.msk [vmem:[%s5486_s3 + $0x24] sm:$0xf] %vm2846_vm3, %v3454_v11  ;;  %2956 = vst.msk [vmem:[%s5486_s3 + $0x1b4] sm:$0xf] %vm2846_vm3, %v3554_v13  ;;  %v1132_v19 = vadd.f32 %v4496_v43, %v1131_v16  ;;  %v3769_v20 = vpop.f32.mrb[14].mxu0  ;;  %v1532_v21 = vadd.f32 %v4496_v43, %v1531_v18  ;;  %v3869_v22 = vpop.f32.mrb[14].mxu1 }
 0x104   :  { %v1880_v23 = vmax.f32 %v1140_v15, 0.0  ;;  %v1143_v24 = vadd.f32 %v3769_v20, %v4496_v43  ;;  %v1134_v25 = vpop.f32.mrb[15].mxu0  ;;  %v1980_v26 = vmax.f32 %v1540_v17, 0.0  ;;  %v1543_v27 = vadd.f32 %v3869_v22, %v4496_v43  ;;  %v1534_v28 = vpop.f32.mrb[15].mxu1 }
 0x105   :  { %v1878_v29 = vmax.f32 %v1132_v19, 0.0  ;;  %v1135_v30 = vadd.f32 %v4496_v43, %v1134_v25  ;;  %v1978_v31 = vmax.f32 %v1532_v21, 0.0  ;;  %v1535_v32 = vadd.f32 %v4496_v43, %v1534_v28 }
 0x106   :  { %v3459_v33 = vpack.c.bf16 %v1880_v23, %v1880_v23  ;;  %v1881_v34 = vmax.f32 %v1143_v24, 0.0  ;;  %v3559_v35 = vpack.c.bf16 %v1980_v26, %v1980_v26  ;;  %v1981_v36 = vmax.f32 %v1543_v27, 0.0 }
 0x107   :  { %v3457_v37 = vpack.c.bf16 %v1878_v29, %v1878_v29  ;;  %v1879_v38 = vmax.f32 %v1135_v30, 0.0  ;;  %v3557_v39 = vpack.c.bf16 %v1978_v31, %v1978_v31  ;;  %v1979_v40 = vmax.f32 %v1535_v32, 0.0 }
 0x108   :  { %2861 = vst.msk [vmem:[%s5486_s3 + $0x38] sm:$0xf] %vm2846_vm3, %v3459_v33  ;;  %v3460_v41 = vpack.c.bf16 %v1881_v34, %v1881_v34  ;;  %2961 = vst.msk [vmem:[%s5486_s3 + $0x1c8] sm:$0xf] %vm2846_vm3, %v3559_v35  ;;  %v3560_v42 = vpack.c.bf16 %v1981_v36, %v1981_v36 }
 0x109   :  { %2859 = vst.msk [vmem:[%s5486_s3 + $0x30] sm:$0xf] %vm2846_vm3, %v3457_v37  ;;  %v3458_v44 = vpack.c.bf16 %v1879_v38, %v1879_v38  ;;  %2959 = vst.msk [vmem:[%s5486_s3 + $0x1c0] sm:$0xf] %vm2846_vm3, %v3557_v39  ;;  %v3772_v45 = vpop.f32.mrb[16].mxu0  ;;  %v3558_v46 = vpack.c.bf16 %v1979_v40, %v1979_v40  ;;  %v3872_v47 = vpop.f32.mrb[16].mxu1 }
 0x10a   :  { %2862 = vst.msk [vmem:[%s5486_s3 + $0x3c] sm:$0xf] %vm2846_vm3, %v3460_v41  ;;  %2962 = vst.msk [vmem:[%s5486_s3 + $0x1cc] sm:$0xf] %vm2846_vm3, %v3560_v42  ;;  %v1156_v48 = vadd.f32 %v3772_v45, %v4496_v43  ;;  %v1147_v49 = vpop.f32.mrb[17].mxu0  ;;  %v1556_v50 = vadd.f32 %v3872_v47, %v4496_v43  ;;  %v1547_v51 = vpop.f32.mrb[17].mxu1 }
 0x10b   :  { %2860 = vst.msk [vmem:[%s5486_s3 + $0x34] sm:$0xf] %vm2846_vm3, %v3458_v44  ;;  %2960 = vst.msk [vmem:[%s5486_s3 + $0x1c4] sm:$0xf] %vm2846_vm3, %v3558_v46  ;;  %v1148_v52 = vadd.f32 %v4496_v43, %v1147_v49  ;;  %v3773_v53 = vpop.f32.mrb[18].mxu0  ;;  %v1548_v54 = vadd.f32 %v4496_v43, %v1547_v51  ;;  %v3873_v55 = vpop.f32.mrb[18].mxu1 }
 0x10c   :  { %v1884_v56 = vmax.f32 %v1156_v48, 0.0  ;;  %v1159_v57 = vadd.f32 %v3773_v53, %v4496_v43  ;;  %v1150_v58 = vpop.f32.mrb[19].mxu0  ;;  %v1984_v59 = vmax.f32 %v1556_v50, 0.0  ;;  %v1559_v60 = vadd.f32 %v3873_v55, %v4496_v43  ;;  %v1550_v61 = vpop.f32.mrb[19].mxu1 }
 0x10d   :  { %v1882_v62 = vmax.f32 %v1148_v52, 0.0  ;;  %v1151_v63 = vadd.f32 %v4496_v43, %v1150_v58  ;;  %v1982_v0 = vmax.f32 %v1548_v54, 0.0  ;;  %v1551_v1 = vadd.f32 %v4496_v43, %v1550_v61 }
 0x10e   :  { %v3463_v2 = vpack.c.bf16 %v1884_v56, %v1884_v56  ;;  %v1885_v3 = vmax.f32 %v1159_v57, 0.0  ;;  %v3563_v4 = vpack.c.bf16 %v1984_v59, %v1984_v59  ;;  %v1985_v5 = vmax.f32 %v1559_v60, 0.0 }
 0x10f   :  { %v3461_v6 = vpack.c.bf16 %v1882_v62, %v1882_v62  ;;  %v1883_v7 = vmax.f32 %v1151_v63, 0.0  ;;  %v3561_v8 = vpack.c.bf16 %v1982_v0, %v1982_v0  ;;  %v1983_v9 = vmax.f32 %v1551_v1, 0.0 }
 0x110   :  { %2865 = vst.msk [vmem:[%s5486_s3 + $0x48] sm:$0xf] %vm2846_vm3, %v3463_v2  ;;  %v3464_v10 = vpack.c.bf16 %v1885_v3, %v1885_v3  ;;  %2965 = vst.msk [vmem:[%s5486_s3 + $0x1d8] sm:$0xf] %vm2846_vm3, %v3563_v4  ;;  %v3564_v11 = vpack.c.bf16 %v1985_v5, %v1985_v5 }
 0x111   :  { %2863 = vst.msk [vmem:[%s5486_s3 + $0x40] sm:$0xf] %vm2846_vm3, %v3461_v6  ;;  %v3462_v12 = vpack.c.bf16 %v1883_v7, %v1883_v7  ;;  %2963 = vst.msk [vmem:[%s5486_s3 + $0x1d0] sm:$0xf] %vm2846_vm3, %v3561_v8  ;;  %v3776_v13 = vpop.f32.mrb[20].mxu0  ;;  %v3562_v14 = vpack.c.bf16 %v1983_v9, %v1983_v9  ;;  %v3876_v15 = vpop.f32.mrb[20].mxu1 }
 0x112   :  { %2866 = vst.msk [vmem:[%s5486_s3 + $0x4c] sm:$0xf] %vm2846_vm3, %v3464_v10  ;;  %2966 = vst.msk [vmem:[%s5486_s3 + $0x1dc] sm:$0xf] %vm2846_vm3, %v3564_v11  ;;  %v1172_v16 = vadd.f32 %v3776_v13, %v4496_v43  ;;  %v1163_v17 = vpop.f32.mrb[21].mxu0  ;;  %v1572_v18 = vadd.f32 %v3876_v15, %v4496_v43  ;;  %v1563_v19 = vpop.f32.mrb[21].mxu1 }
 0x113   :  { %2864 = vst.msk [vmem:[%s5486_s3 + $0x44] sm:$0xf] %vm2846_vm3, %v3462_v12  ;;  %2964 = vst.msk [vmem:[%s5486_s3 + $0x1d4] sm:$0xf] %vm2846_vm3, %v3562_v14  ;;  %v1164_v20 = vadd.f32 %v4496_v43, %v1163_v17  ;;  %v3777_v21 = vpop.f32.mrb[22].mxu0  ;;  %v1564_v22 = vadd.f32 %v4496_v43, %v1563_v19  ;;  %v3877_v23 = vpop.f32.mrb[22].mxu1 }
 0x114   :  { %v1888_v24 = vmax.f32 %v1172_v16, 0.0  ;;  %v1175_v25 = vadd.f32 %v3777_v21, %v4496_v43  ;;  %v1166_v26 = vpop.f32.mrb[23].mxu0  ;;  %v1988_v27 = vmax.f32 %v1572_v18, 0.0  ;;  %v1575_v28 = vadd.f32 %v3877_v23, %v4496_v43  ;;  %v1566_v29 = vpop.f32.mrb[23].mxu1 }
 0x115   :  { %v1886_v30 = vmax.f32 %v1164_v20, 0.0  ;;  %v1167_v31 = vadd.f32 %v4496_v43, %v1166_v26  ;;  %v1986_v32 = vmax.f32 %v1564_v22, 0.0  ;;  %v1567_v33 = vadd.f32 %v4496_v43, %v1566_v29 }
 0x116   :  { %v3467_v34 = vpack.c.bf16 %v1888_v24, %v1888_v24  ;;  %v1889_v35 = vmax.f32 %v1175_v25, 0.0  ;;  %v3567_v36 = vpack.c.bf16 %v1988_v27, %v1988_v27  ;;  %v1989_v37 = vmax.f32 %v1575_v28, 0.0 }
 0x117   :  { %v3465_v38 = vpack.c.bf16 %v1886_v30, %v1886_v30  ;;  %v1887_v39 = vmax.f32 %v1167_v31, 0.0  ;;  %v3565_v40 = vpack.c.bf16 %v1986_v32, %v1986_v32  ;;  %v1987_v41 = vmax.f32 %v1567_v33, 0.0 }
 0x118   :  { %2869 = vst.msk [vmem:[%s5486_s3 + $0x58] sm:$0xf] %vm2846_vm3, %v3467_v34  ;;  %v3468_v42 = vpack.c.bf16 %v1889_v35, %v1889_v35  ;;  %2969 = vst.msk [vmem:[%s5486_s3 + $0x1e8] sm:$0xf] %vm2846_vm3, %v3567_v36  ;;  %v3568_v44 = vpack.c.bf16 %v1989_v37, %v1989_v37 }
 0x119   :  { %2867 = vst.msk [vmem:[%s5486_s3 + $0x50] sm:$0xf] %vm2846_vm3, %v3465_v38  ;;  %v3466_v45 = vpack.c.bf16 %v1887_v39, %v1887_v39  ;;  %2967 = vst.msk [vmem:[%s5486_s3 + $0x1e0] sm:$0xf] %vm2846_vm3, %v3565_v40  ;;  %v3780_v46 = vpop.f32.mrb[24].mxu0  ;;  %v3566_v47 = vpack.c.bf16 %v1987_v41, %v1987_v41  ;;  %v3880_v48 = vpop.f32.mrb[24].mxu1 }
 0x11a   :  { %2870 = vst.msk [vmem:[%s5486_s3 + $0x5c] sm:$0xf] %vm2846_vm3, %v3468_v42  ;;  %2970 = vst.msk [vmem:[%s5486_s3 + $0x1ec] sm:$0xf] %vm2846_vm3, %v3568_v44  ;;  %v1188_v49 = vadd.f32 %v3780_v46, %v4496_v43  ;;  %v1179_v50 = vpop.f32.mrb[25].mxu0  ;;  %v1588_v51 = vadd.f32 %v3880_v48, %v4496_v43  ;;  %v1579_v52 = vpop.f32.mrb[25].mxu1 }
 0x11b   :  { %2868 = vst.msk [vmem:[%s5486_s3 + $0x54] sm:$0xf] %vm2846_vm3, %v3466_v45  ;;  %2968 = vst.msk [vmem:[%s5486_s3 + $0x1e4] sm:$0xf] %vm2846_vm3, %v3566_v47  ;;  %v1180_v53 = vadd.f32 %v4496_v43, %v1179_v50  ;;  %v3781_v54 = vpop.f32.mrb[26].mxu0  ;;  %v1580_v55 = vadd.f32 %v4496_v43, %v1579_v52  ;;  %v3881_v56 = vpop.f32.mrb[26].mxu1 }
 0x11c   :  { %v1892_v57 = vmax.f32 %v1188_v49, 0.0  ;;  %v1191_v58 = vadd.f32 %v3781_v54, %v4496_v43  ;;  %v1182_v59 = vpop.f32.mrb[27].mxu0  ;;  %v1992_v60 = vmax.f32 %v1588_v51, 0.0  ;;  %v1591_v61 = vadd.f32 %v3881_v56, %v4496_v43  ;;  %v1582_v62 = vpop.f32.mrb[27].mxu1 }
 0x11d   :  { %v1890_v63 = vmax.f32 %v1180_v53, 0.0  ;;  %v1183_v0 = vadd.f32 %v4496_v43, %v1182_v59  ;;  %v1990_v1 = vmax.f32 %v1580_v55, 0.0  ;;  %v1583_v2 = vadd.f32 %v4496_v43, %v1582_v62 }
 0x11e   :  { %v3471_v3 = vpack.c.bf16 %v1892_v57, %v1892_v57  ;;  %v1893_v4 = vmax.f32 %v1191_v58, 0.0  ;;  %v3571_v5 = vpack.c.bf16 %v1992_v60, %v1992_v60  ;;  %v1993_v6 = vmax.f32 %v1591_v61, 0.0 }
 0x11f   :  { %v3469_v7 = vpack.c.bf16 %v1890_v63, %v1890_v63  ;;  %v1891_v8 = vmax.f32 %v1183_v0, 0.0  ;;  %v3569_v9 = vpack.c.bf16 %v1990_v1, %v1990_v1  ;;  %v1991_v10 = vmax.f32 %v1583_v2, 0.0 }
 0x120   :  { %2873 = vst.msk [vmem:[%s5486_s3 + $0x68] sm:$0xf] %vm2846_vm3, %v3471_v3  ;;  %v3472_v11 = vpack.c.bf16 %v1893_v4, %v1893_v4  ;;  %2973 = vst.msk [vmem:[%s5486_s3 + $0x1f8] sm:$0xf] %vm2846_vm3, %v3571_v5  ;;  %v3572_v12 = vpack.c.bf16 %v1993_v6, %v1993_v6 }
 0x121   :  { %2871 = vst.msk [vmem:[%s5486_s3 + $0x60] sm:$0xf] %vm2846_vm3, %v3469_v7  ;;  %v3470_v13 = vpack.c.bf16 %v1891_v8, %v1891_v8  ;;  %2971 = vst.msk [vmem:[%s5486_s3 + $0x1f0] sm:$0xf] %vm2846_vm3, %v3569_v9  ;;  %v3784_v14 = vpop.f32.mrb[28].mxu0  ;;  %v3570_v15 = vpack.c.bf16 %v1991_v10, %v1991_v10  ;;  %v3884_v16 = vpop.f32.mrb[28].mxu1 }
 0x122   :  { %2874 = vst.msk [vmem:[%s5486_s3 + $0x6c] sm:$0xf] %vm2846_vm3, %v3472_v11  ;;  %2974 = vst.msk [vmem:[%s5486_s3 + $0x1fc] sm:$0xf] %vm2846_vm3, %v3572_v12  ;;  %v1204_v17 = vadd.f32 %v3784_v14, %v4496_v43  ;;  %v1195_v18 = vpop.f32.mrb[29].mxu0  ;;  %v1604_v19 = vadd.f32 %v3884_v16, %v4496_v43  ;;  %v1595_v20 = vpop.f32.mrb[29].mxu1 }
 0x123   :  { %2872 = vst.msk [vmem:[%s5486_s3 + $0x64] sm:$0xf] %vm2846_vm3, %v3470_v13  ;;  %2972 = vst.msk [vmem:[%s5486_s3 + $0x1f4] sm:$0xf] %vm2846_vm3, %v3570_v15  ;;  %v1196_v21 = vadd.f32 %v4496_v43, %v1195_v18  ;;  %v3785_v22 = vpop.f32.mrb[30].mxu0  ;;  %v1596_v23 = vadd.f32 %v4496_v43, %v1595_v20  ;;  %v3885_v24 = vpop.f32.mrb[30].mxu1 }
 0x124   :  { %v1896_v25 = vmax.f32 %v1204_v17, 0.0  ;;  %v1207_v26 = vadd.f32 %v3785_v22, %v4496_v43  ;;  %v1198_v27 = vpop.f32.mrb[31].mxu0  ;;  %v1996_v28 = vmax.f32 %v1604_v19, 0.0  ;;  %v1607_v29 = vadd.f32 %v3885_v24, %v4496_v43  ;;  %v1598_v30 = vpop.f32.mrb[31].mxu1 }
 0x125   :  { %v1894_v31 = vmax.f32 %v1196_v21, 0.0  ;;  %v1199_v32 = vadd.f32 %v4496_v43, %v1198_v27  ;;  %v1994_v33 = vmax.f32 %v1596_v23, 0.0  ;;  %v1599_v34 = vadd.f32 %v4496_v43, %v1598_v30 }
 0x126   :  { %v3475_v35 = vpack.c.bf16 %v1896_v25, %v1896_v25  ;;  %v1897_v36 = vmax.f32 %v1207_v26, 0.0  ;;  %v3575_v37 = vpack.c.bf16 %v1996_v28, %v1996_v28  ;;  %v1997_v38 = vmax.f32 %v1607_v29, 0.0 }
 0x127   :  { %v3473_v39 = vpack.c.bf16 %v1894_v31, %v1894_v31  ;;  %v1895_v40 = vmax.f32 %v1199_v32, 0.0  ;;  %v3573_v41 = vpack.c.bf16 %v1994_v33, %v1994_v33  ;;  %v1995_v42 = vmax.f32 %v1599_v34, 0.0 }
 0x128   :  { %2877 = vst.msk [vmem:[%s5486_s3 + $0x78] sm:$0xf] %vm2846_vm3, %v3475_v35  ;;  %v3476_v44 = vpack.c.bf16 %v1897_v36, %v1897_v36  ;;  %2977 = vst.msk [vmem:[%s5486_s3 + $0x208] sm:$0xf] %vm2846_vm3, %v3575_v37  ;;  %v3576_v45 = vpack.c.bf16 %v1997_v38, %v1997_v38 }
 0x129   :  { %2875 = vst.msk [vmem:[%s5486_s3 + $0x70] sm:$0xf] %vm2846_vm3, %v3473_v39  ;;  %v3474_v46 = vpack.c.bf16 %v1895_v40, %v1895_v40  ;;  %2975 = vst.msk [vmem:[%s5486_s3 + $0x200] sm:$0xf] %vm2846_vm3, %v3573_v41  ;;  %v3788_v47 = vpop.f32.mrb[32].mxu0  ;;  %v3574_v48 = vpack.c.bf16 %v1995_v42, %v1995_v42  ;;  %v3888_v49 = vpop.f32.mrb[32].mxu1 }
 0x12a   :  { %2878 = vst.msk [vmem:[%s5486_s3 + $0x7c] sm:$0xf] %vm2846_vm3, %v3476_v44  ;;  %2978 = vst.msk [vmem:[%s5486_s3 + $0x20c] sm:$0xf] %vm2846_vm3, %v3576_v45  ;;  %v1220_v50 = vadd.f32 %v3788_v47, %v4496_v43  ;;  %v1211_v51 = vpop.f32.mrb[33].mxu0  ;;  %v1620_v52 = vadd.f32 %v3888_v49, %v4496_v43  ;;  %v1611_v53 = vpop.f32.mrb[33].mxu1 }
 0x12b   :  { %2876 = vst.msk [vmem:[%s5486_s3 + $0x74] sm:$0xf] %vm2846_vm3, %v3474_v46  ;;  %2976 = vst.msk [vmem:[%s5486_s3 + $0x204] sm:$0xf] %vm2846_vm3, %v3574_v48  ;;  %v1212_v54 = vadd.f32 %v4496_v43, %v1211_v51  ;;  %v3789_v55 = vpop.f32.mrb[34].mxu0  ;;  %v1612_v56 = vadd.f32 %v4496_v43, %v1611_v53  ;;  %v3889_v57 = vpop.f32.mrb[34].mxu1 }
 0x12c   :  { %v1900_v58 = vmax.f32 %v1220_v50, 0.0  ;;  %v1223_v59 = vadd.f32 %v3789_v55, %v4496_v43  ;;  %v1214_v60 = vpop.f32.mrb[35].mxu0  ;;  %v2000_v61 = vmax.f32 %v1620_v52, 0.0  ;;  %v1623_v62 = vadd.f32 %v3889_v57, %v4496_v43  ;;  %v1614_v63 = vpop.f32.mrb[35].mxu1 }
 0x12d   :  { %v1898_v0 = vmax.f32 %v1212_v54, 0.0  ;;  %v1215_v1 = vadd.f32 %v4496_v43, %v1214_v60  ;;  %v1998_v2 = vmax.f32 %v1612_v56, 0.0  ;;  %v1615_v3 = vadd.f32 %v4496_v43, %v1614_v63 }
 0x12e   :  { %v3479_v4 = vpack.c.bf16 %v1900_v58, %v1900_v58  ;;  %v1901_v5 = vmax.f32 %v1223_v59, 0.0  ;;  %v3579_v6 = vpack.c.bf16 %v2000_v61, %v2000_v61  ;;  %v2001_v7 = vmax.f32 %v1623_v62, 0.0 }
 0x12f   :  { %v3477_v8 = vpack.c.bf16 %v1898_v0, %v1898_v0  ;;  %v1899_v9 = vmax.f32 %v1215_v1, 0.0  ;;  %v3577_v10 = vpack.c.bf16 %v1998_v2, %v1998_v2  ;;  %v1999_v11 = vmax.f32 %v1615_v3, 0.0 }
 0x130   :  { %2881 = vst.msk [vmem:[%s5486_s3 + $0x88] sm:$0xf] %vm2846_vm3, %v3479_v4  ;;  %v3480_v12 = vpack.c.bf16 %v1901_v5, %v1901_v5  ;;  %2981 = vst.msk [vmem:[%s5486_s3 + $0x218] sm:$0xf] %vm2846_vm3, %v3579_v6  ;;  %v3580_v13 = vpack.c.bf16 %v2001_v7, %v2001_v7 }
 0x131   :  { %2879 = vst.msk [vmem:[%s5486_s3 + $0x80] sm:$0xf] %vm2846_vm3, %v3477_v8  ;;  %v3478_v14 = vpack.c.bf16 %v1899_v9, %v1899_v9  ;;  %2979 = vst.msk [vmem:[%s5486_s3 + $0x210] sm:$0xf] %vm2846_vm3, %v3577_v10  ;;  %v3792_v15 = vpop.f32.mrb[36].mxu0  ;;  %v3578_v16 = vpack.c.bf16 %v1999_v11, %v1999_v11  ;;  %v3892_v17 = vpop.f32.mrb[36].mxu1 }
 0x132   :  { %2882 = vst.msk [vmem:[%s5486_s3 + $0x8c] sm:$0xf] %vm2846_vm3, %v3480_v12  ;;  %2982 = vst.msk [vmem:[%s5486_s3 + $0x21c] sm:$0xf] %vm2846_vm3, %v3580_v13  ;;  %v1236_v18 = vadd.f32 %v3792_v15, %v4496_v43  ;;  %v1227_v19 = vpop.f32.mrb[37].mxu0  ;;  %v1636_v20 = vadd.f32 %v3892_v17, %v4496_v43  ;;  %v1627_v21 = vpop.f32.mrb[37].mxu1 }
 0x133   :  { %2880 = vst.msk [vmem:[%s5486_s3 + $0x84] sm:$0xf] %vm2846_vm3, %v3478_v14  ;;  %2980 = vst.msk [vmem:[%s5486_s3 + $0x214] sm:$0xf] %vm2846_vm3, %v3578_v16  ;;  %v1228_v22 = vadd.f32 %v4496_v43, %v1227_v19  ;;  %v3793_v23 = vpop.f32.mrb[38].mxu0  ;;  %v1628_v24 = vadd.f32 %v4496_v43, %v1627_v21  ;;  %v3893_v25 = vpop.f32.mrb[38].mxu1 }
 0x134   :  { %v1904_v26 = vmax.f32 %v1236_v18, 0.0  ;;  %v1239_v27 = vadd.f32 %v3793_v23, %v4496_v43  ;;  %v1230_v28 = vpop.f32.mrb[39].mxu0  ;;  %v2004_v29 = vmax.f32 %v1636_v20, 0.0  ;;  %v1639_v30 = vadd.f32 %v3893_v25, %v4496_v43  ;;  %v1630_v31 = vpop.f32.mrb[39].mxu1 }
 0x135   :  { %v1902_v32 = vmax.f32 %v1228_v22, 0.0  ;;  %v1231_v33 = vadd.f32 %v4496_v43, %v1230_v28  ;;  %v2002_v34 = vmax.f32 %v1628_v24, 0.0  ;;  %v1631_v35 = vadd.f32 %v4496_v43, %v1630_v31 }
 0x136   :  { %v3483_v36 = vpack.c.bf16 %v1904_v26, %v1904_v26  ;;  %v1905_v37 = vmax.f32 %v1239_v27, 0.0  ;;  %v3583_v38 = vpack.c.bf16 %v2004_v29, %v2004_v29  ;;  %v2005_v39 = vmax.f32 %v1639_v30, 0.0 }
 0x137   :  { %v3481_v40 = vpack.c.bf16 %v1902_v32, %v1902_v32  ;;  %v1903_v41 = vmax.f32 %v1231_v33, 0.0  ;;  %v3581_v42 = vpack.c.bf16 %v2002_v34, %v2002_v34  ;;  %v2003_v44 = vmax.f32 %v1631_v35, 0.0 }
 0x138   :  { %2885 = vst.msk [vmem:[%s5486_s3 + $0x98] sm:$0xf] %vm2846_vm3, %v3483_v36  ;;  %v3484_v45 = vpack.c.bf16 %v1905_v37, %v1905_v37  ;;  %2985 = vst.msk [vmem:[%s5486_s3 + $0x228] sm:$0xf] %vm2846_vm3, %v3583_v38  ;;  %v3584_v46 = vpack.c.bf16 %v2005_v39, %v2005_v39 }
 0x139   :  { %2883 = vst.msk [vmem:[%s5486_s3 + $0x90] sm:$0xf] %vm2846_vm3, %v3481_v40  ;;  %v3482_v47 = vpack.c.bf16 %v1903_v41, %v1903_v41  ;;  %2983 = vst.msk [vmem:[%s5486_s3 + $0x220] sm:$0xf] %vm2846_vm3, %v3581_v42  ;;  %v3796_v48 = vpop.f32.mrb[40].mxu0  ;;  %v3582_v49 = vpack.c.bf16 %v2003_v44, %v2003_v44  ;;  %v3896_v50 = vpop.f32.mrb[40].mxu1 }
 0x13a   :  { %2886 = vst.msk [vmem:[%s5486_s3 + $0x9c] sm:$0xf] %vm2846_vm3, %v3484_v45  ;;  %2986 = vst.msk [vmem:[%s5486_s3 + $0x22c] sm:$0xf] %vm2846_vm3, %v3584_v46  ;;  %v1252_v51 = vadd.f32 %v3796_v48, %v4496_v43  ;;  %v1243_v52 = vpop.f32.mrb[41].mxu0  ;;  %v1652_v53 = vadd.f32 %v3896_v50, %v4496_v43  ;;  %v1643_v54 = vpop.f32.mrb[41].mxu1 }
 0x13b   :  { %2884 = vst.msk [vmem:[%s5486_s3 + $0x94] sm:$0xf] %vm2846_vm3, %v3482_v47  ;;  %2984 = vst.msk [vmem:[%s5486_s3 + $0x224] sm:$0xf] %vm2846_vm3, %v3582_v49  ;;  %v1244_v55 = vadd.f32 %v4496_v43, %v1243_v52  ;;  %v3797_v56 = vpop.f32.mrb[42].mxu0  ;;  %v1644_v57 = vadd.f32 %v4496_v43, %v1643_v54  ;;  %v3897_v58 = vpop.f32.mrb[42].mxu1 }
 0x13c   :  { %v1908_v59 = vmax.f32 %v1252_v51, 0.0  ;;  %v1255_v60 = vadd.f32 %v3797_v56, %v4496_v43  ;;  %v1246_v61 = vpop.f32.mrb[43].mxu0  ;;  %v2008_v62 = vmax.f32 %v1652_v53, 0.0  ;;  %v1655_v63 = vadd.f32 %v3897_v58, %v4496_v43  ;;  %v1646_v0 = vpop.f32.mrb[43].mxu1 }
 0x13d   :  { %v1906_v1 = vmax.f32 %v1244_v55, 0.0  ;;  %v1247_v2 = vadd.f32 %v4496_v43, %v1246_v61  ;;  %v2006_v3 = vmax.f32 %v1644_v57, 0.0  ;;  %v1647_v4 = vadd.f32 %v4496_v43, %v1646_v0 }
 0x13e   :  { %v3487_v5 = vpack.c.bf16 %v1908_v59, %v1908_v59  ;;  %v1909_v6 = vmax.f32 %v1255_v60, 0.0  ;;  %v3587_v7 = vpack.c.bf16 %v2008_v62, %v2008_v62  ;;  %v2009_v8 = vmax.f32 %v1655_v63, 0.0 }
 0x13f   :  { %v3485_v9 = vpack.c.bf16 %v1906_v1, %v1906_v1  ;;  %v1907_v10 = vmax.f32 %v1247_v2, 0.0  ;;  %v3585_v11 = vpack.c.bf16 %v2006_v3, %v2006_v3  ;;  %v2007_v12 = vmax.f32 %v1647_v4, 0.0 }
 0x140   :  { %2889 = vst.msk [vmem:[%s5486_s3 + $0xa8] sm:$0xf] %vm2846_vm3, %v3487_v5  ;;  %v3488_v13 = vpack.c.bf16 %v1909_v6, %v1909_v6  ;;  %2989 = vst.msk [vmem:[%s5486_s3 + $0x238] sm:$0xf] %vm2846_vm3, %v3587_v7  ;;  %v3588_v14 = vpack.c.bf16 %v2009_v8, %v2009_v8 }
 0x141   :  { %2887 = vst.msk [vmem:[%s5486_s3 + $0xa0] sm:$0xf] %vm2846_vm3, %v3485_v9  ;;  %v3486_v15 = vpack.c.bf16 %v1907_v10, %v1907_v10  ;;  %2987 = vst.msk [vmem:[%s5486_s3 + $0x230] sm:$0xf] %vm2846_vm3, %v3585_v11  ;;  %v3800_v16 = vpop.f32.mrb[44].mxu0  ;;  %v3586_v17 = vpack.c.bf16 %v2007_v12, %v2007_v12  ;;  %v3900_v18 = vpop.f32.mrb[44].mxu1 }
 0x142   :  { %2890 = vst.msk [vmem:[%s5486_s3 + $0xac] sm:$0xf] %vm2846_vm3, %v3488_v13  ;;  %2990 = vst.msk [vmem:[%s5486_s3 + $0x23c] sm:$0xf] %vm2846_vm3, %v3588_v14  ;;  %v1268_v19 = vadd.f32 %v3800_v16, %v4496_v43  ;;  %v1259_v20 = vpop.f32.mrb[45].mxu0  ;;  %v1668_v21 = vadd.f32 %v3900_v18, %v4496_v43  ;;  %v1659_v22 = vpop.f32.mrb[45].mxu1 }
 0x143   :  { %2888 = vst.msk [vmem:[%s5486_s3 + $0xa4] sm:$0xf] %vm2846_vm3, %v3486_v15  ;;  %2988 = vst.msk [vmem:[%s5486_s3 + $0x234] sm:$0xf] %vm2846_vm3, %v3586_v17  ;;  %v1260_v23 = vadd.f32 %v4496_v43, %v1259_v20  ;;  %v3801_v24 = vpop.f32.mrb[46].mxu0  ;;  %v1660_v25 = vadd.f32 %v4496_v43, %v1659_v22  ;;  %v3901_v26 = vpop.f32.mrb[46].mxu1 }
 0x144   :  { %v1912_v27 = vmax.f32 %v1268_v19, 0.0  ;;  %v1271_v28 = vadd.f32 %v3801_v24, %v4496_v43  ;;  %v1262_v29 = vpop.f32.mrb[47].mxu0  ;;  %v2012_v30 = vmax.f32 %v1668_v21, 0.0  ;;  %v1671_v31 = vadd.f32 %v3901_v26, %v4496_v43  ;;  %v1662_v32 = vpop.f32.mrb[47].mxu1  ;;  %v5013_v19 = vld [vmem:[%s5485_s2] ss:$0 sm:$0xff] }
 0x145   :  { %v1910_v33 = vmax.f32 %v1260_v23, 0.0  ;;  %v1263_v34 = vadd.f32 %v4496_v43, %v1262_v29  ;;  %v2010_v35 = vmax.f32 %v1660_v25, 0.0  ;;  %v1663_v36 = vadd.f32 %v4496_v43, %v1662_v32 }
 0x146   :  { %v3491_v37 = vpack.c.bf16 %v1912_v27, %v1912_v27  ;;  %v1913_v38 = vmax.f32 %v1271_v28, 0.0  ;;  %v3591_v39 = vpack.c.bf16 %v2012_v30, %v2012_v30  ;;  %v2013_v40 = vmax.f32 %v1671_v31, 0.0 }
 0x147   :  { %v3489_v41 = vpack.c.bf16 %v1910_v33, %v1910_v33  ;;  %v1911_v42 = vmax.f32 %v1263_v34, 0.0  ;;  %v3589_v44 = vpack.c.bf16 %v2010_v35, %v2010_v35  ;;  %v2011_v45 = vmax.f32 %v1663_v36, 0.0 }
 0x148   :  { %2893 = vst.msk [vmem:[%s5486_s3 + $0xb8] sm:$0xf] %vm2846_vm3, %v3491_v37  ;;  %v3492_v46 = vpack.c.bf16 %v1913_v38, %v1913_v38  ;;  %2993 = vst.msk [vmem:[%s5486_s3 + $0x248] sm:$0xf] %vm2846_vm3, %v3591_v39  ;;  %v3592_v47 = vpack.c.bf16 %v2013_v40, %v2013_v40 }
 0x149   :  { %2891 = vst.msk [vmem:[%s5486_s3 + $0xb0] sm:$0xf] %vm2846_vm3, %v3489_v41  ;;  %v3490_v48 = vpack.c.bf16 %v1911_v42, %v1911_v42  ;;  %2991 = vst.msk [vmem:[%s5486_s3 + $0x240] sm:$0xf] %vm2846_vm3, %v3589_v44  ;;  %v3804_v49 = vpop.f32.mrb[48].mxu0  ;;  %v3590_v50 = vpack.c.bf16 %v2011_v45, %v2011_v45  ;;  %v3904_v51 = vpop.f32.mrb[48].mxu1 }
 0x14a   :  { %2894 = vst.msk [vmem:[%s5486_s3 + $0xbc] sm:$0xf] %vm2846_vm3, %v3492_v46  ;;  %2994 = vst.msk [vmem:[%s5486_s3 + $0x24c] sm:$0xf] %vm2846_vm3, %v3592_v47  ;;  %v1284_v52 = vadd.f32 %v3804_v49, %v4496_v43  ;;  %v1275_v53 = vpop.f32.mrb[49].mxu0  ;;  %v1684_v54 = vadd.f32 %v3904_v51, %v4496_v43  ;;  %v1675_v55 = vpop.f32.mrb[49].mxu1 }
 0x14b   :  { %2892 = vst.msk [vmem:[%s5486_s3 + $0xb4] sm:$0xf] %vm2846_vm3, %v3490_v48  ;;  %2992 = vst.msk [vmem:[%s5486_s3 + $0x244] sm:$0xf] %vm2846_vm3, %v3590_v50  ;;  %v1276_v56 = vadd.f32 %v4496_v43, %v1275_v53  ;;  %v3805_v57 = vpop.f32.mrb[50].mxu0  ;;  %v1676_v58 = vadd.f32 %v4496_v43, %v1675_v55  ;;  %v3905_v59 = vpop.f32.mrb[50].mxu1 }
 0x14c   :  { %v1916_v60 = vmax.f32 %v1284_v52, 0.0  ;;  %v1287_v61 = vadd.f32 %v3805_v57, %v4496_v43  ;;  %v1278_v62 = vpop.f32.mrb[51].mxu0  ;;  %v2016_v63 = vmax.f32 %v1684_v54, 0.0  ;;  %v1687_v0 = vadd.f32 %v3905_v59, %v4496_v43  ;;  %v1678_v1 = vpop.f32.mrb[51].mxu1 }
 0x14d   :  { %v1914_v2 = vmax.f32 %v1276_v56, 0.0  ;;  %v1279_v3 = vadd.f32 %v4496_v43, %v1278_v62  ;;  %v2014_v4 = vmax.f32 %v1676_v58, 0.0  ;;  %v1679_v5 = vadd.f32 %v4496_v43, %v1678_v1 }
 0x14e   :  { %v3495_v6 = vpack.c.bf16 %v1916_v60, %v1916_v60  ;;  %v1917_v7 = vmax.f32 %v1287_v61, 0.0  ;;  %v3595_v8 = vpack.c.bf16 %v2016_v63, %v2016_v63  ;;  %v2017_v9 = vmax.f32 %v1687_v0, 0.0 }
 0x14f   :  { %v3493_v10 = vpack.c.bf16 %v1914_v2, %v1914_v2  ;;  %v1915_v11 = vmax.f32 %v1279_v3, 0.0  ;;  %v3593_v12 = vpack.c.bf16 %v2014_v4, %v2014_v4  ;;  %v2015_v13 = vmax.f32 %v1679_v5, 0.0 }
 0x150   :  { %2897 = vst.msk [vmem:[%s5486_s3 + $0xc8] sm:$0xf] %vm2846_vm3, %v3495_v6  ;;  %v3496_v14 = vpack.c.bf16 %v1917_v7, %v1917_v7  ;;  %2997 = vst.msk [vmem:[%s5486_s3 + $0x258] sm:$0xf] %vm2846_vm3, %v3595_v8  ;;  %v3596_v43 = vpack.c.bf16 %v2017_v9, %v2017_v9 }
 0x151   :  { %2895 = vst.msk [vmem:[%s5486_s3 + $0xc0] sm:$0xf] %vm2846_vm3, %v3493_v10  ;;  %v3494_v15 = vpack.c.bf16 %v1915_v11, %v1915_v11  ;;  %2995 = vst.msk [vmem:[%s5486_s3 + $0x250] sm:$0xf] %vm2846_vm3, %v3593_v12  ;;  %v3808_v16 = vpop.f32.mrb[52].mxu0  ;;  %v3594_v17 = vpack.c.bf16 %v2015_v13, %v2015_v13  ;;  %v3908_v18 = vpop.f32.mrb[52].mxu1 }
 0x152   :  { %2898 = vst.msk [vmem:[%s5486_s3 + $0xcc] sm:$0xf] %vm2846_vm3, %v3496_v14  ;;  %2998 = vst.msk [vmem:[%s5486_s3 + $0x25c] sm:$0xf] %vm2846_vm3, %v3596_v43  ;;  %v1300_v20 = vadd.f32 %v5013_v19, %v3808_v16  ;;  %v1291_v21 = vpop.f32.mrb[53].mxu0  ;;  %v1700_v22 = vadd.f32 %v5013_v19, %v3908_v18  ;;  %v1691_v23 = vpop.f32.mrb[53].mxu1 }
 0x153   :  { %2896 = vst.msk [vmem:[%s5486_s3 + $0xc4] sm:$0xf] %vm2846_vm3, %v3494_v15  ;;  %2996 = vst.msk [vmem:[%s5486_s3 + $0x254] sm:$0xf] %vm2846_vm3, %v3594_v17  ;;  %v1292_v24 = vadd.f32 %v5013_v19, %v1291_v21  ;;  %v3809_v25 = vpop.f32.mrb[54].mxu0  ;;  %v1692_v26 = vadd.f32 %v5013_v19, %v1691_v23  ;;  %v3909_v27 = vpop.f32.mrb[54].mxu1 }
 0x154   :  { %v1920_v28 = vmax.f32 %v1300_v20, 0.0  ;;  %v1303_v29 = vadd.f32 %v5013_v19, %v3809_v25  ;;  %v1294_v30 = vpop.f32.mrb[55].mxu0  ;;  %v2020_v31 = vmax.f32 %v1700_v22, 0.0  ;;  %v1703_v32 = vadd.f32 %v5013_v19, %v3909_v27  ;;  %v1694_v33 = vpop.f32.mrb[55].mxu1 }
 0x155   :  { %v1918_v34 = vmax.f32 %v1292_v24, 0.0  ;;  %v1295_v35 = vadd.f32 %v5013_v19, %v1294_v30  ;;  %v2018_v36 = vmax.f32 %v1692_v26, 0.0  ;;  %v1695_v37 = vadd.f32 %v5013_v19, %v1694_v33 }
 0x156   :  { %v3499_v38 = vpack.c.bf16 %v1920_v28, %v1920_v28  ;;  %v1921_v39 = vmax.f32 %v1303_v29, 0.0  ;;  %v3599_v40 = vpack.c.bf16 %v2020_v31, %v2020_v31  ;;  %v2021_v41 = vmax.f32 %v1703_v32, 0.0 }
 0x157   :  { %v3497_v42 = vpack.c.bf16 %v1918_v34, %v1918_v34  ;;  %v1919_v44 = vmax.f32 %v1295_v35, 0.0  ;;  %v3597_v45 = vpack.c.bf16 %v2018_v36, %v2018_v36  ;;  %v2019_v46 = vmax.f32 %v1695_v37, 0.0 }
 0x158   :  { %2901 = vst.msk [vmem:[%s5486_s3 + $0xd8] sm:$0xf] %vm2846_vm3, %v3499_v38  ;;  %v3500_v47 = vpack.c.bf16 %v1921_v39, %v1921_v39  ;;  %3001 = vst.msk [vmem:[%s5486_s3 + $0x268] sm:$0xf] %vm2846_vm3, %v3599_v40  ;;  %v3600_v48 = vpack.c.bf16 %v2021_v41, %v2021_v41 }
 0x159   :  { %2899 = vst.msk [vmem:[%s5486_s3 + $0xd0] sm:$0xf] %vm2846_vm3, %v3497_v42  ;;  %v3498_v49 = vpack.c.bf16 %v1919_v44, %v1919_v44  ;;  %2999 = vst.msk [vmem:[%s5486_s3 + $0x260] sm:$0xf] %vm2846_vm3, %v3597_v45  ;;  %v3812_v50 = vpop.f32.mrb[56].mxu0  ;;  %v3598_v51 = vpack.c.bf16 %v2019_v46, %v2019_v46  ;;  %v3912_v52 = vpop.f32.mrb[56].mxu1 }
 0x15a   :  { %2902 = vst.msk [vmem:[%s5486_s3 + $0xdc] sm:$0xf] %vm2846_vm3, %v3500_v47  ;;  %3002 = vst.msk [vmem:[%s5486_s3 + $0x26c] sm:$0xf] %vm2846_vm3, %v3600_v48  ;;  %v1316_v53 = vadd.f32 %v5013_v19, %v3812_v50  ;;  %v1307_v54 = vpop.f32.mrb[57].mxu0  ;;  %v1716_v55 = vadd.f32 %v5013_v19, %v3912_v52  ;;  %v1707_v56 = vpop.f32.mrb[57].mxu1 }
 0x15b   :  { %2900 = vst.msk [vmem:[%s5486_s3 + $0xd4] sm:$0xf] %vm2846_vm3, %v3498_v49  ;;  %3000 = vst.msk [vmem:[%s5486_s3 + $0x264] sm:$0xf] %vm2846_vm3, %v3598_v51  ;;  %v1308_v57 = vadd.f32 %v5013_v19, %v1307_v54  ;;  %v3813_v58 = vpop.f32.mrb[58].mxu0  ;;  %v1708_v59 = vadd.f32 %v5013_v19, %v1707_v56  ;;  %v3913_v60 = vpop.f32.mrb[58].mxu1 }
 0x15c   :  { %v1924_v61 = vmax.f32 %v1316_v53, 0.0  ;;  %v1319_v62 = vadd.f32 %v5013_v19, %v3813_v58  ;;  %v1310_v63 = vpop.f32.mrb[59].mxu0  ;;  %v2024_v0 = vmax.f32 %v1716_v55, 0.0  ;;  %v1719_v1 = vadd.f32 %v5013_v19, %v3913_v60  ;;  %v1710_v2 = vpop.f32.mrb[59].mxu1 }
 0x15d   :  { %v1922_v3 = vmax.f32 %v1308_v57, 0.0  ;;  %v1311_v4 = vadd.f32 %v5013_v19, %v1310_v63  ;;  %v2022_v5 = vmax.f32 %v1708_v59, 0.0  ;;  %v1711_v6 = vadd.f32 %v5013_v19, %v1710_v2 }
 0x15e   :  { %v3503_v7 = vpack.c.bf16 %v1924_v61, %v1924_v61  ;;  %v1925_v8 = vmax.f32 %v1319_v62, 0.0  ;;  %v3603_v9 = vpack.c.bf16 %v2024_v0, %v2024_v0  ;;  %v2025_v10 = vmax.f32 %v1719_v1, 0.0 }
 0x15f   :  { %v3501_v11 = vpack.c.bf16 %v1922_v3, %v1922_v3  ;;  %v1923_v12 = vmax.f32 %v1311_v4, 0.0  ;;  %v3601_v13 = vpack.c.bf16 %v2022_v5, %v2022_v5  ;;  %v2023_v14 = vmax.f32 %v1711_v6, 0.0 }
 0x160   :  { %2905 = vst.msk [vmem:[%s5486_s3 + $0xe8] sm:$0xf] %vm2846_vm3, %v3503_v7  ;;  %v3504_v43 = vpack.c.bf16 %v1925_v8, %v1925_v8  ;;  %3005 = vst.msk [vmem:[%s5486_s3 + $0x278] sm:$0xf] %vm2846_vm3, %v3603_v9  ;;  %v3604_v15 = vpack.c.bf16 %v2025_v10, %v2025_v10 }
 0x161   :  { %2903 = vst.msk [vmem:[%s5486_s3 + $0xe0] sm:$0xf] %vm2846_vm3, %v3501_v11  ;;  %v3502_v16 = vpack.c.bf16 %v1923_v12, %v1923_v12  ;;  %3003 = vst.msk [vmem:[%s5486_s3 + $0x270] sm:$0xf] %vm2846_vm3, %v3601_v13  ;;  %v3816_v17 = vpop.f32.mrb[60].mxu0  ;;  %v3602_v18 = vpack.c.bf16 %v2023_v14, %v2023_v14  ;;  %v3916_v20 = vpop.f32.mrb[60].mxu1 }
 0x162   :  { %2906 = vst.msk [vmem:[%s5486_s3 + $0xec] sm:$0xf] %vm2846_vm3, %v3504_v43  ;;  %3006 = vst.msk [vmem:[%s5486_s3 + $0x27c] sm:$0xf] %vm2846_vm3, %v3604_v15  ;;  %v1332_v21 = vadd.f32 %v5013_v19, %v3816_v17  ;;  %v1323_v22 = vpop.f32.mrb[61].mxu0  ;;  %v1732_v23 = vadd.f32 %v5013_v19, %v3916_v20  ;;  %v1723_v24 = vpop.f32.mrb[61].mxu1 }
 0x163   :  { %2904 = vst.msk [vmem:[%s5486_s3 + $0xe4] sm:$0xf] %vm2846_vm3, %v3502_v16  ;;  %3004 = vst.msk [vmem:[%s5486_s3 + $0x274] sm:$0xf] %vm2846_vm3, %v3602_v18  ;;  %v1324_v25 = vadd.f32 %v5013_v19, %v1323_v22  ;;  %v3817_v26 = vpop.f32.mrb[62].mxu0  ;;  %v1724_v27 = vadd.f32 %v5013_v19, %v1723_v24  ;;  %v3917_v28 = vpop.f32.mrb[62].mxu1 }
 0x164   :  { %v1928_v29 = vmax.f32 %v1332_v21, 0.0  ;;  %v1335_v30 = vadd.f32 %v5013_v19, %v3817_v26  ;;  %v1326_v31 = vpop.f32.mrb[63].mxu0  ;;  %v2028_v32 = vmax.f32 %v1732_v23, 0.0  ;;  %v1735_v33 = vadd.f32 %v5013_v19, %v3917_v28  ;;  %v1726_v34 = vpop.f32.mrb[63].mxu1 }
 0x165   :  { %v1926_v35 = vmax.f32 %v1324_v25, 0.0  ;;  %v1327_v36 = vadd.f32 %v5013_v19, %v1326_v31  ;;  %v2026_v37 = vmax.f32 %v1724_v27, 0.0  ;;  %v1727_v38 = vadd.f32 %v5013_v19, %v1726_v34 }
 0x166   :  { %v3507_v39 = vpack.c.bf16 %v1928_v29, %v1928_v29  ;;  %v1929_v40 = vmax.f32 %v1335_v30, 0.0  ;;  %v3607_v41 = vpack.c.bf16 %v2028_v32, %v2028_v32  ;;  %v2029_v42 = vmax.f32 %v1735_v33, 0.0 }
 0x167   :  { %v3505_v44 = vpack.c.bf16 %v1926_v35, %v1926_v35  ;;  %v1927_v45 = vmax.f32 %v1327_v36, 0.0  ;;  %v3605_v46 = vpack.c.bf16 %v2026_v37, %v2026_v37  ;;  %v2027_v47 = vmax.f32 %v1727_v38, 0.0 }
 0x168   :  { %2909 = vst.msk [vmem:[%s5486_s3 + $0xf8] sm:$0xf] %vm2846_vm3, %v3507_v39  ;;  %v3508_v48 = vpack.c.bf16 %v1929_v40, %v1929_v40  ;;  %3009 = vst.msk [vmem:[%s5486_s3 + $0x288] sm:$0xf] %vm2846_vm3, %v3607_v41  ;;  %v3608_v49 = vpack.c.bf16 %v2029_v42, %v2029_v42 }
 0x169   :  { %2907 = vst.msk [vmem:[%s5486_s3 + $0xf0] sm:$0xf] %vm2846_vm3, %v3505_v44  ;;  %v3506_v50 = vpack.c.bf16 %v1927_v45, %v1927_v45  ;;  %3007 = vst.msk [vmem:[%s5486_s3 + $0x280] sm:$0xf] %vm2846_vm3, %v3605_v46  ;;  %v3820_v51 = vpop.f32.mrb[64].mxu0  ;;  %v3606_v52 = vpack.c.bf16 %v2027_v47, %v2027_v47  ;;  %v3920_v53 = vpop.f32.mrb[64].mxu1 }
 0x16a   :  { %2910 = vst.msk [vmem:[%s5486_s3 + $0xfc] sm:$0xf] %vm2846_vm3, %v3508_v48  ;;  %3010 = vst.msk [vmem:[%s5486_s3 + $0x28c] sm:$0xf] %vm2846_vm3, %v3608_v49  ;;  %v1348_v54 = vadd.f32 %v5013_v19, %v3820_v51  ;;  %v1339_v55 = vpop.f32.mrb[65].mxu0  ;;  %v1748_v56 = vadd.f32 %v5013_v19, %v3920_v53  ;;  %v1739_v57 = vpop.f32.mrb[65].mxu1 }
 0x16b   :  { %2908 = vst.msk [vmem:[%s5486_s3 + $0xf4] sm:$0xf] %vm2846_vm3, %v3506_v50  ;;  %3008 = vst.msk [vmem:[%s5486_s3 + $0x284] sm:$0xf] %vm2846_vm3, %v3606_v52  ;;  %v1340_v58 = vadd.f32 %v5013_v19, %v1339_v55  ;;  %v3821_v59 = vpop.f32.mrb[66].mxu0  ;;  %v1740_v60 = vadd.f32 %v5013_v19, %v1739_v57  ;;  %v3921_v61 = vpop.f32.mrb[66].mxu1 }
 0x16c   :  { %v1932_v62 = vmax.f32 %v1348_v54, 0.0  ;;  %v1351_v63 = vadd.f32 %v5013_v19, %v3821_v59  ;;  %v1342_v0 = vpop.f32.mrb[67].mxu0  ;;  %v2032_v1 = vmax.f32 %v1748_v56, 0.0  ;;  %v1751_v2 = vadd.f32 %v5013_v19, %v3921_v61  ;;  %v1742_v3 = vpop.f32.mrb[67].mxu1 }
 0x16d   :  { %v1930_v4 = vmax.f32 %v1340_v58, 0.0  ;;  %v1343_v5 = vadd.f32 %v5013_v19, %v1342_v0  ;;  %v2030_v6 = vmax.f32 %v1740_v60, 0.0  ;;  %v1743_v7 = vadd.f32 %v5013_v19, %v1742_v3 }
 0x16e   :  { %v3511_v8 = vpack.c.bf16 %v1932_v62, %v1932_v62  ;;  %v1933_v9 = vmax.f32 %v1351_v63, 0.0  ;;  %v3611_v10 = vpack.c.bf16 %v2032_v1, %v2032_v1  ;;  %v2033_v11 = vmax.f32 %v1751_v2, 0.0 }
 0x16f   :  { %v3509_v12 = vpack.c.bf16 %v1930_v4, %v1930_v4  ;;  %v1931_v13 = vmax.f32 %v1343_v5, 0.0  ;;  %v3609_v14 = vpack.c.bf16 %v2030_v6, %v2030_v6  ;;  %v2031_v43 = vmax.f32 %v1743_v7, 0.0 }
 0x170   :  { %2913 = vst.msk [vmem:[%s5486_s3 + $0x108] sm:$0xf] %vm2846_vm3, %v3511_v8  ;;  %v3512_v15 = vpack.c.bf16 %v1933_v9, %v1933_v9  ;;  %3013 = vst.msk [vmem:[%s5486_s3 + $0x298] sm:$0xf] %vm2846_vm3, %v3611_v10  ;;  %v3612_v16 = vpack.c.bf16 %v2033_v11, %v2033_v11 }
 0x171   :  { %2911 = vst.msk [vmem:[%s5486_s3 + $0x100] sm:$0xf] %vm2846_vm3, %v3509_v12  ;;  %v3510_v17 = vpack.c.bf16 %v1931_v13, %v1931_v13  ;;  %3011 = vst.msk [vmem:[%s5486_s3 + $0x290] sm:$0xf] %vm2846_vm3, %v3609_v14  ;;  %v3824_v18 = vpop.f32.mrb[68].mxu0  ;;  %v3610_v20 = vpack.c.bf16 %v2031_v43, %v2031_v43  ;;  %v3924_v21 = vpop.f32.mrb[68].mxu1 }
 0x172   :  { %2914 = vst.msk [vmem:[%s5486_s3 + $0x10c] sm:$0xf] %vm2846_vm3, %v3512_v15  ;;  %3014 = vst.msk [vmem:[%s5486_s3 + $0x29c] sm:$0xf] %vm2846_vm3, %v3612_v16  ;;  %v1364_v22 = vadd.f32 %v5013_v19, %v3824_v18  ;;  %v1355_v23 = vpop.f32.mrb[69].mxu0  ;;  %v1764_v24 = vadd.f32 %v5013_v19, %v3924_v21  ;;  %v1755_v25 = vpop.f32.mrb[69].mxu1 }
 0x173   :  { %2912 = vst.msk [vmem:[%s5486_s3 + $0x104] sm:$0xf] %vm2846_vm3, %v3510_v17  ;;  %3012 = vst.msk [vmem:[%s5486_s3 + $0x294] sm:$0xf] %vm2846_vm3, %v3610_v20  ;;  %v1356_v26 = vadd.f32 %v5013_v19, %v1355_v23  ;;  %v3825_v27 = vpop.f32.mrb[70].mxu0  ;;  %v1756_v28 = vadd.f32 %v5013_v19, %v1755_v25  ;;  %v3925_v29 = vpop.f32.mrb[70].mxu1 }
 0x174   :  { %v1936_v30 = vmax.f32 %v1364_v22, 0.0  ;;  %v1367_v31 = vadd.f32 %v5013_v19, %v3825_v27  ;;  %v1358_v32 = vpop.f32.mrb[71].mxu0  ;;  %v2036_v33 = vmax.f32 %v1764_v24, 0.0  ;;  %v1767_v34 = vadd.f32 %v5013_v19, %v3925_v29  ;;  %v1758_v35 = vpop.f32.mrb[71].mxu1 }
 0x175   :  { %v1934_v36 = vmax.f32 %v1356_v26, 0.0  ;;  %v1359_v37 = vadd.f32 %v5013_v19, %v1358_v32  ;;  %v2034_v38 = vmax.f32 %v1756_v28, 0.0  ;;  %v1759_v39 = vadd.f32 %v5013_v19, %v1758_v35 }
 0x176   :  { %v3515_v40 = vpack.c.bf16 %v1936_v30, %v1936_v30  ;;  %v1937_v41 = vmax.f32 %v1367_v31, 0.0  ;;  %v3615_v42 = vpack.c.bf16 %v2036_v33, %v2036_v33  ;;  %v2037_v44 = vmax.f32 %v1767_v34, 0.0 }
 0x177   :  { %v3513_v45 = vpack.c.bf16 %v1934_v36, %v1934_v36  ;;  %v1935_v46 = vmax.f32 %v1359_v37, 0.0  ;;  %v3613_v47 = vpack.c.bf16 %v2034_v38, %v2034_v38  ;;  %v2035_v48 = vmax.f32 %v1759_v39, 0.0 }
 0x178   :  { %2917 = vst.msk [vmem:[%s5486_s3 + $0x118] sm:$0xf] %vm2846_vm3, %v3515_v40  ;;  %v3516_v49 = vpack.c.bf16 %v1937_v41, %v1937_v41  ;;  %3017 = vst.msk [vmem:[%s5486_s3 + $0x2a8] sm:$0xf] %vm2846_vm3, %v3615_v42  ;;  %v3616_v50 = vpack.c.bf16 %v2037_v44, %v2037_v44 }
 0x179   :  { %2915 = vst.msk [vmem:[%s5486_s3 + $0x110] sm:$0xf] %vm2846_vm3, %v3513_v45  ;;  %v3514_v51 = vpack.c.bf16 %v1935_v46, %v1935_v46  ;;  %3015 = vst.msk [vmem:[%s5486_s3 + $0x2a0] sm:$0xf] %vm2846_vm3, %v3613_v47  ;;  %v3828_v52 = vpop.f32.mrb[72].mxu0  ;;  %v3614_v53 = vpack.c.bf16 %v2035_v48, %v2035_v48  ;;  %v3928_v54 = vpop.f32.mrb[72].mxu1 }
 0x17a   :  { %2918 = vst.msk [vmem:[%s5486_s3 + $0x11c] sm:$0xf] %vm2846_vm3, %v3516_v49  ;;  %3018 = vst.msk [vmem:[%s5486_s3 + $0x2ac] sm:$0xf] %vm2846_vm3, %v3616_v50  ;;  %v1380_v55 = vadd.f32 %v5013_v19, %v3828_v52  ;;  %v1371_v56 = vpop.f32.mrb[73].mxu0  ;;  %v1780_v57 = vadd.f32 %v5013_v19, %v3928_v54  ;;  %v1771_v58 = vpop.f32.mrb[73].mxu1 }
 0x17b   :  { %2916 = vst.msk [vmem:[%s5486_s3 + $0x114] sm:$0xf] %vm2846_vm3, %v3514_v51  ;;  %3016 = vst.msk [vmem:[%s5486_s3 + $0x2a4] sm:$0xf] %vm2846_vm3, %v3614_v53  ;;  %v1372_v59 = vadd.f32 %v5013_v19, %v1371_v56  ;;  %v3829_v60 = vpop.f32.mrb[74].mxu0  ;;  %v1772_v61 = vadd.f32 %v5013_v19, %v1771_v58  ;;  %v3929_v62 = vpop.f32.mrb[74].mxu1 }
 0x17c   :  { %v1940_v63 = vmax.f32 %v1380_v55, 0.0  ;;  %v1383_v0 = vadd.f32 %v5013_v19, %v3829_v60  ;;  %v1374_v1 = vpop.f32.mrb[75].mxu0  ;;  %v2040_v2 = vmax.f32 %v1780_v57, 0.0  ;;  %v1783_v3 = vadd.f32 %v5013_v19, %v3929_v62  ;;  %v1774_v4 = vpop.f32.mrb[75].mxu1 }
 0x17d   :  { %v1938_v5 = vmax.f32 %v1372_v59, 0.0  ;;  %v1375_v6 = vadd.f32 %v5013_v19, %v1374_v1  ;;  %v2038_v7 = vmax.f32 %v1772_v61, 0.0  ;;  %v1775_v8 = vadd.f32 %v5013_v19, %v1774_v4 }
 0x17e   :  { %v3519_v9 = vpack.c.bf16 %v1940_v63, %v1940_v63  ;;  %v1941_v10 = vmax.f32 %v1383_v0, 0.0  ;;  %v3619_v11 = vpack.c.bf16 %v2040_v2, %v2040_v2  ;;  %v2041_v12 = vmax.f32 %v1783_v3, 0.0 }
 0x17f   :  { %v3517_v13 = vpack.c.bf16 %v1938_v5, %v1938_v5  ;;  %v1939_v14 = vmax.f32 %v1375_v6, 0.0  ;;  %v3617_v43 = vpack.c.bf16 %v2038_v7, %v2038_v7  ;;  %v2039_v15 = vmax.f32 %v1775_v8, 0.0 }
 0x180   :  { %2921 = vst.msk [vmem:[%s5486_s3 + $0x128] sm:$0xf] %vm2846_vm3, %v3519_v9  ;;  %v3520_v16 = vpack.c.bf16 %v1941_v10, %v1941_v10  ;;  %3021 = vst.msk [vmem:[%s5486_s3 + $0x2b8] sm:$0xf] %vm2846_vm3, %v3619_v11  ;;  %v3620_v17 = vpack.c.bf16 %v2041_v12, %v2041_v12 }
 0x181   :  { %2919 = vst.msk [vmem:[%s5486_s3 + $0x120] sm:$0xf] %vm2846_vm3, %v3517_v13  ;;  %v3518_v18 = vpack.c.bf16 %v1939_v14, %v1939_v14  ;;  %3019 = vst.msk [vmem:[%s5486_s3 + $0x2b0] sm:$0xf] %vm2846_vm3, %v3617_v43  ;;  %v3832_v20 = vpop.f32.mrb[76].mxu0  ;;  %v3618_v21 = vpack.c.bf16 %v2039_v15, %v2039_v15  ;;  %v3932_v22 = vpop.f32.mrb[76].mxu1 }
 0x182   :  { %2922 = vst.msk [vmem:[%s5486_s3 + $0x12c] sm:$0xf] %vm2846_vm3, %v3520_v16  ;;  %3022 = vst.msk [vmem:[%s5486_s3 + $0x2bc] sm:$0xf] %vm2846_vm3, %v3620_v17  ;;  %v1396_v23 = vadd.f32 %v5013_v19, %v3832_v20  ;;  %v1387_v24 = vpop.f32.mrb[77].mxu0  ;;  %v1796_v25 = vadd.f32 %v5013_v19, %v3932_v22  ;;  %v1787_v26 = vpop.f32.mrb[77].mxu1 }
 0x183   :  { %2920 = vst.msk [vmem:[%s5486_s3 + $0x124] sm:$0xf] %vm2846_vm3, %v3518_v18  ;;  %3020 = vst.msk [vmem:[%s5486_s3 + $0x2b4] sm:$0xf] %vm2846_vm3, %v3618_v21  ;;  %v1388_v27 = vadd.f32 %v5013_v19, %v1387_v24  ;;  %v3833_v28 = vpop.f32.mrb[78].mxu0  ;;  %v1788_v29 = vadd.f32 %v5013_v19, %v1787_v26  ;;  %v3933_v30 = vpop.f32.mrb[78].mxu1 }
 0x184   :  { %v1944_v31 = vmax.f32 %v1396_v23, 0.0  ;;  %v1399_v32 = vadd.f32 %v5013_v19, %v3833_v28  ;;  %v1390_v33 = vpop.f32.mrb[79].mxu0  ;;  %v2044_v34 = vmax.f32 %v1796_v25, 0.0  ;;  %v1799_v35 = vadd.f32 %v5013_v19, %v3933_v30  ;;  %v1790_v36 = vpop.f32.mrb[79].mxu1 }
 0x185   :  { %v1942_v37 = vmax.f32 %v1388_v27, 0.0  ;;  %v1391_v38 = vadd.f32 %v5013_v19, %v1390_v33  ;;  %v2042_v39 = vmax.f32 %v1788_v29, 0.0  ;;  %v1791_v40 = vadd.f32 %v5013_v19, %v1790_v36 }
 0x186   :  { %v3523_v41 = vpack.c.bf16 %v1944_v31, %v1944_v31  ;;  %v1945_v42 = vmax.f32 %v1399_v32, 0.0  ;;  %v3623_v44 = vpack.c.bf16 %v2044_v34, %v2044_v34  ;;  %v2045_v45 = vmax.f32 %v1799_v35, 0.0 }
 0x187   :  { %v3521_v46 = vpack.c.bf16 %v1942_v37, %v1942_v37  ;;  %v1943_v47 = vmax.f32 %v1391_v38, 0.0  ;;  %v3621_v48 = vpack.c.bf16 %v2042_v39, %v2042_v39  ;;  %v2043_v49 = vmax.f32 %v1791_v40, 0.0 }
 0x188   :  { %2925 = vst.msk [vmem:[%s5486_s3 + $0x138] sm:$0xf] %vm2846_vm3, %v3523_v41  ;;  %v3524_v50 = vpack.c.bf16 %v1945_v42, %v1945_v42  ;;  %3025 = vst.msk [vmem:[%s5486_s3 + $0x2c8] sm:$0xf] %vm2846_vm3, %v3623_v44  ;;  %v3624_v51 = vpack.c.bf16 %v2045_v45, %v2045_v45 }
 0x189   :  { %2923 = vst.msk [vmem:[%s5486_s3 + $0x130] sm:$0xf] %vm2846_vm3, %v3521_v46  ;;  %v3522_v52 = vpack.c.bf16 %v1943_v47, %v1943_v47  ;;  %3023 = vst.msk [vmem:[%s5486_s3 + $0x2c0] sm:$0xf] %vm2846_vm3, %v3621_v48  ;;  %v3836_v53 = vpop.f32.mrb[80].mxu0  ;;  %v3622_v54 = vpack.c.bf16 %v2043_v49, %v2043_v49  ;;  %v3936_v55 = vpop.f32.mrb[80].mxu1 }
 0x18a   :  { %2926 = vst.msk [vmem:[%s5486_s3 + $0x13c] sm:$0xf] %vm2846_vm3, %v3524_v50  ;;  %3026 = vst.msk [vmem:[%s5486_s3 + $0x2cc] sm:$0xf] %vm2846_vm3, %v3624_v51  ;;  %v1412_v56 = vadd.f32 %v5013_v19, %v3836_v53  ;;  %v1403_v57 = vpop.f32.mrb[81].mxu0  ;;  %v1812_v58 = vadd.f32 %v5013_v19, %v3936_v55  ;;  %v1803_v59 = vpop.f32.mrb[81].mxu1 }
 0x18b   :  { %2924 = vst.msk [vmem:[%s5486_s3 + $0x134] sm:$0xf] %vm2846_vm3, %v3522_v52  ;;  %3024 = vst.msk [vmem:[%s5486_s3 + $0x2c4] sm:$0xf] %vm2846_vm3, %v3622_v54  ;;  %v1404_v60 = vadd.f32 %v5013_v19, %v1403_v57  ;;  %v3837_v61 = vpop.f32.mrb[82].mxu0  ;;  %v1804_v62 = vadd.f32 %v5013_v19, %v1803_v59  ;;  %v3937_v63 = vpop.f32.mrb[82].mxu1 }
 0x18c   :  { %v1948_v0 = vmax.f32 %v1412_v56, 0.0  ;;  %v1415_v1 = vadd.f32 %v5013_v19, %v3837_v61  ;;  %v1406_v2 = vpop.f32.mrb[83].mxu0  ;;  %v2048_v3 = vmax.f32 %v1812_v58, 0.0  ;;  %v1815_v4 = vadd.f32 %v5013_v19, %v3937_v63  ;;  %v1806_v5 = vpop.f32.mrb[83].mxu1 }
 0x18d   :  { %v1946_v6 = vmax.f32 %v1404_v60, 0.0  ;;  %v1407_v7 = vadd.f32 %v5013_v19, %v1406_v2  ;;  %v2046_v8 = vmax.f32 %v1804_v62, 0.0  ;;  %v1807_v9 = vadd.f32 %v5013_v19, %v1806_v5 }
 0x18e   :  { %v3527_v10 = vpack.c.bf16 %v1948_v0, %v1948_v0  ;;  %v1949_v11 = vmax.f32 %v1415_v1, 0.0  ;;  %v3627_v12 = vpack.c.bf16 %v2048_v3, %v2048_v3  ;;  %v2049_v13 = vmax.f32 %v1815_v4, 0.0 }
 0x18f   :  { %v3525_v14 = vpack.c.bf16 %v1946_v6, %v1946_v6  ;;  %v1947_v43 = vmax.f32 %v1407_v7, 0.0  ;;  %v3625_v15 = vpack.c.bf16 %v2046_v8, %v2046_v8  ;;  %v2047_v16 = vmax.f32 %v1807_v9, 0.0 }
 0x190   :  { %2929 = vst.msk [vmem:[%s5486_s3 + $0x148] sm:$0xf] %vm2846_vm3, %v3527_v10  ;;  %v3528_v17 = vpack.c.bf16 %v1949_v11, %v1949_v11  ;;  %3029 = vst.msk [vmem:[%s5486_s3 + $0x2d8] sm:$0xf] %vm2846_vm3, %v3627_v12  ;;  %v3628_v18 = vpack.c.bf16 %v2049_v13, %v2049_v13 }
 0x191   :  { %2927 = vst.msk [vmem:[%s5486_s3 + $0x140] sm:$0xf] %vm2846_vm3, %v3525_v14  ;;  %v3526_v20 = vpack.c.bf16 %v1947_v43, %v1947_v43  ;;  %3027 = vst.msk [vmem:[%s5486_s3 + $0x2d0] sm:$0xf] %vm2846_vm3, %v3625_v15  ;;  %v3840_v21 = vpop.f32.mrb[84].mxu0  ;;  %v3626_v22 = vpack.c.bf16 %v2047_v16, %v2047_v16  ;;  %v3940_v23 = vpop.f32.mrb[84].mxu1 }
 0x192   :  { %2930 = vst.msk [vmem:[%s5486_s3 + $0x14c] sm:$0xf] %vm2846_vm3, %v3528_v17  ;;  %3030 = vst.msk [vmem:[%s5486_s3 + $0x2dc] sm:$0xf] %vm2846_vm3, %v3628_v18  ;;  %v1428_v24 = vadd.f32 %v5013_v19, %v3840_v21  ;;  %v1419_v25 = vpop.f32.mrb[85].mxu0  ;;  %v1828_v26 = vadd.f32 %v5013_v19, %v3940_v23  ;;  %v1819_v27 = vpop.f32.mrb[85].mxu1 }
 0x193   :  { %2928 = vst.msk [vmem:[%s5486_s3 + $0x144] sm:$0xf] %vm2846_vm3, %v3526_v20  ;;  %3028 = vst.msk [vmem:[%s5486_s3 + $0x2d4] sm:$0xf] %vm2846_vm3, %v3626_v22  ;;  %v1420_v28 = vadd.f32 %v5013_v19, %v1419_v25  ;;  %v3841_v29 = vpop.f32.mrb[86].mxu0  ;;  %v1820_v30 = vadd.f32 %v5013_v19, %v1819_v27  ;;  %v3941_v31 = vpop.f32.mrb[86].mxu1 }
 0x194   :  { %v1952_v32 = vmax.f32 %v1428_v24, 0.0  ;;  %v1431_v33 = vadd.f32 %v5013_v19, %v3841_v29  ;;  %v1422_v34 = vpop.f32.mrb[87].mxu0  ;;  %v2052_v35 = vmax.f32 %v1828_v26, 0.0  ;;  %v1831_v36 = vadd.f32 %v5013_v19, %v3941_v31  ;;  %v1822_v37 = vpop.f32.mrb[87].mxu1 }
 0x195   :  { %v1950_v38 = vmax.f32 %v1420_v28, 0.0  ;;  %v1423_v39 = vadd.f32 %v5013_v19, %v1422_v34  ;;  %v2050_v40 = vmax.f32 %v1820_v30, 0.0  ;;  %v1823_v41 = vadd.f32 %v5013_v19, %v1822_v37 }
 0x196   :  { %v3531_v42 = vpack.c.bf16 %v1952_v32, %v1952_v32  ;;  %v1953_v44 = vmax.f32 %v1431_v33, 0.0  ;;  %v3631_v45 = vpack.c.bf16 %v2052_v35, %v2052_v35  ;;  %v2053_v46 = vmax.f32 %v1831_v36, 0.0 }
 0x197   :  { %v3529_v47 = vpack.c.bf16 %v1950_v38, %v1950_v38  ;;  %v1951_v48 = vmax.f32 %v1423_v39, 0.0  ;;  %v3629_v49 = vpack.c.bf16 %v2050_v40, %v2050_v40  ;;  %v2051_v50 = vmax.f32 %v1823_v41, 0.0 }
 0x198   :  { %2933 = vst.msk [vmem:[%s5486_s3 + $0x158] sm:$0xf] %vm2846_vm3, %v3531_v42  ;;  %v3532_v51 = vpack.c.bf16 %v1953_v44, %v1953_v44  ;;  %3033 = vst.msk [vmem:[%s5486_s3 + $0x2e8] sm:$0xf] %vm2846_vm3, %v3631_v45  ;;  %v3632_v52 = vpack.c.bf16 %v2053_v46, %v2053_v46 }
 0x199   :  { %2931 = vst.msk [vmem:[%s5486_s3 + $0x150] sm:$0xf] %vm2846_vm3, %v3529_v47  ;;  %v3530_v53 = vpack.c.bf16 %v1951_v48, %v1951_v48  ;;  %3031 = vst.msk [vmem:[%s5486_s3 + $0x2e0] sm:$0xf] %vm2846_vm3, %v3629_v49  ;;  %v3844_v54 = vpop.f32.mrb[88].mxu0  ;;  %v3630_v55 = vpack.c.bf16 %v2051_v50, %v2051_v50  ;;  %v3944_v56 = vpop.f32.mrb[88].mxu1 }
 0x19a   :  { %2934 = vst.msk [vmem:[%s5486_s3 + $0x15c] sm:$0xf] %vm2846_vm3, %v3532_v51  ;;  %3034 = vst.msk [vmem:[%s5486_s3 + $0x2ec] sm:$0xf] %vm2846_vm3, %v3632_v52  ;;  %v1444_v57 = vadd.f32 %v5013_v19, %v3844_v54  ;;  %v1435_v58 = vpop.f32.mrb[89].mxu0  ;;  %v1844_v59 = vadd.f32 %v5013_v19, %v3944_v56  ;;  %v1835_v60 = vpop.f32.mrb[89].mxu1 }
 0x19b   :  { %2932 = vst.msk [vmem:[%s5486_s3 + $0x154] sm:$0xf] %vm2846_vm3, %v3530_v53  ;;  %3032 = vst.msk [vmem:[%s5486_s3 + $0x2e4] sm:$0xf] %vm2846_vm3, %v3630_v55  ;;  %v1436_v61 = vadd.f32 %v5013_v19, %v1435_v58  ;;  %v3845_v62 = vpop.f32.mrb[90].mxu0  ;;  %v1836_v63 = vadd.f32 %v5013_v19, %v1835_v60  ;;  %v3945_v0 = vpop.f32.mrb[90].mxu1 }
 0x19c   :  { %v1956_v1 = vmax.f32 %v1444_v57, 0.0  ;;  %v1447_v2 = vadd.f32 %v5013_v19, %v3845_v62  ;;  %v1438_v3 = vpop.f32.mrb[91].mxu0  ;;  %v2056_v4 = vmax.f32 %v1844_v59, 0.0  ;;  %v1847_v5 = vadd.f32 %v5013_v19, %v3945_v0  ;;  %v1838_v6 = vpop.f32.mrb[91].mxu1 }
 0x19d   :  { %v1954_v7 = vmax.f32 %v1436_v61, 0.0  ;;  %v1439_v8 = vadd.f32 %v5013_v19, %v1438_v3  ;;  %v2054_v9 = vmax.f32 %v1836_v63, 0.0  ;;  %v1839_v10 = vadd.f32 %v5013_v19, %v1838_v6 }
 0x19e   :  { %v3535_v11 = vpack.c.bf16 %v1956_v1, %v1956_v1  ;;  %v1957_v12 = vmax.f32 %v1447_v2, 0.0  ;;  %v3635_v13 = vpack.c.bf16 %v2056_v4, %v2056_v4  ;;  %v2057_v14 = vmax.f32 %v1847_v5, 0.0 }
 0x19f   :  { %v3533_v43 = vpack.c.bf16 %v1954_v7, %v1954_v7  ;;  %v1955_v15 = vmax.f32 %v1439_v8, 0.0  ;;  %v3633_v16 = vpack.c.bf16 %v2054_v9, %v2054_v9  ;;  %v2055_v17 = vmax.f32 %v1839_v10, 0.0 }
 0x1a0   :  { %2937 = vst.msk [vmem:[%s5486_s3 + $0x168] sm:$0xf] %vm2846_vm3, %v3535_v11  ;;  %v3536_v18 = vpack.c.bf16 %v1957_v12, %v1957_v12  ;;  %3037 = vst.msk [vmem:[%s5486_s3 + $0x2f8] sm:$0xf] %vm2846_vm3, %v3635_v13  ;;  %v3636_v20 = vpack.c.bf16 %v2057_v14, %v2057_v14 }
 0x1a1   :  { %2935 = vst.msk [vmem:[%s5486_s3 + $0x160] sm:$0xf] %vm2846_vm3, %v3533_v43  ;;  %v3534_v21 = vpack.c.bf16 %v1955_v15, %v1955_v15  ;;  %3035 = vst.msk [vmem:[%s5486_s3 + $0x2f0] sm:$0xf] %vm2846_vm3, %v3633_v16  ;;  %v3848_v22 = vpop.f32.mrb[92].mxu0  ;;  %v3634_v23 = vpack.c.bf16 %v2055_v17, %v2055_v17  ;;  %v3948_v24 = vpop.f32.mrb[92].mxu1 }
 0x1a2   :  { %2938 = vst.msk [vmem:[%s5486_s3 + $0x16c] sm:$0xf] %vm2846_vm3, %v3536_v18  ;;  %3038 = vst.msk [vmem:[%s5486_s3 + $0x2fc] sm:$0xf] %vm2846_vm3, %v3636_v20  ;;  %v1460_v25 = vadd.f32 %v5013_v19, %v3848_v22  ;;  %v1451_v26 = vpop.f32.mrb[93].mxu0  ;;  %v1860_v27 = vadd.f32 %v5013_v19, %v3948_v24  ;;  %v1851_v28 = vpop.f32.mrb[93].mxu1 }
 0x1a3   :  { %2936 = vst.msk [vmem:[%s5486_s3 + $0x164] sm:$0xf] %vm2846_vm3, %v3534_v21  ;;  %3036 = vst.msk [vmem:[%s5486_s3 + $0x2f4] sm:$0xf] %vm2846_vm3, %v3634_v23  ;;  %v1452_v29 = vadd.f32 %v5013_v19, %v1451_v26  ;;  %v3849_v30 = vpop.f32.mrb[94].mxu0  ;;  %v1852_v31 = vadd.f32 %v5013_v19, %v1851_v28  ;;  %v3949_v32 = vpop.f32.mrb[94].mxu1 }
 0x1a4   :  { %v1960_v33 = vmax.f32 %v1460_v25, 0.0  ;;  %v1463_v34 = vadd.f32 %v5013_v19, %v3849_v30  ;;  %v1454_v35 = vpop.f32.mrb[95].mxu0  ;;  %v2060_v36 = vmax.f32 %v1860_v27, 0.0  ;;  %v1863_v37 = vadd.f32 %v5013_v19, %v3949_v32  ;;  %v1854_v38 = vpop.f32.mrb[95].mxu1 }
 0x1a5   :  { %v1958_v39 = vmax.f32 %v1452_v29, 0.0  ;;  %v1455_v40 = vadd.f32 %v5013_v19, %v1454_v35  ;;  %v2058_v41 = vmax.f32 %v1852_v31, 0.0  ;;  %v1855_v42 = vadd.f32 %v5013_v19, %v1854_v38 }
 0x1a6   :  { %v3539_v44 = vpack.c.bf16 %v1960_v33, %v1960_v33  ;;  %v1961_v45 = vmax.f32 %v1463_v34, 0.0  ;;  %v3639_v46 = vpack.c.bf16 %v2060_v36, %v2060_v36  ;;  %v2061_v47 = vmax.f32 %v1863_v37, 0.0 }
 0x1a7   :  { %v3537_v48 = vpack.c.bf16 %v1958_v39, %v1958_v39  ;;  %v1959_v49 = vmax.f32 %v1455_v40, 0.0  ;;  %v3637_v50 = vpack.c.bf16 %v2058_v41, %v2058_v41  ;;  %v2059_v51 = vmax.f32 %v1855_v42, 0.0 }
 0x1a8   :  { %2941 = vst.msk [vmem:[%s5486_s3 + $0x178] sm:$0xf] %vm2846_vm3, %v3539_v44  ;;  %v3540_v52 = vpack.c.bf16 %v1961_v45, %v1961_v45  ;;  %3041 = vst.msk [vmem:[%s5486_s3 + $0x308] sm:$0xf] %vm2846_vm3, %v3639_v46  ;;  %v3640_v53 = vpack.c.bf16 %v2061_v47, %v2061_v47 }
 0x1a9   :  { %2939 = vst.msk [vmem:[%s5486_s3 + $0x170] sm:$0xf] %vm2846_vm3, %v3537_v48  ;;  %v3538_v54 = vpack.c.bf16 %v1959_v49, %v1959_v49  ;;  %3039 = vst.msk [vmem:[%s5486_s3 + $0x300] sm:$0xf] %vm2846_vm3, %v3637_v50  ;;  %v3852_v55 = vpop.f32.mrb[96].mxu0  ;;  %v3638_v56 = vpack.c.bf16 %v2059_v51, %v2059_v51 }
 0x1aa   :  { %2942 = vst.msk [vmem:[%s5486_s3 + $0x17c] sm:$0xf] %vm2846_vm3, %v3540_v52  ;;  %3042 = vst.msk [vmem:[%s5486_s3 + $0x30c] sm:$0xf] %vm2846_vm3, %v3640_v53  ;;  %v1476_v57 = vadd.f32 %v5013_v19, %v3852_v55  ;;  %v1467_v58 = vpop.f32.mrb[97].mxu0 }
 0x1ab   :  { %2940 = vst.msk [vmem:[%s5486_s3 + $0x174] sm:$0xf] %vm2846_vm3, %v3538_v54  ;;  %3040 = vst.msk [vmem:[%s5486_s3 + $0x304] sm:$0xf] %vm2846_vm3, %v3638_v56  ;;  %v1468_v59 = vadd.f32 %v5013_v19, %v1467_v58  ;;  %v3853_v60 = vpop.f32.mrb[98].mxu0 }
 0x1ac   :  { %v1964_v61 = vmax.f32 %v1476_v57, 0.0  ;;  %v1479_v62 = vadd.f32 %v5013_v19, %v3853_v60  ;;  %v1470_v63 = vpop.f32.mrb[99].mxu0 }
 0x1ad   :  { %v1962_v0 = vmax.f32 %v1468_v59, 0.0  ;;  %v1471_v1 = vadd.f32 %v5013_v19, %v1470_v63 }
 0x1ae   :  { %v3543_v2 = vpack.c.bf16 %v1964_v61, %v1964_v61  ;;  %v1965_v3 = vmax.f32 %v1479_v62, 0.0 }
 0x1af   :  { %v3541_v4 = vpack.c.bf16 %v1962_v0, %v1962_v0  ;;  %v1963_v5 = vmax.f32 %v1471_v1, 0.0 }
 0x1b0   :  { %2945 = vst.msk [vmem:[%s5486_s3 + $0x188] sm:$0xf] %vm2846_vm3, %v3543_v2  ;;  %v3544_v6 = vpack.c.bf16 %v1965_v3, %v1965_v3 }
 0x1b1   :  { %2943 = vst.msk [vmem:[%s5486_s3 + $0x180] sm:$0xf] %vm2846_vm3, %v3541_v4  ;;  %v3542_v7 = vpack.c.bf16 %v1963_v5, %v1963_v5 }
 0x1b2   :  { %2946 = vst.msk [vmem:[%s5486_s3 + $0x18c] sm:$0xf] %vm2846_vm3, %v3544_v6 }
 0x1b3   :  { %2944 = vst.msk [vmem:[%s5486_s3 + $0x184] sm:$0xf] %vm2846_vm3, %v3542_v7 }

// kernel: lenet_forward.5
= control target key start
LH: loop header
LB: loop body
LE: loop exit
PB: predicated region body
PF: predicated region fallthrough
CT: control target
= control target key end

     0   :  { %vm605_vm0 = vcmask 1041408   ;;  %vm565_vm1 = vcmask 949248   ;;  %vm1007_vm2 = vcmask 404480   ;;  %s1891_s1 = inlined_call_operand.vmem [shape: bf16[500,50], index: 1, kind: input, shape index: {}]   ;;  %s1892_s0 = inlined_call_operand.vmem [shape: bf16[200,500], index: 0, kind: input, shape index: {}]   ;;  %s1893_s2 = inlined_call_operand.vmem [shape: f32[1,50], index: 2, kind: input, shape index: {}]   ;;  %s1894_s3 = inlined_call_operand.vmem [shape: bf16[200,50], index: 3, kind: output, shape index: {}]  }
   0x1   :  { %v1374_v0 = vld [vmem:[%s1891_s1 + $0x40] sm:$0xff]   ;;  %v1378_v4 = vld [vmem:[%s1891_s1 + $0x48] sm:$0xff]   ;;  %v1382_v8 = vld [vmem:[%s1891_s1 + $0x50] sm:$0xff]  }
   0x2   :  { %v1375_v1 = vld [vmem:[%s1891_s1 + $0xc0] sm:$0xff]   ;;  %1185 = vmatprep.subr.bf16.mxu0 %v1374_v0  ;;  %v1379_v5 = vld [vmem:[%s1891_s1 + $0xc8] sm:$0xff]   ;;  %v1383_v9 = vld [vmem:[%s1891_s1 + $0xd0] sm:$0xff]  }
   0x3   :  { %v1376_v2 = vld [vmem:[%s1891_s1] sm:$0xff]   ;;  %1279 = vmatprep.subr.bf16.mxu1 %v1375_v1  ;;  %v1380_v6 = vld [vmem:[%s1891_s1 + $0x8] sm:$0xff]   ;;  %v1384_v10 = vld [vmem:[%s1891_s1 + $0x10] sm:$0xff]  }
   0x4   :  { %v1377_v3 = vld [vmem:[%s1891_s1 + $0x80] sm:$0xff]   ;;  %1186 = vmatpush3.bf16.msra.mxu0 %v1376_v2  ;;  %v1381_v7 = vld [vmem:[%s1891_s1 + $0x88] sm:$0xff]   ;;  %v1385_v11 = vld [vmem:[%s1891_s1 + $0x90] sm:$0xff]  }
   0x5   :  { %1280 = vmatpush3.bf16.msra.mxu1 %v1377_v3  ;;  %1187 = vmatprep.subr.bf16.mxu0 %v1378_v4  ;;  %v1386_v12 = vld [vmem:[%s1891_s1 + $0x58] sm:$0xff]   ;;  %v1390_v16 = vld [vmem:[%s1891_s1 + $0x60] sm:$0xff]   ;;  %v1394_v20 = vld [vmem:[%s1891_s1 + $0x68] sm:$0xff]  }
   0x6   :  { %1281 = vmatprep.subr.bf16.mxu1 %v1379_v5  ;;  %v1387_v13 = vld [vmem:[%s1891_s1 + $0xd8] sm:$0xff]   ;;  %v1391_v17 = vld [vmem:[%s1891_s1 + $0xe0] sm:$0xff]   ;;  %v1395_v21 = vld [vmem:[%s1891_s1 + $0xe8] sm:$0xff]  }
   0x7   :  { %v1388_v14 = vld [vmem:[%s1891_s1 + $0x18] sm:$0xff]   ;;  %v1392_v18 = vld [vmem:[%s1891_s1 + $0x20] sm:$0xff]   ;;  %v1396_v22 = vld [vmem:[%s1891_s1 + $0x28] sm:$0xff]  }
   0x8   :  { %1188 = vmatpush3.bf16.msra.mxu0 %v1380_v6  ;;  %v1389_v15 = vld [vmem:[%s1891_s1 + $0x98] sm:$0xff]   ;;  %v1393_v19 = vld [vmem:[%s1891_s1 + $0xa0] sm:$0xff]   ;;  %v1397_v23 = vld [vmem:[%s1891_s1 + $0xa8] sm:$0xff]  }
   0x9   :  { %1282 = vmatpush3.bf16.msra.mxu1 %v1381_v7  ;;  %1189 = vmatprep.subr.bf16.mxu0 %v1382_v8  ;;  %v1398_v24 = vld [vmem:[%s1891_s1 + $0x70] sm:$0xff]   ;;  %v1402_v28 = vld [vmem:[%s1891_s1 + $0x78] sm:$0xff]  }
   0xa   :  { %1283 = vmatprep.subr.bf16.mxu1 %v1383_v9  ;;  %v1399_v25 = vld [vmem:[%s1891_s1 + $0xf0] sm:$0xff]   ;;  %v1403_v29 = vld [vmem:[%s1891_s1 + $0xf8] ss:$0 sps:$4 sm:$0x33]   ;;  %v1411_v35 = vld [vmem:[%s1892_s0 + $0xc] ss:$16 sps:$4 sm:$0xff]  }
   0xb   :  { %v1400_v26 = vld [vmem:[%s1891_s1 + $0x30] sm:$0xff]   ;;  %v1404_v30 = vld [vmem:[%s1891_s1 + $0x38] sm:$0xff]   ;;  %1122 = vmatprep.mubr.msk.bf16.mxu1 %vm565_vm1, %v1411_v35 }
   0xc   :  { %1190 = vmatpush3.bf16.msra.mxu0 %v1384_v10  ;;  %v1401_v27 = vld [vmem:[%s1891_s1 + $0xb0] sm:$0xff]   ;;  %v1405_v31 = vld [vmem:[%s1891_s1 + $0xb8] sm:$0xff]  }
   0xd   :  { %1284 = vmatpush3.bf16.msra.mxu1 %v1385_v11  ;;  %1191 = vmatprep.subr.bf16.mxu0 %v1386_v12  ;;  %v1406_v32 = vld [vmem:[%s1892_s0] ss:$16 sps:$4 sm:$0xff]   ;;  %v1408_v33 = vld [vmem:[%s1892_s0 + $0x4] ss:$16 sps:$4 sm:$0xff]   ;;  %v1409_v34 = vld [vmem:[%s1892_s0 + $0x8] ss:$16 sps:$4 sm:$0xff]  }
   0xe   :  { %1285 = vmatprep.subr.bf16.mxu1 %v1387_v13  ;;  %641 = vmatprep.mubr.bf16.mxu0 %v1408_v33  ;;  %v1412_v36 = vld [vmem:[%s1892_s0 + $0x24] ss:$16 sps:$4 sm:$0xff]   ;;  %v1414_v37 = vld [vmem:[%s1892_s0 + $0x2c] ss:$16 sps:$4 sm:$0xff]   ;;  %v1416_v38 = vld [vmem:[%s1892_s0 + $0x20] ss:$16 sps:$4 sm:$0xff]  }
   0xf   :  { %v1418_v39 = vld [vmem:[%s1892_s0 + $0x44] ss:$16 sps:$4 sm:$0xff]   ;;  %v1417_v40 = vld [vmem:[%s1892_s0 + $0x28] ss:$16 sps:$4 sm:$0xff]   ;;  %v1420_v41 = vld [vmem:[%s1892_s0 + $0x4c] ss:$16 sps:$4 sm:$0xff]  }
  0x10   :  { %1192 = vmatpush3.bf16.msra.mxu0 %v1388_v14  ;;  %v1422_v42 = vld [vmem:[%s1892_s0 + $0x40] ss:$16 sps:$4 sm:$0xff]   ;;  %v1424_v43 = vld [vmem:[%s1892_s0 + $0x64] ss:$16 sps:$4 sm:$0xff]   ;;  %v1423_v44 = vld [vmem:[%s1892_s0 + $0x48] ss:$16 sps:$4 sm:$0xff]  }
  0x11   :  { %1286 = vmatpush3.bf16.msra.mxu1 %v1389_v15  ;;  %1193 = vmatprep.subr.bf16.mxu0 %v1390_v16  ;;  %v1426_v45 = vld [vmem:[%s1892_s0 + $0x6c] ss:$16 sps:$4 sm:$0xff]   ;;  %v1428_v46 = vld [vmem:[%s1892_s0 + $0x60] ss:$16 sps:$4 sm:$0xff]   ;;  %v1430_v47 = vld [vmem:[%s1892_s0 + $0x84] ss:$16 sps:$4 sm:$0xff]  }
  0x12   :  { %1287 = vmatprep.subr.bf16.mxu1 %v1391_v17  ;;  %v1429_v48 = vld [vmem:[%s1892_s0 + $0x68] ss:$16 sps:$4 sm:$0xff]   ;;  %v1432_v49 = vld [vmem:[%s1892_s0 + $0x8c] ss:$16 sps:$4 sm:$0xff]   ;;  %v1434_v50 = vld [vmem:[%s1892_s0 + $0x80] ss:$16 sps:$4 sm:$0xff]  }
  0x13   :  { %v1436_v51 = vld [vmem:[%s1892_s0 + $0xa4] ss:$16 sps:$4 sm:$0xff]   ;;  %v1435_v52 = vld [vmem:[%s1892_s0 + $0x88] ss:$16 sps:$4 sm:$0xff]   ;;  %v1438_v53 = vld [vmem:[%s1892_s0 + $0xac] ss:$16 sps:$4 sm:$0xff]  }
  0x14   :  { %1194 = vmatpush3.bf16.msra.mxu0 %v1392_v18  ;;  %v1440_v54 = vld [vmem:[%s1892_s0 + $0xa0] ss:$16 sps:$4 sm:$0xff]   ;;  %v1442_v55 = vld [vmem:[%s1892_s0 + $0xc4] ss:$16 sps:$4 sm:$0xff]   ;;  %v1441_v56 = vld [vmem:[%s1892_s0 + $0xa8] ss:$16 sps:$4 sm:$0xff]  }
  0x15   :  { %1288 = vmatpush3.bf16.msra.mxu1 %v1393_v19  ;;  %1195 = vmatprep.subr.bf16.mxu0 %v1394_v20  ;;  %v1444_v57 = vld [vmem:[%s1892_s0 + $0xcc] ss:$16 sps:$4 sm:$0xff]   ;;  %v1446_v58 = vld [vmem:[%s1892_s0 + $0xc0] ss:$16 sps:$4 sm:$0xff]   ;;  %v1448_v59 = vld [vmem:[%s1892_s0 + $0xe4] ss:$16 sps:$4 sm:$0xff]  }
  0x16   :  { %1289 = vmatprep.subr.bf16.mxu1 %v1395_v21  ;;  %v1447_v60 = vld [vmem:[%s1892_s0 + $0xc8] ss:$16 sps:$4 sm:$0xff]   ;;  %v1450_v61 = vld [vmem:[%s1892_s0 + $0xec] ss:$16 sps:$4 sm:$0xff]   ;;  %v1452_v62 = vld [vmem:[%s1892_s0 + $0xe0] ss:$16 sps:$4 sm:$0xff]  }
  0x17   :  { %v1454_v63 = vld [vmem:[%s1892_s0 + $0x104] ss:$16 sps:$4 sm:$0xff]   ;;  %v1453_v0 = vld [vmem:[%s1892_s0 + $0xe8] ss:$16 sps:$4 sm:$0xff]   ;;  %v1456_v1 = vld [vmem:[%s1892_s0 + $0x10c] ss:$16 sps:$4 sm:$0xff]  }
  0x18   :  { %1196 = vmatpush3.bf16.msra.mxu0 %v1396_v22  ;;  %v1458_v2 = vld [vmem:[%s1892_s0 + $0x100] ss:$16 sps:$4 sm:$0xff]   ;;  %v1460_v3 = vld [vmem:[%s1892_s0 + $0x124] ss:$16 sps:$4 sm:$0xff]   ;;  %v1459_v4 = vld [vmem:[%s1892_s0 + $0x108] ss:$16 sps:$4 sm:$0xff]  }
  0x19   :  { %1290 = vmatpush3.bf16.msra.mxu1 %v1397_v23  ;;  %1197 = vmatprep.subr.bf16.mxu0 %v1398_v24  ;;  %v1462_v5 = vld [vmem:[%s1892_s0 + $0x12c] ss:$16 sps:$4 sm:$0xff]   ;;  %v1464_v6 = vld [vmem:[%s1892_s0 + $0x120] ss:$16 sps:$4 sm:$0xff]   ;;  %v1466_v7 = vld [vmem:[%s1892_s0 + $0x144] ss:$16 sps:$4 sm:$0xff]  }
  0x1a   :  { %1291 = vmatprep.subr.bf16.mxu1 %v1399_v25  ;;  %v1465_v8 = vld [vmem:[%s1892_s0 + $0x128] ss:$16 sps:$4 sm:$0xff]   ;;  %v1468_v9 = vld [vmem:[%s1892_s0 + $0x14c] ss:$16 sps:$4 sm:$0xff]   ;;  %v1470_v10 = vld [vmem:[%s1892_s0 + $0x140] ss:$16 sps:$4 sm:$0xff]  }
  0x1b   :  { %v1472_v11 = vld [vmem:[%s1892_s0 + $0x164] ss:$16 sps:$4 sm:$0xff]   ;;  %v1471_v12 = vld [vmem:[%s1892_s0 + $0x148] ss:$16 sps:$4 sm:$0xff]   ;;  %v1474_v13 = vld [vmem:[%s1892_s0 + $0x16c] ss:$16 sps:$4 sm:$0xff]  }
  0x1c   :  { %1198 = vmatpush3.bf16.msra.mxu0 %v1400_v26  ;;  %v63_v14 = vld [vmem:[%s1892_s0 + $0x180] sm:$0xff]  ;;  %v64_v16 = vld [vmem:[%s1892_s0 + $0x188] sm:$0xff] }
  0x1d   :  { %1292 = vmatpush3.bf16.msra.mxu1 %v1401_v27  ;;  %1199 = vmatprep.subr.bf16.mxu0 %v1402_v28  ;;  %v1476_v15 = vld [vmem:[%s1892_s0 + $0x160] ss:$16 sps:$4 sm:$0xff]   ;;  %v1087_v17 = vcombine.high %v63_v14, %v63_v14  ;;  %v1477_v18 = vld [vmem:[%s1892_s0 + $0x168] ss:$16 sps:$4 sm:$0xff]   ;;  %v1089_v19 = vcombine.high %v64_v16, %v64_v16  ;;  %v1086_v20 = vcombine.low %v63_v14, %v63_v14 }
  0x1e   :  { %1373 = vmatprep.subr.msk.bf16.mxu1 %vm605_vm0, %v1403_v29  ;;  %v1088_v21 = vcombine.low %v64_v16, %v64_v16  ;;  %v1764_v23 = vld [vmem:[%s1893_s2] ss:$0 sm:$0xff] }
  0x20   :  { %1200 = vmatpush3.bf16.msra.mxu0 %v1404_v30 }
  0x21   :  { %1294 = vmatpush3.bf16.msra.mxu1 %v1405_v31 }
  0x23   :  { %642 = vmatmul.mubr.bf16.vlgmr.msra.gmra.mrb[0].mxu0 %v1406_v32 }
  0x24   :  { %778 = vmatmul.mubr.bf16.vlgmr.msra.gmra.mrb[0].mxu1 %v1409_v34  ;;  %649 = vmatprep.mubr.bf16.mxu0 %v1412_v36 }
  0x25   :  { %1123 = vmatprep.mubr.msk.bf16.mxu1 %vm565_vm1, %v1414_v37 }
  0x2b   :  { %650 = vmatmul.mubr.bf16.gmra.mrb[4].mxu0 %v1416_v38 }
  0x2c   :  { %657 = vmatprep.mubr.bf16.mxu0 %v1418_v39  ;;  %786 = vmatmul.mubr.bf16.gmra.mrb[4].mxu1 %v1417_v40 }
  0x2d   :  { %1124 = vmatprep.mubr.msk.bf16.mxu1 %vm565_vm1, %v1420_v41 }
  0x33   :  { %658 = vmatmul.mubr.bf16.gmra.mrb[8].mxu0 %v1422_v42 }
  0x34   :  { %665 = vmatprep.mubr.bf16.mxu0 %v1424_v43  ;;  %794 = vmatmul.mubr.bf16.gmra.mrb[8].mxu1 %v1423_v44 }
  0x35   :  { %1125 = vmatprep.mubr.msk.bf16.mxu1 %vm565_vm1, %v1426_v45 }
  0x3b   :  { %666 = vmatmul.mubr.bf16.gmra.mrb[12].mxu0 %v1428_v46 }
  0x3c   :  { %673 = vmatprep.mubr.bf16.mxu0 %v1430_v47  ;;  %802 = vmatmul.mubr.bf16.gmra.mrb[12].mxu1 %v1429_v48 }
  0x3d   :  { %1126 = vmatprep.mubr.msk.bf16.mxu1 %vm565_vm1, %v1432_v49 }
  0x43   :  { %674 = vmatmul.mubr.bf16.gmra.mrb[16].mxu0 %v1434_v50 }
  0x44   :  { %681 = vmatprep.mubr.bf16.mxu0 %v1436_v51  ;;  %810 = vmatmul.mubr.bf16.gmra.mrb[16].mxu1 %v1435_v52 }
  0x45   :  { %1127 = vmatprep.mubr.msk.bf16.mxu1 %vm565_vm1, %v1438_v53 }
  0x4b   :  { %682 = vmatmul.mubr.bf16.gmra.mrb[20].mxu0 %v1440_v54 }
  0x4c   :  { %689 = vmatprep.mubr.bf16.mxu0 %v1442_v55  ;;  %818 = vmatmul.mubr.bf16.gmra.mrb[20].mxu1 %v1441_v56 }
  0x4d   :  { %1128 = vmatprep.mubr.msk.bf16.mxu1 %vm565_vm1, %v1444_v57 }
  0x53   :  { %690 = vmatmul.mubr.bf16.gmra.mrb[24].mxu0 %v1446_v58 }
  0x54   :  { %697 = vmatprep.mubr.bf16.mxu0 %v1448_v59  ;;  %826 = vmatmul.mubr.bf16.gmra.mrb[24].mxu1 %v1447_v60 }
  0x55   :  { %1129 = vmatprep.mubr.msk.bf16.mxu1 %vm565_vm1, %v1450_v61 }
  0x5b   :  { %698 = vmatmul.mubr.bf16.gmra.mrb[28].mxu0 %v1452_v62 }
  0x5c   :  { %705 = vmatprep.mubr.bf16.mxu0 %v1454_v63  ;;  %834 = vmatmul.mubr.bf16.gmra.mrb[28].mxu1 %v1453_v0 }
  0x5d   :  { %1130 = vmatprep.mubr.msk.bf16.mxu1 %vm565_vm1, %v1456_v1 }
  0x63   :  { %706 = vmatmul.mubr.bf16.gmra.mrb[32].mxu0 %v1458_v2 }
  0x64   :  { %713 = vmatprep.mubr.bf16.mxu0 %v1460_v3  ;;  %842 = vmatmul.mubr.bf16.gmra.mrb[32].mxu1 %v1459_v4 }
  0x65   :  { %1131 = vmatprep.mubr.msk.bf16.mxu1 %vm565_vm1, %v1462_v5 }
  0x6b   :  { %714 = vmatmul.mubr.bf16.gmra.mrb[36].mxu0 %v1464_v6 }
  0x6c   :  { %721 = vmatprep.mubr.bf16.mxu0 %v1466_v7  ;;  %850 = vmatmul.mubr.bf16.gmra.mrb[36].mxu1 %v1465_v8 }
  0x6d   :  { %1132 = vmatprep.mubr.msk.bf16.mxu1 %vm565_vm1, %v1468_v9 }
  0x73   :  { %722 = vmatmul.mubr.bf16.gmra.mrb[40].mxu0 %v1470_v10 }
  0x74   :  { %729 = vmatprep.mubr.bf16.mxu0 %v1472_v11  ;;  %858 = vmatmul.mubr.bf16.gmra.mrb[40].mxu1 %v1471_v12 }
  0x75   :  { %1133 = vmatprep.mubr.msk.bf16.mxu1 %vm565_vm1, %v1474_v13 }
  0x7b   :  { %730 = vmatmul.mubr.bf16.gmra.mrb[44].mxu0 %v1476_v15 }
  0x7c   :  { %737 = vmatprep.mubr.bf16.mxu0 %v1087_v17  ;;  %866 = vmatmul.mubr.bf16.gmra.mrb[44].mxu1 %v1477_v18 }
  0x7d   :  { %1134 = vmatprep.mubr.msk.bf16.mxu1 %vm565_vm1, %v1089_v19 }
  0x83   :  { %738 = vmatmul.mubr.bf16.gmra.mrb[48].mxu0 %v1086_v20 }
  0x84   :  { %874 = vmatmul.mubr.bf16.gmra.mrb[48].mxu1 %v1088_v21 }
  0xf6   :  { %v1201_v22 = vpop.f32.mrb[0].mxu0 }
  0xf7   :  { %v1202_v24 = vpop.f32.mrb[1].mxu0  ;;  %v1295_v25 = vpop.f32.mrb[0].mxu1 }
  0xf8   :  { %v1203_v26 = vadd.f32 %v1202_v24, %v1201_v22  ;;  %v1204_v27 = vpop.f32.mrb[2].mxu0  ;;  %v1296_v28 = vpop.f32.mrb[1].mxu1 }
  0xf9   :  { %v1205_v29 = vpop.f32.mrb[3].mxu0  ;;  %v1297_v31 = vadd.f32 %v1296_v28, %v1295_v25  ;;  %v1298_v32 = vpop.f32.mrb[2].mxu1 }
  0xfa   :  { %v644_v30 = vadd.f32 %v1203_v26, %v1764_v23  ;;  %v1206_v33 = vadd.f32 %v1205_v29, %v1204_v27  ;;  %v1299_v34 = vpop.f32.mrb[3].mxu1 }
  0xfb   :  { %v1300_v37 = vadd.f32 %v1299_v34, %v1298_v32 }
  0xfc   :  { %v780_v35 = vadd.f32 %v1297_v31, %v644_v30  ;;  %v647_v36 = vadd.f32 %v1206_v33, %v1764_v23 }
  0xfe   :  { %v881_v38 = vmax.f32 %v780_v35, 0.0  ;;  %v783_v39 = vadd.f32 %v1300_v37, %v647_v36  ;;  %v1207_v40 = vpop.f32.mrb[4].mxu0 }
  0xff   :  { %v1208_v41 = vpop.f32.mrb[5].mxu0  ;;  %v1301_v44 = vpop.f32.mrb[4].mxu1 }
 0x100   :  { %v1160_v42 = vpack.c.bf16 %v881_v38, %v881_v38  ;;  %v882_v43 = vmax.f32 %v783_v39, 0.0  ;;  %v1209_v45 = vadd.f32 %v1208_v41, %v1207_v40  ;;  %v1210_v46 = vpop.f32.mrb[6].mxu0  ;;  %v1302_v47 = vpop.f32.mrb[5].mxu1 }
 0x101   :  { %v1211_v48 = vpop.f32.mrb[7].mxu0  ;;  %v1303_v51 = vadd.f32 %v1302_v47, %v1301_v44  ;;  %v1304_v52 = vpop.f32.mrb[6].mxu1 }
 0x102   :  { %1008 = vst.msk [vmem:[%s1894_s3] sm:$0xf] %vm1007_vm2, %v1160_v42  ;;  %v1161_v49 = vpack.c.bf16 %v882_v43, %v882_v43  ;;  %v652_v50 = vadd.f32 %v1209_v45, %v1764_v23  ;;  %v1212_v53 = vadd.f32 %v1211_v48, %v1210_v46  ;;  %v1305_v54 = vpop.f32.mrb[7].mxu1 }
 0x103   :  { %v1306_v57 = vadd.f32 %v1305_v54, %v1304_v52 }
 0x104   :  { %1009 = vst.msk [vmem:[%s1894_s3 + $0x4] sm:$0xf] %vm1007_vm2, %v1161_v49  ;;  %v788_v55 = vadd.f32 %v1303_v51, %v652_v50  ;;  %v655_v56 = vadd.f32 %v1212_v53, %v1764_v23 }
 0x106   :  { %v883_v58 = vmax.f32 %v788_v55, 0.0  ;;  %v791_v59 = vadd.f32 %v1306_v57, %v655_v56  ;;  %v1213_v60 = vpop.f32.mrb[8].mxu0 }
 0x107   :  { %v1214_v61 = vpop.f32.mrb[9].mxu0  ;;  %v1307_v0 = vpop.f32.mrb[8].mxu1 }
 0x108   :  { %v1162_v62 = vpack.c.bf16 %v883_v58, %v883_v58  ;;  %v884_v63 = vmax.f32 %v791_v59, 0.0  ;;  %v1215_v1 = vadd.f32 %v1214_v61, %v1213_v60  ;;  %v1216_v2 = vpop.f32.mrb[10].mxu0  ;;  %v1308_v3 = vpop.f32.mrb[9].mxu1 }
 0x109   :  { %v1217_v4 = vpop.f32.mrb[11].mxu0  ;;  %v1309_v7 = vadd.f32 %v1308_v3, %v1307_v0  ;;  %v1310_v8 = vpop.f32.mrb[10].mxu1 }
 0x10a   :  { %1010 = vst.msk [vmem:[%s1894_s3 + $0x8] sm:$0xf] %vm1007_vm2, %v1162_v62  ;;  %v1163_v5 = vpack.c.bf16 %v884_v63, %v884_v63  ;;  %v660_v6 = vadd.f32 %v1215_v1, %v1764_v23  ;;  %v1218_v9 = vadd.f32 %v1217_v4, %v1216_v2  ;;  %v1311_v10 = vpop.f32.mrb[11].mxu1 }
 0x10b   :  { %v1312_v13 = vadd.f32 %v1311_v10, %v1310_v8 }
 0x10c   :  { %1011 = vst.msk [vmem:[%s1894_s3 + $0xc] sm:$0xf] %vm1007_vm2, %v1163_v5  ;;  %v796_v11 = vadd.f32 %v1309_v7, %v660_v6  ;;  %v663_v12 = vadd.f32 %v1218_v9, %v1764_v23 }
 0x10e   :  { %v885_v14 = vmax.f32 %v796_v11, 0.0  ;;  %v799_v15 = vadd.f32 %v1312_v13, %v663_v12  ;;  %v1219_v16 = vpop.f32.mrb[12].mxu0 }
 0x10f   :  { %v1220_v17 = vpop.f32.mrb[13].mxu0  ;;  %v1313_v20 = vpop.f32.mrb[12].mxu1 }
 0x110   :  { %v1164_v18 = vpack.c.bf16 %v885_v14, %v885_v14  ;;  %v886_v19 = vmax.f32 %v799_v15, 0.0  ;;  %v1221_v21 = vadd.f32 %v1220_v17, %v1219_v16  ;;  %v1222_v22 = vpop.f32.mrb[14].mxu0  ;;  %v1314_v24 = vpop.f32.mrb[13].mxu1 }
 0x111   :  { %v1223_v25 = vpop.f32.mrb[15].mxu0  ;;  %v1315_v28 = vadd.f32 %v1314_v24, %v1313_v20  ;;  %v1316_v29 = vpop.f32.mrb[14].mxu1 }
 0x112   :  { %1012 = vst.msk [vmem:[%s1894_s3 + $0x10] sm:$0xf] %vm1007_vm2, %v1164_v18  ;;  %v1165_v26 = vpack.c.bf16 %v886_v19, %v886_v19  ;;  %v668_v27 = vadd.f32 %v1221_v21, %v1764_v23  ;;  %v1224_v30 = vadd.f32 %v1223_v25, %v1222_v22  ;;  %v1317_v31 = vpop.f32.mrb[15].mxu1 }
 0x113   :  { %v1318_v34 = vadd.f32 %v1317_v31, %v1316_v29 }
 0x114   :  { %1013 = vst.msk [vmem:[%s1894_s3 + $0x14] sm:$0xf] %vm1007_vm2, %v1165_v26  ;;  %v804_v32 = vadd.f32 %v1315_v28, %v668_v27  ;;  %v671_v33 = vadd.f32 %v1224_v30, %v1764_v23 }
 0x116   :  { %v887_v35 = vmax.f32 %v804_v32, 0.0  ;;  %v807_v36 = vadd.f32 %v1318_v34, %v671_v33  ;;  %v1225_v37 = vpop.f32.mrb[16].mxu0 }
 0x117   :  { %v1226_v38 = vpop.f32.mrb[17].mxu0  ;;  %v1319_v41 = vpop.f32.mrb[16].mxu1 }
 0x118   :  { %v1166_v39 = vpack.c.bf16 %v887_v35, %v887_v35  ;;  %v888_v40 = vmax.f32 %v807_v36, 0.0  ;;  %v1227_v42 = vadd.f32 %v1226_v38, %v1225_v37  ;;  %v1228_v43 = vpop.f32.mrb[18].mxu0  ;;  %v1320_v44 = vpop.f32.mrb[17].mxu1 }
 0x119   :  { %v1229_v45 = vpop.f32.mrb[19].mxu0  ;;  %v1321_v48 = vadd.f32 %v1320_v44, %v1319_v41  ;;  %v1322_v49 = vpop.f32.mrb[18].mxu1 }
 0x11a   :  { %1014 = vst.msk [vmem:[%s1894_s3 + $0x18] sm:$0xf] %vm1007_vm2, %v1166_v39  ;;  %v1167_v46 = vpack.c.bf16 %v888_v40, %v888_v40  ;;  %v676_v47 = vadd.f32 %v1227_v42, %v1764_v23  ;;  %v1230_v50 = vadd.f32 %v1229_v45, %v1228_v43  ;;  %v1323_v51 = vpop.f32.mrb[19].mxu1 }
 0x11b   :  { %v1324_v54 = vadd.f32 %v1323_v51, %v1322_v49 }
 0x11c   :  { %1015 = vst.msk [vmem:[%s1894_s3 + $0x1c] sm:$0xf] %vm1007_vm2, %v1167_v46  ;;  %v812_v52 = vadd.f32 %v1321_v48, %v676_v47  ;;  %v679_v53 = vadd.f32 %v1230_v50, %v1764_v23 }
 0x11e   :  { %v889_v55 = vmax.f32 %v812_v52, 0.0  ;;  %v815_v56 = vadd.f32 %v1324_v54, %v679_v53  ;;  %v1231_v57 = vpop.f32.mrb[20].mxu0 }
 0x11f   :  { %v1232_v58 = vpop.f32.mrb[21].mxu0  ;;  %v1325_v61 = vpop.f32.mrb[20].mxu1 }
 0x120   :  { %v1168_v59 = vpack.c.bf16 %v889_v55, %v889_v55  ;;  %v890_v60 = vmax.f32 %v815_v56, 0.0  ;;  %v1233_v62 = vadd.f32 %v1232_v58, %v1231_v57  ;;  %v1234_v63 = vpop.f32.mrb[22].mxu0  ;;  %v1326_v0 = vpop.f32.mrb[21].mxu1 }
 0x121   :  { %v1235_v1 = vpop.f32.mrb[23].mxu0  ;;  %v1327_v4 = vadd.f32 %v1326_v0, %v1325_v61  ;;  %v1328_v5 = vpop.f32.mrb[22].mxu1 }
 0x122   :  { %1016 = vst.msk [vmem:[%s1894_s3 + $0x20] sm:$0xf] %vm1007_vm2, %v1168_v59  ;;  %v1169_v2 = vpack.c.bf16 %v890_v60, %v890_v60  ;;  %v684_v3 = vadd.f32 %v1233_v62, %v1764_v23  ;;  %v1236_v6 = vadd.f32 %v1235_v1, %v1234_v63  ;;  %v1329_v7 = vpop.f32.mrb[23].mxu1 }
 0x123   :  { %v1330_v10 = vadd.f32 %v1329_v7, %v1328_v5 }
 0x124   :  { %1017 = vst.msk [vmem:[%s1894_s3 + $0x24] sm:$0xf] %vm1007_vm2, %v1169_v2  ;;  %v820_v8 = vadd.f32 %v1327_v4, %v684_v3  ;;  %v687_v9 = vadd.f32 %v1236_v6, %v1764_v23 }
 0x126   :  { %v891_v11 = vmax.f32 %v820_v8, 0.0  ;;  %v823_v12 = vadd.f32 %v1330_v10, %v687_v9  ;;  %v1237_v13 = vpop.f32.mrb[24].mxu0 }
 0x127   :  { %v1238_v14 = vpop.f32.mrb[25].mxu0  ;;  %v1331_v17 = vpop.f32.mrb[24].mxu1 }
 0x128   :  { %v1170_v15 = vpack.c.bf16 %v891_v11, %v891_v11  ;;  %v892_v16 = vmax.f32 %v823_v12, 0.0  ;;  %v1239_v18 = vadd.f32 %v1238_v14, %v1237_v13  ;;  %v1240_v19 = vpop.f32.mrb[26].mxu0  ;;  %v1332_v20 = vpop.f32.mrb[25].mxu1 }
 0x129   :  { %v1241_v21 = vpop.f32.mrb[27].mxu0  ;;  %v1333_v25 = vadd.f32 %v1332_v20, %v1331_v17  ;;  %v1334_v26 = vpop.f32.mrb[26].mxu1 }
 0x12a   :  { %1018 = vst.msk [vmem:[%s1894_s3 + $0x28] sm:$0xf] %vm1007_vm2, %v1170_v15  ;;  %v1171_v22 = vpack.c.bf16 %v892_v16, %v892_v16  ;;  %v692_v24 = vadd.f32 %v1239_v18, %v1764_v23  ;;  %v1242_v27 = vadd.f32 %v1241_v21, %v1240_v19  ;;  %v1335_v28 = vpop.f32.mrb[27].mxu1 }
 0x12b   :  { %v1336_v31 = vadd.f32 %v1335_v28, %v1334_v26 }
 0x12c   :  { %1019 = vst.msk [vmem:[%s1894_s3 + $0x2c] sm:$0xf] %vm1007_vm2, %v1171_v22  ;;  %v828_v29 = vadd.f32 %v1333_v25, %v692_v24  ;;  %v695_v30 = vadd.f32 %v1242_v27, %v1764_v23 }
 0x12e   :  { %v893_v32 = vmax.f32 %v828_v29, 0.0  ;;  %v831_v33 = vadd.f32 %v1336_v31, %v695_v30  ;;  %v1243_v34 = vpop.f32.mrb[28].mxu0 }
 0x12f   :  { %v1244_v35 = vpop.f32.mrb[29].mxu0  ;;  %v1337_v38 = vpop.f32.mrb[28].mxu1 }
 0x130   :  { %v1172_v36 = vpack.c.bf16 %v893_v32, %v893_v32  ;;  %v894_v37 = vmax.f32 %v831_v33, 0.0  ;;  %v1245_v39 = vadd.f32 %v1244_v35, %v1243_v34  ;;  %v1246_v40 = vpop.f32.mrb[30].mxu0  ;;  %v1338_v41 = vpop.f32.mrb[29].mxu1 }
 0x131   :  { %v1247_v42 = vpop.f32.mrb[31].mxu0  ;;  %v1339_v45 = vadd.f32 %v1338_v41, %v1337_v38  ;;  %v1340_v46 = vpop.f32.mrb[30].mxu1 }
 0x132   :  { %1020 = vst.msk [vmem:[%s1894_s3 + $0x30] sm:$0xf] %vm1007_vm2, %v1172_v36  ;;  %v1173_v43 = vpack.c.bf16 %v894_v37, %v894_v37  ;;  %v700_v44 = vadd.f32 %v1245_v39, %v1764_v23  ;;  %v1248_v47 = vadd.f32 %v1247_v42, %v1246_v40  ;;  %v1341_v48 = vpop.f32.mrb[31].mxu1 }
 0x133   :  { %v1342_v51 = vadd.f32 %v1341_v48, %v1340_v46 }
 0x134   :  { %1021 = vst.msk [vmem:[%s1894_s3 + $0x34] sm:$0xf] %vm1007_vm2, %v1173_v43  ;;  %v836_v49 = vadd.f32 %v1339_v45, %v700_v44  ;;  %v703_v50 = vadd.f32 %v1248_v47, %v1764_v23 }
 0x136   :  { %v895_v52 = vmax.f32 %v836_v49, 0.0  ;;  %v839_v53 = vadd.f32 %v1342_v51, %v703_v50  ;;  %v1249_v54 = vpop.f32.mrb[32].mxu0 }
 0x137   :  { %v1250_v55 = vpop.f32.mrb[33].mxu0  ;;  %v1343_v58 = vpop.f32.mrb[32].mxu1 }
 0x138   :  { %v1174_v56 = vpack.c.bf16 %v895_v52, %v895_v52  ;;  %v896_v57 = vmax.f32 %v839_v53, 0.0  ;;  %v1251_v59 = vadd.f32 %v1250_v55, %v1249_v54  ;;  %v1252_v60 = vpop.f32.mrb[34].mxu0  ;;  %v1344_v61 = vpop.f32.mrb[33].mxu1 }
 0x139   :  { %v1253_v62 = vpop.f32.mrb[35].mxu0  ;;  %v1345_v1 = vadd.f32 %v1344_v61, %v1343_v58  ;;  %v1346_v2 = vpop.f32.mrb[34].mxu1 }
 0x13a   :  { %1022 = vst.msk [vmem:[%s1894_s3 + $0x38] sm:$0xf] %vm1007_vm2, %v1174_v56  ;;  %v1175_v63 = vpack.c.bf16 %v896_v57, %v896_v57  ;;  %v708_v0 = vadd.f32 %v1251_v59, %v1764_v23  ;;  %v1254_v3 = vadd.f32 %v1253_v62, %v1252_v60  ;;  %v1347_v4 = vpop.f32.mrb[35].mxu1 }
 0x13b   :  { %v1348_v7 = vadd.f32 %v1347_v4, %v1346_v2 }
 0x13c   :  { %1023 = vst.msk [vmem:[%s1894_s3 + $0x3c] sm:$0xf] %vm1007_vm2, %v1175_v63  ;;  %v844_v5 = vadd.f32 %v1345_v1, %v708_v0  ;;  %v711_v6 = vadd.f32 %v1254_v3, %v1764_v23 }
 0x13e   :  { %v897_v8 = vmax.f32 %v844_v5, 0.0  ;;  %v847_v9 = vadd.f32 %v1348_v7, %v711_v6  ;;  %v1255_v10 = vpop.f32.mrb[36].mxu0 }
 0x13f   :  { %v1256_v11 = vpop.f32.mrb[37].mxu0  ;;  %v1349_v14 = vpop.f32.mrb[36].mxu1 }
 0x140   :  { %v1176_v12 = vpack.c.bf16 %v897_v8, %v897_v8  ;;  %v898_v13 = vmax.f32 %v847_v9, 0.0  ;;  %v1257_v15 = vadd.f32 %v1256_v11, %v1255_v10  ;;  %v1258_v16 = vpop.f32.mrb[38].mxu0  ;;  %v1350_v17 = vpop.f32.mrb[37].mxu1 }
 0x141   :  { %v1259_v18 = vpop.f32.mrb[39].mxu0  ;;  %v1351_v21 = vadd.f32 %v1350_v17, %v1349_v14  ;;  %v1352_v22 = vpop.f32.mrb[38].mxu1 }
 0x142   :  { %1024 = vst.msk [vmem:[%s1894_s3 + $0x40] sm:$0xf] %vm1007_vm2, %v1176_v12  ;;  %v1177_v19 = vpack.c.bf16 %v898_v13, %v898_v13  ;;  %v716_v20 = vadd.f32 %v1257_v15, %v1764_v23  ;;  %v1260_v24 = vadd.f32 %v1259_v18, %v1258_v16  ;;  %v1353_v25 = vpop.f32.mrb[39].mxu1 }
 0x143   :  { %v1354_v28 = vadd.f32 %v1353_v25, %v1352_v22 }
 0x144   :  { %1025 = vst.msk [vmem:[%s1894_s3 + $0x44] sm:$0xf] %vm1007_vm2, %v1177_v19  ;;  %v852_v26 = vadd.f32 %v1351_v21, %v716_v20  ;;  %v719_v27 = vadd.f32 %v1260_v24, %v1764_v23 }
 0x146   :  { %v899_v29 = vmax.f32 %v852_v26, 0.0  ;;  %v855_v30 = vadd.f32 %v1354_v28, %v719_v27  ;;  %v1261_v31 = vpop.f32.mrb[40].mxu0 }
 0x147   :  { %v1262_v32 = vpop.f32.mrb[41].mxu0  ;;  %v1355_v35 = vpop.f32.mrb[40].mxu1 }
 0x148   :  { %v1178_v33 = vpack.c.bf16 %v899_v29, %v899_v29  ;;  %v900_v34 = vmax.f32 %v855_v30, 0.0  ;;  %v1263_v36 = vadd.f32 %v1262_v32, %v1261_v31  ;;  %v1264_v37 = vpop.f32.mrb[42].mxu0  ;;  %v1356_v38 = vpop.f32.mrb[41].mxu1 }
 0x149   :  { %v1265_v39 = vpop.f32.mrb[43].mxu0  ;;  %v1357_v42 = vadd.f32 %v1356_v38, %v1355_v35  ;;  %v1358_v43 = vpop.f32.mrb[42].mxu1 }
 0x14a   :  { %1026 = vst.msk [vmem:[%s1894_s3 + $0x48] sm:$0xf] %vm1007_vm2, %v1178_v33  ;;  %v1179_v40 = vpack.c.bf16 %v900_v34, %v900_v34  ;;  %v724_v41 = vadd.f32 %v1263_v36, %v1764_v23  ;;  %v1266_v44 = vadd.f32 %v1265_v39, %v1264_v37  ;;  %v1359_v45 = vpop.f32.mrb[43].mxu1 }
 0x14b   :  { %v1360_v48 = vadd.f32 %v1359_v45, %v1358_v43 }
 0x14c   :  { %1027 = vst.msk [vmem:[%s1894_s3 + $0x4c] sm:$0xf] %vm1007_vm2, %v1179_v40  ;;  %v860_v46 = vadd.f32 %v1357_v42, %v724_v41  ;;  %v727_v47 = vadd.f32 %v1266_v44, %v1764_v23 }
 0x14e   :  { %v901_v49 = vmax.f32 %v860_v46, 0.0  ;;  %v863_v50 = vadd.f32 %v1360_v48, %v727_v47  ;;  %v1267_v51 = vpop.f32.mrb[44].mxu0 }
 0x14f   :  { %v1268_v52 = vpop.f32.mrb[45].mxu0  ;;  %v1361_v55 = vpop.f32.mrb[44].mxu1 }
 0x150   :  { %v1180_v53 = vpack.c.bf16 %v901_v49, %v901_v49  ;;  %v902_v54 = vmax.f32 %v863_v50, 0.0  ;;  %v1269_v56 = vadd.f32 %v1268_v52, %v1267_v51  ;;  %v1270_v57 = vpop.f32.mrb[46].mxu0  ;;  %v1362_v58 = vpop.f32.mrb[45].mxu1 }
 0x151   :  { %v1271_v59 = vpop.f32.mrb[47].mxu0  ;;  %v1363_v62 = vadd.f32 %v1362_v58, %v1361_v55  ;;  %v1364_v63 = vpop.f32.mrb[46].mxu1 }
 0x152   :  { %1028 = vst.msk [vmem:[%s1894_s3 + $0x50] sm:$0xf] %vm1007_vm2, %v1180_v53  ;;  %v1181_v60 = vpack.c.bf16 %v902_v54, %v902_v54  ;;  %v732_v61 = vadd.f32 %v1269_v56, %v1764_v23  ;;  %v1272_v0 = vadd.f32 %v1271_v59, %v1270_v57  ;;  %v1365_v1 = vpop.f32.mrb[47].mxu1 }
 0x153   :  { %v1366_v4 = vadd.f32 %v1365_v1, %v1364_v63 }
 0x154   :  { %1029 = vst.msk [vmem:[%s1894_s3 + $0x54] sm:$0xf] %vm1007_vm2, %v1181_v60  ;;  %v868_v2 = vadd.f32 %v1363_v62, %v732_v61  ;;  %v735_v3 = vadd.f32 %v1272_v0, %v1764_v23 }
 0x156   :  { %v903_v5 = vmax.f32 %v868_v2, 0.0  ;;  %v871_v6 = vadd.f32 %v1366_v4, %v735_v3  ;;  %v1273_v7 = vpop.f32.mrb[48].mxu0 }
 0x157   :  { %v1274_v8 = vpop.f32.mrb[49].mxu0  ;;  %v1367_v11 = vpop.f32.mrb[48].mxu1 }
 0x158   :  { %v1182_v9 = vpack.c.bf16 %v903_v5, %v903_v5  ;;  %v904_v10 = vmax.f32 %v871_v6, 0.0  ;;  %v1275_v12 = vadd.f32 %v1274_v8, %v1273_v7  ;;  %v1276_v13 = vpop.f32.mrb[50].mxu0  ;;  %v1368_v14 = vpop.f32.mrb[49].mxu1 }
 0x159   :  { %v1277_v15 = vpop.f32.mrb[51].mxu0  ;;  %v1369_v18 = vadd.f32 %v1368_v14, %v1367_v11  ;;  %v1370_v19 = vpop.f32.mrb[50].mxu1 }
 0x15a   :  { %1030 = vst.msk [vmem:[%s1894_s3 + $0x58] sm:$0xf] %vm1007_vm2, %v1182_v9  ;;  %v1183_v16 = vpack.c.bf16 %v904_v10, %v904_v10  ;;  %v740_v17 = vadd.f32 %v1275_v12, %v1764_v23  ;;  %v1371_v20 = vpop.f32.mrb[51].mxu1 }
 0x15c   :  { %1031 = vst.msk [vmem:[%s1894_s3 + $0x5c] sm:$0xf] %vm1007_vm2, %v1183_v16  ;;  %v876_v21 = vadd.f32 %v1369_v18, %v740_v17 }
 0x15e   :  { %v905_v22 = vmax.f32 %v876_v21, 0.0 }
 0x160   :  { %v1184_v24 = vpack.c.bf16 %v905_v22, %v905_v22 }
 0x162   :  { %1032 = vst.msk [vmem:[%s1894_s3 + $0x60] sm:$0xf] %vm1007_vm2, %v1184_v24 }

// kernel: lenet_forward.7
= control target key start
LH: loop header
LB: loop body
LE: loop exit
PB: predicated region body
PF: predicated region fallthrough
CT: control target
= control target key end

     0   :  { %v100_v30 = vlaneseq  ;;  %v541_v34 = vmov 1966171168   ;;  %s677_s0 = inlined_call_operand.vmem [shape: bf16[2,512], index: 0, kind: input, shape index: {}]   ;;  %s678_s1 = inlined_call_operand.vmem [shape: bf16[512,10], index: 1, kind: input, shape index: {}]   ;;  %s679_s2 = inlined_call_operand.vmem [shape: f32[1,10], index: 2, kind: input, shape index: {}]   ;;  %s680_s3 = inlined_call_operand.hbm [shape: f32[2,10], index: 3, kind: output, shape index: {}]  }
   0x1   :  { %v485_v0 = vld [vmem:[%s678_s1 + $0x40] sm:$0xff]   ;;  %v489_v4 = vld [vmem:[%s678_s1 + $0x48] sm:$0xff]   ;;  %v493_v8 = vld [vmem:[%s678_s1 + $0x50] sm:$0xff]   ;;  %v98_v35 = vunpack.c.l.s4 %v541_v34 }
   0x2   :  { %v486_v1 = vld [vmem:[%s678_s1 + $0xc0] sm:$0xff]   ;;  %439 = vmatprep.subr.bf16.mxu0 %v485_v0  ;;  %v490_v5 = vld [vmem:[%s678_s1 + $0xc8] sm:$0xff]   ;;  %v494_v9 = vld [vmem:[%s678_s1 + $0xd0] sm:$0xff]   ;;  %v101_v36 = vshrl.u32 %v100_v30, 7 }
   0x3   :  { %v487_v2 = vld [vmem:[%s678_s1] sm:$0xff]   ;;  %461 = vmatprep.subr.bf16.mxu1 %v486_v1  ;;  %v491_v6 = vld [vmem:[%s678_s1 + $0x8] sm:$0xff]   ;;  %v495_v10 = vld [vmem:[%s678_s1 + $0x10] sm:$0xff]  }
   0x4   :  { %v488_v3 = vld [vmem:[%s678_s1 + $0x80] sm:$0xff]   ;;  %440 = vmatpush3.bf16.msra.mxu0 %v487_v2  ;;  %v492_v7 = vld [vmem:[%s678_s1 + $0x88] sm:$0xff]   ;;  %v496_v11 = vld [vmem:[%s678_s1 + $0x90] sm:$0xff]  }
   0x5   :  { %462 = vmatpush3.bf16.msra.mxu1 %v488_v3  ;;  %441 = vmatprep.subr.bf16.mxu0 %v489_v4  ;;  %v497_v12 = vld [vmem:[%s678_s1 + $0x58] sm:$0xff]   ;;  %v501_v16 = vld [vmem:[%s678_s1 + $0x60] sm:$0xff]   ;;  %v505_v20 = vld [vmem:[%s678_s1 + $0x68] sm:$0xff]  }
   0x6   :  { %463 = vmatprep.subr.bf16.mxu1 %v490_v5  ;;  %v498_v13 = vld [vmem:[%s678_s1 + $0xd8] sm:$0xff]   ;;  %v502_v17 = vld [vmem:[%s678_s1 + $0xe0] sm:$0xff]   ;;  %v506_v21 = vld [vmem:[%s678_s1 + $0xe8] sm:$0xff]  }
   0x7   :  { %v499_v14 = vld [vmem:[%s678_s1 + $0x18] sm:$0xff]   ;;  %v503_v18 = vld [vmem:[%s678_s1 + $0x20] sm:$0xff]   ;;  %v507_v22 = vld [vmem:[%s678_s1 + $0x28] sm:$0xff]  }
   0x8   :  { %442 = vmatpush3.bf16.msra.mxu0 %v491_v6  ;;  %v500_v15 = vld [vmem:[%s678_s1 + $0x98] sm:$0xff]   ;;  %v504_v19 = vld [vmem:[%s678_s1 + $0xa0] sm:$0xff]   ;;  %v508_v23 = vld [vmem:[%s678_s1 + $0xa8] sm:$0xff]  }
   0x9   :  { %464 = vmatpush3.bf16.msra.mxu1 %v492_v7  ;;  %443 = vmatprep.subr.bf16.mxu0 %v493_v8  ;;  %v509_v24 = vld [vmem:[%s678_s1 + $0x70] sm:$0xff]   ;;  %v513_v28 = vld [vmem:[%s678_s1 + $0x78] sm:$0xff]   ;;  %v406_v33 = vld.sshfl [vmem:[%s677_s0] sm:$0x33 pattern:$0x75316420] }
   0xa   :  { %465 = vmatprep.subr.bf16.mxu1 %v494_v9  ;;  %v510_v25 = vld [vmem:[%s678_s1 + $0xf0] sm:$0xff]   ;;  %v514_v29 = vld [vmem:[%s678_s1 + $0xf8] sm:$0xff]  }
   0xb   :  { %v511_v26 = vld [vmem:[%s678_s1 + $0x30] sm:$0xff]   ;;  %v515_v31 = vld [vmem:[%s678_s1 + $0x38] sm:$0xff]  }
   0xc   :  { %444 = vmatpush3.bf16.msra.mxu0 %v495_v10  ;;  %v512_v27 = vld [vmem:[%s678_s1 + $0xb0] sm:$0xff]   ;;  %v516_v32 = vld [vmem:[%s678_s1 + $0xb8] sm:$0xff]  }
   0xd   :  { %466 = vmatpush3.bf16.msra.mxu1 %v496_v11  ;;  %445 = vmatprep.subr.bf16.mxu0 %v497_v12 }
   0xe   :  { %467 = vmatprep.subr.bf16.mxu1 %v498_v13 }
  0x10   :  { %446 = vmatpush3.bf16.msra.mxu0 %v499_v14 }
  0x11   :  { %468 = vmatpush3.bf16.msra.mxu1 %v500_v15  ;;  %447 = vmatprep.subr.bf16.mxu0 %v501_v16 }
  0x12   :  { %469 = vmatprep.subr.bf16.mxu1 %v502_v17 }
  0x14   :  { %448 = vmatpush3.bf16.msra.mxu0 %v503_v18 }
  0x15   :  { %470 = vmatpush3.bf16.msra.mxu1 %v504_v19  ;;  %449 = vmatprep.subr.bf16.mxu0 %v505_v20 }
  0x16   :  { %471 = vmatprep.subr.bf16.mxu1 %v506_v21 }
  0x18   :  { %450 = vmatpush3.bf16.msra.mxu0 %v507_v22 }
  0x19   :  { %472 = vmatpush3.bf16.msra.mxu1 %v508_v23  ;;  %451 = vmatprep.subr.bf16.mxu0 %v509_v24 }
  0x1a   :  { %473 = vmatprep.subr.bf16.mxu1 %v510_v25 }
  0x1c   :  { %452 = vmatpush3.bf16.msra.mxu0 %v511_v26 }
  0x1d   :  { %474 = vmatpush3.bf16.msra.mxu1 %v512_v27  ;;  %453 = vmatprep.subr.bf16.mxu0 %v513_v28 }
  0x1e   :  { %475 = vmatprep.subr.bf16.mxu1 %v514_v29 }
  0x20   :  { %454 = vmatpush3.bf16.msra.mxu0 %v515_v31 }
  0x21   :  { %476 = vmatpush3.bf16.msra.mxu1 %v516_v32 }
  0x22   :  { %8 = vsyncpa [#allocation3], 0  ;;  %v96_v37 = vcombine.high %v406_v33, %v406_v33  ;;  %v99_v38 = vunpack.c.0.s8 %v98_v35  ;;  %v405_v45 = vld [vmem:[%s679_s2] ss:$0 sm:$0xff]  ;;  %s542_s0 = smov [#allocation2]   ;;  %vm389_vm0 = vcmask 74752  }
  0x23   :  { %s397_s25 = sshll.u32 %s542_s0, 4  ;;  %s398_s25 = int_to_ptr.vmem [resolvable:$true] %s397_s25 }
  0x24   :  { %v102_v39 = vsub.s32 %v99_v38, %v101_v36  ;;  %s517_s26 = scalar_lea.vmem %s398_s25, 32  ;;  %p522_p1 = scmp.lt.s32.totalorder %s398_s25, %s398_s25 }
  0x25   :  { %p518_p0 = scmp.ne.s32.totalorder %s398_s25, %s517_s26  ;;  %p523_p2 = scmp.lt.s32.totalorder %s517_s26, %s517_s26 }
  0x26   :  { %v110_v40 = vrot.slane %v96_v37, %v102_v39  ;;  %v103_v41 = vrot.slane %v406_v33, %v102_v39 }
  0x27   :  { %p524_p3 = por %p523_p2, %p522_p1 }
  0x28   :  { %341 = vmatprep.mubr.bf16.mxu0 %v110_v40  ;;  %v112_v42 = vcombine.high %v110_v40, %v110_v40  ;;  %v111_v43 = vcombine.high %v103_v41, %v103_v41 }
  0x29   :  { %342 = vmatmul.mubr.bf16.vlgmr.msra.gmra.mrb[0].mxu0 %v103_v41  ;;  %p525_p4 = pnand %p524_p3, %p518_p0 }
  0x2a   :  { %381 = vmatprep.mubr.bf16.mxu1 %v112_v42 }
  0x2b   :  { %382 = vmatmul.mubr.bf16.vlgmr.msra.gmra.mrb[0].mxu1 %v111_v43 }
  0xfc   :  { %v455_v44 = vpop.f32.mrb[0].mxu0 }
  0xfd   :  { %v456_v46 = vpop.f32.mrb[1].mxu0 }
  0xfe   :  { %v477_v47 = vpop.f32.mrb[0].mxu1  ;;  %v457_v48 = vadd.f32 %v456_v46, %v455_v44  ;;  %v458_v49 = vpop.f32.mrb[2].mxu0 }
  0xff   :  { %v478_v50 = vpop.f32.mrb[1].mxu1  ;;  %v459_v51 = vpop.f32.mrb[3].mxu0 }
 0x100   :  { %v344_v52 = vadd.f32 %v457_v48, %v405_v45  ;;  %v479_v53 = vadd.f32 %v478_v50, %v477_v47  ;;  %v480_v54 = vpop.f32.mrb[2].mxu1 }
 0x101   :  { %v481_v55 = vpop.f32.mrb[3].mxu1 }
 0x102   :  { %v384_v56 = vadd.f32 %v479_v53, %v344_v52 }
 0x104   :  { %390 = vst.msk [vmem:[#allocation2] sm:$0x3] %vm389_vm0, %v384_v56 }
 0x105   :  { %528 = shalt.err (!%p525_p4)
}
 0x106   :  { %s529_s28 = scalar_lea.hbm %s680_s3, 32 }
 0x107   :  { %p530_p5 = scmp.ne.s32.totalorder %s680_s3, %s529_s28  ;;  %p533_p6 = scmp.lt.u32.totalorder %s529_s28, %s680_s3 }
 0x109   :  { %p535_p7 = pnand %p533_p6, %p530_p5 }
 0x10b   :  { %538 = shalt.err (!%p535_p7)
}
 0x10c   :  { %400 = dma.vmem_to_hbm [thread:$0]  %s398_s25, 32, %s680_s3, [#allocation3]  }
 0x10d   :  { %539 = dma.done.wait [#allocation3], 32  }
 0x10e   :  { %540 = vsyncadd [#allocation3], 4294967264 }
 0x10f   :  { %404 = vsyncpa [#allocation3], 1 }

// kernel: lenet_forward.6
= control target key start
LH: loop header
LB: loop body
LE: loop exit
PB: predicated region body
PF: predicated region fallthrough
CT: control target
= control target key end

     0   :  { %v333_v36 = vlaneseq  ;;  %v3308_v37 = vmov 1966171168   ;;  %vm2005_vm0 = vcmask 801792   ;;  %vm2009_vm1 = vcmask 1040384   ;;  %s4335_s1 = inlined_call_operand.vmem [shape: bf16[1250,512], index: 1, kind: input, shape index: {}]   ;;  %s4336_s0 = inlined_call_operand.vmem [shape: bf16[2,1250], index: 0, kind: input, shape index: {}]   ;;  %s4337_s2 = inlined_call_operand.vmem [shape: f32[1,512], index: 2, kind: input, shape index: {}]   ;;  %s4338_s3 = inlined_call_operand.vmem [shape: bf16[2,512], index: 3, kind: output, shape index: {}]  }
   0x1   :  { %v2835_v0 = vld [vmem:[%s4335_s1 + $0x4] ss:$16 sps:$4 sm:$0xff]   ;;  %v2837_v1 = vld [vmem:[%s4335_s1 + $0xc] ss:$16 sps:$4 sm:$0xff]   ;;  %v2839_v2 = vld [vmem:[%s4335_s1] ss:$16 sps:$4 sm:$0xff]   ;;  %v357_v38 = vunpack.c.l.s4 %v3308_v37 }
   0x2   :  { %2022 = vmatprep.subr.bf16.mxu0 %v2835_v0  ;;  %v2840_v3 = vld [vmem:[%s4335_s1 + $0x8] ss:$16 sps:$4 sm:$0xff]   ;;  %2227 = vmatprep.subr.bf16.mxu1 %v2837_v1  ;;  %v2841_v4 = vld [vmem:[%s4335_s1 + $0x24] ss:$16 sps:$4 sm:$0xff]   ;;  %v2843_v5 = vld [vmem:[%s4335_s1 + $0x2c] ss:$16 sps:$4 sm:$0xff]  }
   0x3   :  { %2023 = vmatpush1.bf16.msra.mxu0 %v2839_v2  ;;  %2228 = vmatpush1.bf16.msra.mxu1 %v2840_v3  ;;  %v2845_v6 = vld [vmem:[%s4335_s1 + $0x20] ss:$16 sps:$4 sm:$0xff]   ;;  %v2846_v7 = vld [vmem:[%s4335_s1 + $0x28] ss:$16 sps:$4 sm:$0xff]   ;;  %v2847_v8 = vld [vmem:[%s4335_s1 + $0x44] ss:$16 sps:$4 sm:$0xff]   ;;  %v358_v43 = vunpack.c.0.s8 %v357_v38 }
   0x4   :  { %2024 = vmatprep.subr.bf16.mxu0 %v2841_v4  ;;  %2229 = vmatprep.subr.bf16.mxu1 %v2843_v5  ;;  %v2849_v9 = vld [vmem:[%s4335_s1 + $0x4c] ss:$16 sps:$4 sm:$0xff]   ;;  %v2851_v10 = vld [vmem:[%s4335_s1 + $0x40] ss:$16 sps:$4 sm:$0xff]   ;;  %v2852_v11 = vld [vmem:[%s4335_s1 + $0x48] ss:$16 sps:$4 sm:$0xff]  }
   0x5   :  { %v2853_v12 = vld [vmem:[%s4335_s1 + $0x64] ss:$16 sps:$4 sm:$0xff]   ;;  %v2855_v13 = vld [vmem:[%s4335_s1 + $0x6c] ss:$16 sps:$4 sm:$0xff]   ;;  %v2857_v14 = vld [vmem:[%s4335_s1 + $0x60] ss:$16 sps:$4 sm:$0xff]  }
   0x6   :  { %v2858_v15 = vld [vmem:[%s4335_s1 + $0x68] ss:$16 sps:$4 sm:$0xff]   ;;  %v2859_v16 = vld [vmem:[%s4335_s1 + $0x84] ss:$16 sps:$4 sm:$0xff]   ;;  %v2861_v17 = vld [vmem:[%s4335_s1 + $0x8c] ss:$16 sps:$4 sm:$0xff]  }
   0x7   :  { %2025 = vmatpush1.bf16.msra.mxu0 %v2845_v6  ;;  %2230 = vmatpush1.bf16.msra.mxu1 %v2846_v7  ;;  %v2863_v18 = vld [vmem:[%s4335_s1 + $0x80] ss:$16 sps:$4 sm:$0xff]   ;;  %v2864_v19 = vld [vmem:[%s4335_s1 + $0x88] ss:$16 sps:$4 sm:$0xff]   ;;  %v2865_v20 = vld [vmem:[%s4335_s1 + $0xa4] ss:$16 sps:$4 sm:$0xff]  }
   0x8   :  { %2026 = vmatprep.subr.bf16.mxu0 %v2847_v8  ;;  %2231 = vmatprep.subr.bf16.mxu1 %v2849_v9  ;;  %v2867_v21 = vld [vmem:[%s4335_s1 + $0xac] ss:$16 sps:$4 sm:$0xff]   ;;  %v2869_v22 = vld [vmem:[%s4335_s1 + $0xa0] ss:$16 sps:$4 sm:$0xff]   ;;  %v2870_v23 = vld [vmem:[%s4335_s1 + $0xa8] ss:$16 sps:$4 sm:$0xff]  }
   0x9   :  { %v2871_v24 = vld [vmem:[%s4335_s1 + $0xc4] ss:$16 sps:$4 sm:$0xff]   ;;  %v2873_v25 = vld [vmem:[%s4335_s1 + $0xcc] ss:$16 sps:$4 sm:$0xff]   ;;  %v2875_v26 = vld [vmem:[%s4335_s1 + $0xc0] ss:$16 sps:$4 sm:$0xff]  }
   0xa   :  { %v2876_v27 = vld [vmem:[%s4335_s1 + $0xc8] ss:$16 sps:$4 sm:$0xff]   ;;  %v2877_v28 = vld [vmem:[%s4335_s1 + $0xe4] ss:$16 sps:$4 sm:$0xff]   ;;  %v2879_v29 = vld [vmem:[%s4335_s1 + $0xec] ss:$16 sps:$4 sm:$0xff]  }
   0xb   :  { %2027 = vmatpush1.bf16.msra.mxu0 %v2851_v10  ;;  %2232 = vmatpush1.bf16.msra.mxu1 %v2852_v11  ;;  %v2881_v30 = vld [vmem:[%s4335_s1 + $0xe0] ss:$16 sps:$4 sm:$0xff]   ;;  %v2882_v31 = vld [vmem:[%s4335_s1 + $0xe8] ss:$16 sps:$4 sm:$0xff]   ;;  %v2883_v32 = vld [vmem:[%s4335_s1 + $0x104] ss:$16 sps:$4 sm:$0xff]  }
   0xc   :  { %2028 = vmatprep.subr.bf16.mxu0 %v2853_v12  ;;  %2233 = vmatprep.subr.bf16.mxu1 %v2855_v13  ;;  %v2885_v33 = vld [vmem:[%s4335_s1 + $0x10c] ss:$16 sps:$4 sm:$0xff]   ;;  %v2887_v34 = vld [vmem:[%s4335_s1 + $0x100] ss:$16 sps:$4 sm:$0xff]   ;;  %v2888_v35 = vld [vmem:[%s4335_s1 + $0x108] ss:$16 sps:$4 sm:$0xff]  }
   0xd   :  { %v2889_v39 = vld [vmem:[%s4335_s1 + $0x124] ss:$16 sps:$4 sm:$0xff]   ;;  %v2891_v40 = vld [vmem:[%s4335_s1 + $0x12c] ss:$16 sps:$4 sm:$0xff]   ;;  %v2893_v41 = vld [vmem:[%s4335_s1 + $0x120] ss:$16 sps:$4 sm:$0xff]  }
   0xe   :  { %v3446_v42 = vshrl.u32 %v333_v36, 7  ;;  %v2894_v44 = vld [vmem:[%s4335_s1 + $0x128] ss:$16 sps:$4 sm:$0xff]   ;;  %v2895_v45 = vld [vmem:[%s4335_s1 + $0x144] ss:$16 sps:$4 sm:$0xff]  }
   0xf   :  { %2029 = vmatpush1.bf16.msra.mxu0 %v2857_v14  ;;  %2234 = vmatpush1.bf16.msra.mxu1 %v2858_v15  ;;  %v2897_v46 = vld [vmem:[%s4335_s1 + $0x14c] ss:$16 sps:$4 sm:$0xff]   ;;  %v2899_v47 = vld [vmem:[%s4335_s1 + $0x140] ss:$16 sps:$4 sm:$0xff]   ;;  %v2900_v48 = vld [vmem:[%s4335_s1 + $0x148] ss:$16 sps:$4 sm:$0xff]  }
  0x10   :  { %2030 = vmatprep.subr.bf16.mxu0 %v2859_v16  ;;  %2235 = vmatprep.subr.bf16.mxu1 %v2861_v17  ;;  %v3464_v49 = vsub.s32 %v358_v43, %v3446_v42  ;;  %v2901_v50 = vld [vmem:[%s4335_s1 + $0x164] ss:$16 sps:$4 sm:$0xff]   ;;  %v2903_v51 = vld [vmem:[%s4335_s1 + $0x16c] ss:$16 sps:$4 sm:$0xff]   ;;  %v2905_v53 = vld [vmem:[%s4335_s1 + $0x160] ss:$16 sps:$4 sm:$0xff]  }
  0x11   :  { %v3475_v52 = vld [vmem:[%s4336_s0] sm:$0xff]  ;;  %v2906_v55 = vld [vmem:[%s4335_s1 + $0x168] ss:$16 sps:$4 sm:$0xff]   ;;  %v2909_v57 = vld [vmem:[%s4335_s1 + $0x18c] ss:$16 sps:$4 sm:$0xff]  }
  0x12   :  { %v362_v54 = vrot.slane %v3475_v52, %v3464_v49  ;;  %v2907_v56 = vld [vmem:[%s4335_s1 + $0x184] ss:$16 sps:$4 sm:$0xff]   ;;  %v2911_v59 = vld [vmem:[%s4335_s1 + $0x180] ss:$16 sps:$4 sm:$0xff]   ;;  %v2912_v61 = vld [vmem:[%s4335_s1 + $0x188] ss:$16 sps:$4 sm:$0xff]  }
  0x13   :  { %2031 = vmatpush1.bf16.msra.mxu0 %v2863_v18  ;;  %2236 = vmatpush1.bf16.msra.mxu1 %v2864_v19  ;;  %v2913_v62 = vld [vmem:[%s4335_s1 + $0x1a4] ss:$16 sps:$4 sm:$0xff]   ;;  %v2915_v63 = vld [vmem:[%s4335_s1 + $0x1ac] ss:$16 sps:$4 sm:$0xff]   ;;  %v2917_v0 = vld [vmem:[%s4335_s1 + $0x1a0] ss:$16 sps:$4 sm:$0xff]  }
  0x14   :  { %2032 = vmatprep.subr.bf16.mxu0 %v2865_v20  ;;  %2237 = vmatprep.subr.bf16.mxu1 %v2867_v21  ;;  %v370_v58 = vcombine.high %v362_v54, %v362_v54  ;;  %v2918_v1 = vld [vmem:[%s4335_s1 + $0x1a8] ss:$16 sps:$4 sm:$0xff]   ;;  %v2919_v2 = vld [vmem:[%s4335_s1 + $0x1c4] ss:$16 sps:$4 sm:$0xff]   ;;  %v2921_v3 = vld [vmem:[%s4335_s1 + $0x1cc] ss:$16 sps:$4 sm:$0xff]   ;;  %v3544_v13 = vrot.slane %v362_v54, %v3464_v49 }
  0x15   :  { %v2923_v4 = vld [vmem:[%s4335_s1 + $0x1c0] ss:$16 sps:$4 sm:$0xff]   ;;  %v2924_v5 = vld [vmem:[%s4335_s1 + $0x1c8] ss:$16 sps:$4 sm:$0xff]   ;;  %v2925_v6 = vld [vmem:[%s4335_s1 + $0x1e4] ss:$16 sps:$4 sm:$0xff]  }
  0x16   :  { %v392_v60 = vrot.slane %v370_v58, %v3464_v49  ;;  %v2927_v7 = vld [vmem:[%s4335_s1 + $0x1ec] ss:$16 sps:$4 sm:$0xff]   ;;  %v2929_v8 = vld [vmem:[%s4335_s1 + $0x1e0] ss:$16 sps:$4 sm:$0xff]   ;;  %v2930_v9 = vld [vmem:[%s4335_s1 + $0x1e8] ss:$16 sps:$4 sm:$0xff]  }
  0x17   :  { %2033 = vmatpush1.bf16.msra.mxu0 %v2869_v22  ;;  %2238 = vmatpush1.bf16.msra.mxu1 %v2870_v23  ;;  %v2933_v10 = vld [vmem:[%s4335_s1 + $0x204] ss:$16 sps:$4 sm:$0xff]   ;;  %v2936_v11 = vld [vmem:[%s4335_s1 + $0x20c] ss:$16 sps:$4 sm:$0xff]   ;;  %v2931_v12 = vld [vmem:[%s4335_s1 + $0x200] ss:$16 sps:$4 sm:$0xff]  }
  0x18   :  { %2034 = vmatprep.subr.bf16.mxu0 %v2871_v24  ;;  %2239 = vmatprep.subr.bf16.mxu1 %v2873_v25  ;;  %v2934_v14 = vld [vmem:[%s4335_s1 + $0x208] ss:$16 sps:$4 sm:$0xff]   ;;  %v2939_v15 = vld [vmem:[%s4335_s1 + $0x224] ss:$16 sps:$4 sm:$0xff]   ;;  %v2942_v16 = vld [vmem:[%s4335_s1 + $0x22c] ss:$16 sps:$4 sm:$0xff]   ;;  %v402_v17 = vcombine.high %v392_v60, %v392_v60 }
  0x19   :  { %2054 = vmatprep.mubr.bf16.mxu0 %v392_v60  ;;  %2259 = vmatprep.mubr.bf16.mxu1 %v392_v60  ;;  %v2937_v18 = vld [vmem:[%s4335_s1 + $0x220] ss:$16 sps:$4 sm:$0xff]   ;;  %v2940_v19 = vld [vmem:[%s4335_s1 + $0x228] ss:$16 sps:$4 sm:$0xff]   ;;  %v2945_v20 = vld [vmem:[%s4335_s1 + $0x244] ss:$16 sps:$4 sm:$0xff]  }
  0x1a   :  { %v2948_v21 = vld [vmem:[%s4335_s1 + $0x24c] ss:$16 sps:$4 sm:$0xff]   ;;  %v2943_v22 = vld [vmem:[%s4335_s1 + $0x240] ss:$16 sps:$4 sm:$0xff]   ;;  %v2946_v23 = vld [vmem:[%s4335_s1 + $0x248] ss:$16 sps:$4 sm:$0xff]  }
  0x1b   :  { %2035 = vmatpush1.bf16.msra.mxu0 %v2875_v26  ;;  %2240 = vmatpush1.bf16.msra.mxu1 %v2876_v27  ;;  %v2951_v24 = vld [vmem:[%s4335_s1 + $0x264] ss:$16 sps:$4 sm:$0xff]   ;;  %v2954_v25 = vld [vmem:[%s4335_s1 + $0x26c] ss:$16 sps:$4 sm:$0xff]   ;;  %v2949_v26 = vld [vmem:[%s4335_s1 + $0x260] ss:$16 sps:$4 sm:$0xff]  }
  0x1c   :  { %2036 = vmatprep.subr.bf16.mxu0 %v2877_v28  ;;  %2241 = vmatprep.subr.bf16.mxu1 %v2879_v29  ;;  %v2952_v27 = vld [vmem:[%s4335_s1 + $0x268] ss:$16 sps:$4 sm:$0xff]   ;;  %v2957_v28 = vld [vmem:[%s4335_s1 + $0x284] ss:$16 sps:$4 sm:$0xff]   ;;  %v2960_v29 = vld [vmem:[%s4335_s1 + $0x28c] ss:$16 sps:$4 sm:$0xff]  }
  0x1d   :  { %v2969_v36 = vld [vmem:[%s4335_s1 + $0x2c4] ss:$16 sps:$4 sm:$0xff]   ;;  %v2972_v37 = vld [vmem:[%s4335_s1 + $0x2cc] ss:$16 sps:$4 sm:$0xff]   ;;  %v2967_v38 = vld [vmem:[%s4335_s1 + $0x2c0] ss:$16 sps:$4 sm:$0xff]  }
  0x1e   :  { %v2973_v43 = vld [vmem:[%s4335_s1 + $0x2e0] ss:$16 sps:$4 sm:$0xff]   ;;  %v2988_v54 = vld [vmem:[%s4335_s1 + $0x328] ss:$16 sps:$4 sm:$0xff]   ;;  %v3002_v60 = vld [vmem:[%s4335_s1 + $0x36c] ss:$16 sps:$4 sm:$0xff]  }
  0x1f   :  { %2037 = vmatpush1.bf16.msra.mxu0 %v2881_v30  ;;  %2242 = vmatpush1.bf16.msra.mxu1 %v2882_v31  ;;  %v2955_v30 = vld [vmem:[%s4335_s1 + $0x280] ss:$16 sps:$4 sm:$0xff]   ;;  %v2958_v31 = vld [vmem:[%s4335_s1 + $0x288] ss:$16 sps:$4 sm:$0xff]  }
  0x20   :  { %2038 = vmatprep.subr.bf16.mxu0 %v2883_v32  ;;  %2243 = vmatprep.subr.bf16.mxu1 %v2885_v33  ;;  %v2963_v32 = vld [vmem:[%s4335_s1 + $0x2a4] ss:$16 sps:$4 sm:$0xff]   ;;  %v2966_v33 = vld [vmem:[%s4335_s1 + $0x2ac] ss:$16 sps:$4 sm:$0xff]   ;;  %v2994_v58 = vld [vmem:[%s4335_s1 + $0x348] ss:$16 sps:$4 sm:$0xff]  }
  0x23   :  { %2039 = vmatpush1.bf16.msra.mxu0 %v2887_v34  ;;  %2244 = vmatpush1.bf16.msra.mxu1 %v2888_v35  ;;  %v2961_v34 = vld [vmem:[%s4335_s1 + $0x2a0] ss:$16 sps:$4 sm:$0xff]   ;;  %v2964_v35 = vld [vmem:[%s4335_s1 + $0x2a8] ss:$16 sps:$4 sm:$0xff]  }
  0x24   :  { %2040 = vmatprep.subr.bf16.mxu0 %v2889_v39  ;;  %2245 = vmatprep.subr.bf16.mxu1 %v2891_v40  ;;  %v2970_v39 = vld [vmem:[%s4335_s1 + $0x2c8] ss:$16 sps:$4 sm:$0xff]   ;;  %v2975_v40 = vld [vmem:[%s4335_s1 + $0x2e4] ss:$16 sps:$4 sm:$0xff]  }
  0x27   :  { %2041 = vmatpush1.bf16.msra.mxu0 %v2893_v41  ;;  %2246 = vmatpush1.bf16.msra.mxu1 %v2894_v44  ;;  %v2978_v41 = vld [vmem:[%s4335_s1 + $0x2ec] ss:$16 sps:$4 sm:$0xff]   ;;  %v2976_v44 = vld [vmem:[%s4335_s1 + $0x2e8] ss:$16 sps:$4 sm:$0xff]  }
  0x28   :  { %2042 = vmatprep.subr.bf16.mxu0 %v2895_v45  ;;  %2247 = vmatprep.subr.bf16.mxu1 %v2897_v46  ;;  %v2981_v45 = vld [vmem:[%s4335_s1 + $0x304] ss:$16 sps:$4 sm:$0xff]   ;;  %v2984_v46 = vld [vmem:[%s4335_s1 + $0x30c] ss:$16 sps:$4 sm:$0xff]  }
  0x2b   :  { %2043 = vmatpush1.bf16.msra.mxu0 %v2899_v47  ;;  %2248 = vmatpush1.bf16.msra.mxu1 %v2900_v48  ;;  %v2979_v47 = vld [vmem:[%s4335_s1 + $0x300] ss:$16 sps:$4 sm:$0xff]   ;;  %v2982_v48 = vld [vmem:[%s4335_s1 + $0x308] ss:$16 sps:$4 sm:$0xff]  }
  0x2c   :  { %2044 = vmatprep.subr.bf16.mxu0 %v2901_v50  ;;  %2249 = vmatprep.subr.bf16.mxu1 %v2903_v51  ;;  %v2987_v50 = vld [vmem:[%s4335_s1 + $0x324] ss:$16 sps:$4 sm:$0xff]   ;;  %v2990_v51 = vld [vmem:[%s4335_s1 + $0x32c] ss:$16 sps:$4 sm:$0xff]  }
  0x2f   :  { %2045 = vmatpush1.bf16.msra.mxu0 %v2905_v53  ;;  %2250 = vmatpush1.bf16.msra.mxu1 %v2906_v55  ;;  %v2985_v53 = vld [vmem:[%s4335_s1 + $0x320] ss:$16 sps:$4 sm:$0xff]   ;;  %v2993_v55 = vld [vmem:[%s4335_s1 + $0x344] ss:$16 sps:$4 sm:$0xff]  }
  0x30   :  { %2046 = vmatprep.subr.bf16.mxu0 %v2907_v56  ;;  %2251 = vmatprep.subr.bf16.mxu1 %v2909_v57  ;;  %v2996_v56 = vld [vmem:[%s4335_s1 + $0x34c] ss:$16 sps:$4 sm:$0xff]   ;;  %v2991_v57 = vld [vmem:[%s4335_s1 + $0x340] ss:$16 sps:$4 sm:$0xff]  }
  0x33   :  { %2047 = vmatpush1.bf16.msra.mxu0 %v2911_v59  ;;  %2252 = vmatpush1.bf16.msra.mxu1 %v2912_v61  ;;  %v2999_v59 = vld [vmem:[%s4335_s1 + $0x364] ss:$16 sps:$4 sm:$0xff]   ;;  %v2997_v61 = vld [vmem:[%s4335_s1 + $0x360] ss:$16 sps:$4 sm:$0xff]  }
  0x34   :  { %2048 = vmatprep.subr.bf16.mxu0 %v2913_v62  ;;  %2253 = vmatprep.subr.bf16.mxu1 %v2915_v63  ;;  %v3000_v62 = vld [vmem:[%s4335_s1 + $0x368] ss:$16 sps:$4 sm:$0xff]   ;;  %v3005_v63 = vld [vmem:[%s4335_s1 + $0x384] ss:$16 sps:$4 sm:$0xff]  }
  0x37   :  { %2049 = vmatpush1.bf16.msra.mxu0 %v2917_v0  ;;  %2254 = vmatpush1.bf16.msra.mxu1 %v2918_v1  ;;  %v3008_v0 = vld [vmem:[%s4335_s1 + $0x38c] ss:$16 sps:$4 sm:$0xff]   ;;  %v3003_v1 = vld [vmem:[%s4335_s1 + $0x380] ss:$16 sps:$4 sm:$0xff]  }
  0x38   :  { %2050 = vmatprep.subr.bf16.mxu0 %v2919_v2  ;;  %2255 = vmatprep.subr.bf16.mxu1 %v2921_v3  ;;  %v3006_v2 = vld [vmem:[%s4335_s1 + $0x388] ss:$16 sps:$4 sm:$0xff]   ;;  %v3011_v3 = vld [vmem:[%s4335_s1 + $0x3a4] ss:$16 sps:$4 sm:$0xff]  }
  0x3b   :  { %2051 = vmatpush1.bf16.msra.mxu0 %v2923_v4  ;;  %2256 = vmatpush1.bf16.msra.mxu1 %v2924_v5  ;;  %v3014_v4 = vld [vmem:[%s4335_s1 + $0x3ac] ss:$16 sps:$4 sm:$0xff]   ;;  %v3009_v5 = vld [vmem:[%s4335_s1 + $0x3a0] ss:$16 sps:$4 sm:$0xff]  }
  0x3c   :  { %2052 = vmatprep.subr.bf16.mxu0 %v2925_v6  ;;  %2257 = vmatprep.subr.bf16.mxu1 %v2927_v7  ;;  %v3012_v6 = vld [vmem:[%s4335_s1 + $0x3a8] ss:$16 sps:$4 sm:$0xff]   ;;  %v3017_v7 = vld [vmem:[%s4335_s1 + $0x3c4] ss:$16 sps:$4 sm:$0xff]  }
  0x3f   :  { %2053 = vmatpush1.bf16.msra.mxu0 %v2929_v8  ;;  %2258 = vmatpush1.bf16.msra.mxu1 %v2930_v9  ;;  %v3020_v8 = vld [vmem:[%s4335_s1 + $0x3cc] ss:$16 sps:$4 sm:$0xff]   ;;  %v355_v9 = vcombine.high %v3475_v52, %v3475_v52 }
  0x40   :  { %2063 = vmatprep.subr.bf16.mxu0 %v2933_v10  ;;  %2268 = vmatprep.subr.bf16.mxu1 %v2936_v11  ;;  %v3015_v10 = vld [vmem:[%s4335_s1 + $0x3c0] ss:$16 sps:$4 sm:$0xff]   ;;  %v3018_v11 = vld [vmem:[%s4335_s1 + $0x3c8] ss:$16 sps:$4 sm:$0xff]   ;;  %v3026_v52 = vld [vmem:[%s4335_s1 + $0x3ec] ss:$16 sps:$4 sm:$0xff]  }
  0x42   :  { %2055 = vmatmul.mubr.bf16.vlgmr.msra.gmra.mrb[0].mxu0 %v3544_v13  ;;  %2260 = vmatmul.mubr.bf16.vlgmr.msra.gmra.mrb[0].mxu1 %v3544_v13 }
  0x43   :  { %2064 = vmatpush1.bf16.msra.mxu0 %v2931_v12  ;;  %2269 = vmatpush1.bf16.msra.mxu1 %v2934_v14  ;;  %v3023_v12 = vld [vmem:[%s4335_s1 + $0x3e4] ss:$16 sps:$4 sm:$0xff]   ;;  %v3728_v14 = vrot.slane %v355_v9, %v3464_v49  ;;  %v3102_v9 = vld [vmem:[%s4335_s1 + $0x588] ss:$16 sps:$4 sm:$0xff]  }
  0x44   :  { %2065 = vmatprep.subr.bf16.mxu0 %v2939_v15  ;;  %2270 = vmatprep.subr.bf16.mxu1 %v2942_v16  ;;  %v3021_v15 = vld [vmem:[%s4335_s1 + $0x3e0] ss:$16 sps:$4 sm:$0xff]   ;;  %v3024_v16 = vld [vmem:[%s4335_s1 + $0x3e8] ss:$16 sps:$4 sm:$0xff]  }
  0x45   :  { %2095 = vmatprep.mubr.bf16.mxu0 %v402_v17  ;;  %2300 = vmatprep.mubr.bf16.mxu1 %v402_v17  ;;  %v3029_v17 = vld [vmem:[%s4335_s1 + $0x404] ss:$16 sps:$4 sm:$0xff]  }
  0x47   :  { %2066 = vmatpush1.bf16.msra.mxu0 %v2937_v18  ;;  %2271 = vmatpush1.bf16.msra.mxu1 %v2940_v19  ;;  %v3032_v18 = vld [vmem:[%s4335_s1 + $0x40c] ss:$16 sps:$4 sm:$0xff]   ;;  %v371_v19 = vcombine.high %v3728_v14, %v3728_v14 }
  0x48   :  { %2067 = vmatprep.subr.bf16.mxu0 %v2945_v20  ;;  %2272 = vmatprep.subr.bf16.mxu1 %v2948_v21  ;;  %v3027_v20 = vld [vmem:[%s4335_s1 + $0x400] ss:$16 sps:$4 sm:$0xff]   ;;  %v400_v21 = vcombine.high %v3544_v13, %v3544_v13 }
  0x49   :  { %v3033_v13 = vld [vmem:[%s4335_s1 + $0x420] ss:$16 sps:$4 sm:$0xff]  }
  0x4b   :  { %2068 = vmatpush1.bf16.msra.mxu0 %v2943_v22  ;;  %2273 = vmatpush1.bf16.msra.mxu1 %v2946_v23  ;;  %v3030_v22 = vld [vmem:[%s4335_s1 + $0x408] ss:$16 sps:$4 sm:$0xff]   ;;  %v3035_v23 = vld [vmem:[%s4335_s1 + $0x424] ss:$16 sps:$4 sm:$0xff]  }
  0x4c   :  { %2069 = vmatprep.subr.bf16.mxu0 %v2951_v24  ;;  %2274 = vmatprep.subr.bf16.mxu1 %v2954_v25  ;;  %v3038_v24 = vld [vmem:[%s4335_s1 + $0x42c] ss:$16 sps:$4 sm:$0xff]   ;;  %v3759_v25 = vrot.slane %v371_v19, %v3464_v49  ;;  %v3119_v19 = vld [vmem:[%s4335_s1 + $0x5e4] ss:$16 sps:$4 sm:$0xff]  }
  0x4f   :  { %2070 = vmatpush1.bf16.msra.mxu0 %v2949_v26  ;;  %2275 = vmatpush1.bf16.msra.mxu1 %v2952_v27  ;;  %v3036_v26 = vld [vmem:[%s4335_s1 + $0x428] ss:$16 sps:$4 sm:$0xff]   ;;  %v3041_v27 = vld [vmem:[%s4335_s1 + $0x444] ss:$16 sps:$4 sm:$0xff]  }
  0x50   :  { %2071 = vmatprep.subr.bf16.mxu0 %v2957_v28  ;;  %2276 = vmatprep.subr.bf16.mxu1 %v2960_v29  ;;  %v3044_v28 = vld [vmem:[%s4335_s1 + $0x44c] ss:$16 sps:$4 sm:$0xff]   ;;  %v3039_v29 = vld [vmem:[%s4335_s1 + $0x440] ss:$16 sps:$4 sm:$0xff]  }
  0x53   :  { %2072 = vmatpush1.bf16.msra.mxu0 %v2955_v30  ;;  %2277 = vmatpush1.bf16.msra.mxu1 %v2958_v31  ;;  %v3042_v30 = vld [vmem:[%s4335_s1 + $0x448] ss:$16 sps:$4 sm:$0xff]   ;;  %v3047_v31 = vld [vmem:[%s4335_s1 + $0x464] ss:$16 sps:$4 sm:$0xff]  }
  0x54   :  { %2073 = vmatprep.subr.bf16.mxu0 %v2963_v32  ;;  %2278 = vmatprep.subr.bf16.mxu1 %v2966_v33  ;;  %v3050_v32 = vld [vmem:[%s4335_s1 + $0x46c] ss:$16 sps:$4 sm:$0xff]   ;;  %v3045_v33 = vld [vmem:[%s4335_s1 + $0x460] ss:$16 sps:$4 sm:$0xff]  }
  0x57   :  { %2074 = vmatpush1.bf16.msra.mxu0 %v2961_v34  ;;  %2279 = vmatpush1.bf16.msra.mxu1 %v2964_v35  ;;  %v3048_v34 = vld [vmem:[%s4335_s1 + $0x468] ss:$16 sps:$4 sm:$0xff]   ;;  %v3053_v35 = vld [vmem:[%s4335_s1 + $0x484] ss:$16 sps:$4 sm:$0xff]  }
  0x58   :  { %2075 = vmatprep.subr.bf16.mxu0 %v2969_v36  ;;  %2280 = vmatprep.subr.bf16.mxu1 %v2972_v37  ;;  %v3056_v36 = vld [vmem:[%s4335_s1 + $0x48c] ss:$16 sps:$4 sm:$0xff]   ;;  %v3051_v37 = vld [vmem:[%s4335_s1 + $0x480] ss:$16 sps:$4 sm:$0xff]  }
  0x5b   :  { %2076 = vmatpush1.bf16.msra.mxu0 %v2967_v38  ;;  %2281 = vmatpush1.bf16.msra.mxu1 %v2970_v39  ;;  %v3054_v38 = vld [vmem:[%s4335_s1 + $0x488] ss:$16 sps:$4 sm:$0xff]   ;;  %v3059_v39 = vld [vmem:[%s4335_s1 + $0x4a4] ss:$16 sps:$4 sm:$0xff]  }
  0x5c   :  { %2077 = vmatprep.subr.bf16.mxu0 %v2975_v40  ;;  %2282 = vmatprep.subr.bf16.mxu1 %v2978_v41  ;;  %v3062_v40 = vld [vmem:[%s4335_s1 + $0x4ac] ss:$16 sps:$4 sm:$0xff]   ;;  %v3057_v41 = vld [vmem:[%s4335_s1 + $0x4a0] ss:$16 sps:$4 sm:$0xff]  }
  0x5f   :  { %2078 = vmatpush1.bf16.msra.mxu0 %v2973_v43  ;;  %2283 = vmatpush1.bf16.msra.mxu1 %v2976_v44  ;;  %v3060_v43 = vld [vmem:[%s4335_s1 + $0x4a8] ss:$16 sps:$4 sm:$0xff]   ;;  %v3065_v44 = vld [vmem:[%s4335_s1 + $0x4c4] ss:$16 sps:$4 sm:$0xff]  }
  0x60   :  { %2079 = vmatprep.subr.bf16.mxu0 %v2981_v45  ;;  %2284 = vmatprep.subr.bf16.mxu1 %v2984_v46  ;;  %v3068_v45 = vld [vmem:[%s4335_s1 + $0x4cc] ss:$16 sps:$4 sm:$0xff]   ;;  %v3063_v46 = vld [vmem:[%s4335_s1 + $0x4c0] ss:$16 sps:$4 sm:$0xff]  }
  0x63   :  { %2080 = vmatpush1.bf16.msra.mxu0 %v2979_v47  ;;  %2285 = vmatpush1.bf16.msra.mxu1 %v2982_v48  ;;  %v3066_v47 = vld [vmem:[%s4335_s1 + $0x4c8] ss:$16 sps:$4 sm:$0xff]   ;;  %v3071_v48 = vld [vmem:[%s4335_s1 + $0x4e4] ss:$16 sps:$4 sm:$0xff]  }
  0x64   :  { %2081 = vmatprep.subr.bf16.mxu0 %v2987_v50  ;;  %2286 = vmatprep.subr.bf16.mxu1 %v2990_v51  ;;  %v3074_v50 = vld [vmem:[%s4335_s1 + $0x4ec] ss:$16 sps:$4 sm:$0xff]   ;;  %v3069_v51 = vld [vmem:[%s4335_s1 + $0x4e0] ss:$16 sps:$4 sm:$0xff]  }
  0x67   :  { %2082 = vmatpush1.bf16.msra.mxu0 %v2985_v53  ;;  %2287 = vmatpush1.bf16.msra.mxu1 %v2988_v54  ;;  %v3072_v53 = vld [vmem:[%s4335_s1 + $0x4e8] ss:$16 sps:$4 sm:$0xff]   ;;  %v3077_v54 = vld [vmem:[%s4335_s1 + $0x504] ss:$16 sps:$4 sm:$0xff]  }
  0x68   :  { %2083 = vmatprep.subr.bf16.mxu0 %v2993_v55  ;;  %2288 = vmatprep.subr.bf16.mxu1 %v2996_v56  ;;  %v3080_v55 = vld [vmem:[%s4335_s1 + $0x50c] ss:$16 sps:$4 sm:$0xff]   ;;  %v3075_v56 = vld [vmem:[%s4335_s1 + $0x500] ss:$16 sps:$4 sm:$0xff]  }
  0x6b   :  { %2084 = vmatpush1.bf16.msra.mxu0 %v2991_v57  ;;  %2289 = vmatpush1.bf16.msra.mxu1 %v2994_v58  ;;  %v3078_v57 = vld [vmem:[%s4335_s1 + $0x508] ss:$16 sps:$4 sm:$0xff]   ;;  %v3083_v58 = vld [vmem:[%s4335_s1 + $0x524] ss:$16 sps:$4 sm:$0xff]  }
  0x6c   :  { %2085 = vmatprep.subr.bf16.mxu0 %v2999_v59  ;;  %2290 = vmatprep.subr.bf16.mxu1 %v3002_v60  ;;  %v3086_v59 = vld [vmem:[%s4335_s1 + $0x52c] ss:$16 sps:$4 sm:$0xff]   ;;  %v3081_v60 = vld [vmem:[%s4335_s1 + $0x520] ss:$16 sps:$4 sm:$0xff]  }
  0x6f   :  { %2086 = vmatpush1.bf16.msra.mxu0 %v2997_v61  ;;  %2291 = vmatpush1.bf16.msra.mxu1 %v3000_v62  ;;  %v3084_v61 = vld [vmem:[%s4335_s1 + $0x528] ss:$16 sps:$4 sm:$0xff]   ;;  %v3089_v62 = vld [vmem:[%s4335_s1 + $0x544] ss:$16 sps:$4 sm:$0xff]  }
  0x70   :  { %2087 = vmatprep.subr.bf16.mxu0 %v3005_v63  ;;  %2292 = vmatprep.subr.bf16.mxu1 %v3008_v0  ;;  %v3092_v63 = vld [vmem:[%s4335_s1 + $0x54c] ss:$16 sps:$4 sm:$0xff]   ;;  %v3087_v0 = vld [vmem:[%s4335_s1 + $0x540] ss:$16 sps:$4 sm:$0xff]  }
  0x73   :  { %2088 = vmatpush1.bf16.msra.mxu0 %v3003_v1  ;;  %2293 = vmatpush1.bf16.msra.mxu1 %v3006_v2  ;;  %v3090_v1 = vld [vmem:[%s4335_s1 + $0x548] ss:$16 sps:$4 sm:$0xff]   ;;  %v3095_v2 = vld [vmem:[%s4335_s1 + $0x564] ss:$16 sps:$4 sm:$0xff]  }
  0x74   :  { %2089 = vmatprep.subr.bf16.mxu0 %v3011_v3  ;;  %2294 = vmatprep.subr.bf16.mxu1 %v3014_v4  ;;  %v3098_v3 = vld [vmem:[%s4335_s1 + $0x56c] ss:$16 sps:$4 sm:$0xff]   ;;  %v3093_v4 = vld [vmem:[%s4335_s1 + $0x560] ss:$16 sps:$4 sm:$0xff]  }
  0x77   :  { %2090 = vmatpush1.bf16.msra.mxu0 %v3009_v5  ;;  %2295 = vmatpush1.bf16.msra.mxu1 %v3012_v6  ;;  %v3096_v5 = vld [vmem:[%s4335_s1 + $0x568] ss:$16 sps:$4 sm:$0xff]   ;;  %v3101_v6 = vld [vmem:[%s4335_s1 + $0x584] ss:$16 sps:$4 sm:$0xff]  }
  0x78   :  { %2091 = vmatprep.subr.bf16.mxu0 %v3017_v7  ;;  %2296 = vmatprep.subr.bf16.mxu1 %v3020_v8  ;;  %v3104_v7 = vld [vmem:[%s4335_s1 + $0x58c] ss:$16 sps:$4 sm:$0xff]   ;;  %v3099_v8 = vld [vmem:[%s4335_s1 + $0x580] ss:$16 sps:$4 sm:$0xff]  }
  0x7b   :  { %2092 = vmatpush1.bf16.msra.mxu0 %v3015_v10  ;;  %2297 = vmatpush1.bf16.msra.mxu1 %v3018_v11  ;;  %v3107_v10 = vld [vmem:[%s4335_s1 + $0x5a4] ss:$16 sps:$4 sm:$0xff]   ;;  %v3110_v11 = vld [vmem:[%s4335_s1 + $0x5ac] ss:$16 sps:$4 sm:$0xff]  }
  0x7c   :  { %2093 = vmatprep.subr.bf16.mxu0 %v3023_v12  ;;  %2298 = vmatprep.subr.bf16.mxu1 %v3026_v52  ;;  %v3105_v12 = vld [vmem:[%s4335_s1 + $0x5a0] ss:$16 sps:$4 sm:$0xff]   ;;  %v3108_v52 = vld [vmem:[%s4335_s1 + $0x5a8] ss:$16 sps:$4 sm:$0xff]  }
  0x7f   :  { %2094 = vmatpush1.bf16.msra.mxu0 %v3021_v15  ;;  %2299 = vmatpush1.bf16.msra.mxu1 %v3024_v16  ;;  %v3113_v15 = vld [vmem:[%s4335_s1 + $0x5c4] ss:$16 sps:$4 sm:$0xff]   ;;  %v3116_v16 = vld [vmem:[%s4335_s1 + $0x5cc] ss:$16 sps:$4 sm:$0xff]  }
  0x80   :  { %2104 = vmatprep.subr.bf16.mxu0 %v3029_v17  ;;  %2309 = vmatprep.subr.bf16.mxu1 %v3032_v18  ;;  %v3111_v17 = vld [vmem:[%s4335_s1 + $0x5c0] ss:$16 sps:$4 sm:$0xff]   ;;  %v3114_v18 = vld [vmem:[%s4335_s1 + $0x5c8] ss:$16 sps:$4 sm:$0xff]  }
  0x82   :  { %2096 = vmatmul.mubr.bf16.vlgmr.msra.gmra.mrb[0].mxu0 %v400_v21  ;;  %2301 = vmatmul.mubr.bf16.vlgmr.msra.gmra.mrb[0].mxu1 %v400_v21  ;;  %v3117_v21 = vld [vmem:[%s4335_s1 + $0x5e0] ss:$16 sps:$4 sm:$0xff]  }
  0x83   :  { %2105 = vmatpush1.bf16.msra.mxu0 %v3027_v20  ;;  %2310 = vmatpush1.bf16.msra.mxu1 %v3030_v22  ;;  %v3122_v20 = vld [vmem:[%s4335_s1 + $0x5ec] ss:$16 sps:$4 sm:$0xff]   ;;  %v3120_v22 = vld [vmem:[%s4335_s1 + $0x5e8] ss:$16 sps:$4 sm:$0xff]  }
  0x84   :  { %2106 = vmatprep.subr.bf16.mxu0 %v3035_v23  ;;  %2311 = vmatprep.subr.bf16.mxu1 %v3038_v24  ;;  %v3126_v23 = vld [vmem:[%s4335_s1 + $0x604] ss:$16 sps:$4 sm:$0xff]   ;;  %v3129_v24 = vld [vmem:[%s4335_s1 + $0x60c] ss:$16 sps:$4 sm:$0xff]  }
  0x85   :  { %2136 = vmatprep.mubr.bf16.mxu0 %v3759_v25  ;;  %2341 = vmatprep.mubr.bf16.mxu1 %v3759_v25 }
  0x87   :  { %2107 = vmatpush1.bf16.msra.mxu0 %v3033_v13  ;;  %2312 = vmatpush1.bf16.msra.mxu1 %v3036_v26  ;;  %v3124_v13 = vld [vmem:[%s4335_s1 + $0x600] ss:$16 sps:$4 sm:$0xff]   ;;  %v3948_v26 = vrot.slane %v3728_v14, %v3464_v49  ;;  %v403_v14 = vcombine.high %v3759_v25, %v3759_v25  ;;  %v3138_v25 = vld [vmem:[%s4335_s1 + $0x644] ss:$16 sps:$4 sm:$0xff]  }
  0x88   :  { %2108 = vmatprep.subr.bf16.mxu0 %v3041_v27  ;;  %2313 = vmatprep.subr.bf16.mxu1 %v3044_v28  ;;  %v3127_v27 = vld [vmem:[%s4335_s1 + $0x608] ss:$16 sps:$4 sm:$0xff]   ;;  %v3132_v28 = vld [vmem:[%s4335_s1 + $0x624] ss:$16 sps:$4 sm:$0xff]  }
  0x8b   :  { %2109 = vmatpush1.bf16.msra.mxu0 %v3039_v29  ;;  %2314 = vmatpush1.bf16.msra.mxu1 %v3042_v30  ;;  %v3135_v29 = vld [vmem:[%s4335_s1 + $0x62c] ss:$16 sps:$4 sm:$0xff]   ;;  %v3130_v30 = vld [vmem:[%s4335_s1 + $0x620] ss:$16 sps:$4 sm:$0xff]  }
  0x8c   :  { %2110 = vmatprep.subr.bf16.mxu0 %v3047_v31  ;;  %2315 = vmatprep.subr.bf16.mxu1 %v3050_v32  ;;  %v3133_v31 = vld [vmem:[%s4335_s1 + $0x628] ss:$16 sps:$4 sm:$0xff]   ;;  %v3141_v32 = vld [vmem:[%s4335_s1 + $0x64c] ss:$16 sps:$4 sm:$0xff]  }
  0x8f   :  { %2111 = vmatpush1.bf16.msra.mxu0 %v3045_v33  ;;  %2316 = vmatpush1.bf16.msra.mxu1 %v3048_v34  ;;  %v3136_v33 = vld [vmem:[%s4335_s1 + $0x640] ss:$16 sps:$4 sm:$0xff]   ;;  %v3139_v34 = vld [vmem:[%s4335_s1 + $0x648] ss:$16 sps:$4 sm:$0xff]  }
  0x90   :  { %2112 = vmatprep.subr.bf16.mxu0 %v3053_v35  ;;  %2317 = vmatprep.subr.bf16.mxu1 %v3056_v36  ;;  %v3144_v35 = vld [vmem:[%s4335_s1 + $0x664] ss:$16 sps:$4 sm:$0xff]   ;;  %v3147_v36 = vld [vmem:[%s4335_s1 + $0x66c] ss:$16 sps:$4 sm:$0xff]  }
  0x93   :  { %2113 = vmatpush1.bf16.msra.mxu0 %v3051_v37  ;;  %2318 = vmatpush1.bf16.msra.mxu1 %v3054_v38  ;;  %v3142_v37 = vld [vmem:[%s4335_s1 + $0x660] ss:$16 sps:$4 sm:$0xff]   ;;  %v3145_v38 = vld [vmem:[%s4335_s1 + $0x668] ss:$16 sps:$4 sm:$0xff]  }
  0x94   :  { %2114 = vmatprep.subr.bf16.mxu0 %v3059_v39  ;;  %2319 = vmatprep.subr.bf16.mxu1 %v3062_v40  ;;  %v3150_v39 = vld [vmem:[%s4335_s1 + $0x684] ss:$16 sps:$4 sm:$0xff]   ;;  %v3153_v40 = vld [vmem:[%s4335_s1 + $0x68c] ss:$16 sps:$4 sm:$0xff]  }
  0x97   :  { %2115 = vmatpush1.bf16.msra.mxu0 %v3057_v41  ;;  %2320 = vmatpush1.bf16.msra.mxu1 %v3060_v43  ;;  %v3148_v41 = vld [vmem:[%s4335_s1 + $0x680] ss:$16 sps:$4 sm:$0xff]   ;;  %v3151_v43 = vld [vmem:[%s4335_s1 + $0x688] ss:$16 sps:$4 sm:$0xff]  }
  0x98   :  { %2116 = vmatprep.subr.bf16.mxu0 %v3065_v44  ;;  %2321 = vmatprep.subr.bf16.mxu1 %v3068_v45  ;;  %v3156_v44 = vld [vmem:[%s4335_s1 + $0x6a4] ss:$16 sps:$4 sm:$0xff]   ;;  %v3159_v45 = vld [vmem:[%s4335_s1 + $0x6ac] ss:$16 sps:$4 sm:$0xff]  }
  0x9b   :  { %2117 = vmatpush1.bf16.msra.mxu0 %v3063_v46  ;;  %2322 = vmatpush1.bf16.msra.mxu1 %v3066_v47  ;;  %v3154_v46 = vld [vmem:[%s4335_s1 + $0x6a0] ss:$16 sps:$4 sm:$0xff]   ;;  %v3157_v47 = vld [vmem:[%s4335_s1 + $0x6a8] ss:$16 sps:$4 sm:$0xff]  }
  0x9c   :  { %2118 = vmatprep.subr.bf16.mxu0 %v3071_v48  ;;  %2323 = vmatprep.subr.bf16.mxu1 %v3074_v50  ;;  %v3162_v48 = vld [vmem:[%s4335_s1 + $0x6c4] ss:$16 sps:$4 sm:$0xff]   ;;  %v3165_v50 = vld [vmem:[%s4335_s1 + $0x6cc] ss:$16 sps:$4 sm:$0xff]  }
  0x9f   :  { %2119 = vmatpush1.bf16.msra.mxu0 %v3069_v51  ;;  %2324 = vmatpush1.bf16.msra.mxu1 %v3072_v53  ;;  %v3160_v51 = vld [vmem:[%s4335_s1 + $0x6c0] ss:$16 sps:$4 sm:$0xff]   ;;  %v3163_v53 = vld [vmem:[%s4335_s1 + $0x6c8] ss:$16 sps:$4 sm:$0xff]  }
  0xa0   :  { %2120 = vmatprep.subr.bf16.mxu0 %v3077_v54  ;;  %2325 = vmatprep.subr.bf16.mxu1 %v3080_v55  ;;  %v3168_v54 = vld [vmem:[%s4335_s1 + $0x6e4] ss:$16 sps:$4 sm:$0xff]   ;;  %v3171_v55 = vld [vmem:[%s4335_s1 + $0x6ec] ss:$16 sps:$4 sm:$0xff]  }
  0xa3   :  { %2121 = vmatpush1.bf16.msra.mxu0 %v3075_v56  ;;  %2326 = vmatpush1.bf16.msra.mxu1 %v3078_v57  ;;  %v3166_v56 = vld [vmem:[%s4335_s1 + $0x6e0] ss:$16 sps:$4 sm:$0xff]   ;;  %v3169_v57 = vld [vmem:[%s4335_s1 + $0x6e8] ss:$16 sps:$4 sm:$0xff]  }
  0xa4   :  { %2122 = vmatprep.subr.bf16.mxu0 %v3083_v58  ;;  %2327 = vmatprep.subr.bf16.mxu1 %v3086_v59  ;;  %v3174_v58 = vld [vmem:[%s4335_s1 + $0x704] ss:$16 sps:$4 sm:$0xff]   ;;  %v3177_v59 = vld [vmem:[%s4335_s1 + $0x70c] ss:$16 sps:$4 sm:$0xff]  }
  0xa7   :  { %2123 = vmatpush1.bf16.msra.mxu0 %v3081_v60  ;;  %2328 = vmatpush1.bf16.msra.mxu1 %v3084_v61  ;;  %v3172_v60 = vld [vmem:[%s4335_s1 + $0x700] ss:$16 sps:$4 sm:$0xff]   ;;  %v3175_v61 = vld [vmem:[%s4335_s1 + $0x708] ss:$16 sps:$4 sm:$0xff]  }
  0xa8   :  { %2124 = vmatprep.subr.bf16.mxu0 %v3089_v62  ;;  %2329 = vmatprep.subr.bf16.mxu1 %v3092_v63  ;;  %v3180_v62 = vld [vmem:[%s4335_s1 + $0x724] ss:$16 sps:$4 sm:$0xff]   ;;  %v3183_v63 = vld [vmem:[%s4335_s1 + $0x72c] ss:$16 sps:$4 sm:$0xff]  }
  0xab   :  { %2125 = vmatpush1.bf16.msra.mxu0 %v3087_v0  ;;  %2330 = vmatpush1.bf16.msra.mxu1 %v3090_v1  ;;  %v3178_v0 = vld [vmem:[%s4335_s1 + $0x720] ss:$16 sps:$4 sm:$0xff]   ;;  %v3181_v1 = vld [vmem:[%s4335_s1 + $0x728] ss:$16 sps:$4 sm:$0xff]  }
  0xac   :  { %2126 = vmatprep.subr.bf16.mxu0 %v3095_v2  ;;  %2331 = vmatprep.subr.bf16.mxu1 %v3098_v3  ;;  %v3186_v2 = vld [vmem:[%s4335_s1 + $0x744] ss:$16 sps:$4 sm:$0xff]   ;;  %v3189_v3 = vld [vmem:[%s4335_s1 + $0x74c] ss:$16 sps:$4 sm:$0xff]  }
  0xaf   :  { %2127 = vmatpush1.bf16.msra.mxu0 %v3093_v4  ;;  %2332 = vmatpush1.bf16.msra.mxu1 %v3096_v5  ;;  %v3184_v4 = vld [vmem:[%s4335_s1 + $0x740] ss:$16 sps:$4 sm:$0xff]   ;;  %v3187_v5 = vld [vmem:[%s4335_s1 + $0x748] ss:$16 sps:$4 sm:$0xff]  }
  0xb0   :  { %2128 = vmatprep.subr.bf16.mxu0 %v3101_v6  ;;  %2333 = vmatprep.subr.bf16.mxu1 %v3104_v7  ;;  %v3192_v6 = vld [vmem:[%s4335_s1 + $0x764] ss:$16 sps:$4 sm:$0xff]   ;;  %v3195_v7 = vld [vmem:[%s4335_s1 + $0x76c] ss:$16 sps:$4 sm:$0xff]  }
  0xb3   :  { %2129 = vmatpush1.bf16.msra.mxu0 %v3099_v8  ;;  %2334 = vmatpush1.bf16.msra.mxu1 %v3102_v9  ;;  %v3190_v8 = vld [vmem:[%s4335_s1 + $0x760] ss:$16 sps:$4 sm:$0xff]   ;;  %v3193_v9 = vld [vmem:[%s4335_s1 + $0x768] ss:$16 sps:$4 sm:$0xff]  }
  0xb4   :  { %2130 = vmatprep.subr.bf16.mxu0 %v3107_v10  ;;  %2335 = vmatprep.subr.bf16.mxu1 %v3110_v11  ;;  %v3198_v10 = vld [vmem:[%s4335_s1 + $0x784] ss:$16 sps:$4 sm:$0xff]   ;;  %v3201_v11 = vld [vmem:[%s4335_s1 + $0x78c] ss:$16 sps:$4 sm:$0xff]  }
  0xb7   :  { %2131 = vmatpush1.bf16.msra.mxu0 %v3105_v12  ;;  %2336 = vmatpush1.bf16.msra.mxu1 %v3108_v52  ;;  %v3196_v12 = vld [vmem:[%s4335_s1 + $0x780] ss:$16 sps:$4 sm:$0xff]   ;;  %v3199_v52 = vld [vmem:[%s4335_s1 + $0x788] ss:$16 sps:$4 sm:$0xff]  }
  0xb8   :  { %2132 = vmatprep.subr.bf16.mxu0 %v3113_v15  ;;  %2337 = vmatprep.subr.bf16.mxu1 %v3116_v16  ;;  %v3204_v15 = vld [vmem:[%s4335_s1 + $0x7a4] ss:$16 sps:$4 sm:$0xff]   ;;  %v3207_v16 = vld [vmem:[%s4335_s1 + $0x7ac] ss:$16 sps:$4 sm:$0xff]  }
  0xbb   :  { %2133 = vmatpush1.bf16.msra.mxu0 %v3111_v17  ;;  %2338 = vmatpush1.bf16.msra.mxu1 %v3114_v18  ;;  %v3202_v17 = vld [vmem:[%s4335_s1 + $0x7a0] ss:$16 sps:$4 sm:$0xff]   ;;  %v3205_v18 = vld [vmem:[%s4335_s1 + $0x7a8] ss:$16 sps:$4 sm:$0xff]  }
  0xbc   :  { %2134 = vmatprep.subr.bf16.mxu0 %v3119_v19  ;;  %2339 = vmatprep.subr.bf16.mxu1 %v3122_v20  ;;  %v3210_v19 = vld [vmem:[%s4335_s1 + $0x7c4] ss:$16 sps:$4 sm:$0xff]   ;;  %v3213_v20 = vld [vmem:[%s4335_s1 + $0x7cc] ss:$16 sps:$4 sm:$0xff]  }
  0xbf   :  { %2135 = vmatpush1.bf16.msra.mxu0 %v3117_v21  ;;  %2340 = vmatpush1.bf16.msra.mxu1 %v3120_v22  ;;  %v3208_v21 = vld [vmem:[%s4335_s1 + $0x7c0] ss:$16 sps:$4 sm:$0xff]   ;;  %v3211_v22 = vld [vmem:[%s4335_s1 + $0x7c8] ss:$16 sps:$4 sm:$0xff]  }
  0xc0   :  { %2145 = vmatprep.subr.bf16.mxu0 %v3126_v23  ;;  %2350 = vmatprep.subr.bf16.mxu1 %v3129_v24  ;;  %v3216_v23 = vld [vmem:[%s4335_s1 + $0x7e4] ss:$16 sps:$4 sm:$0xff]   ;;  %v3219_v24 = vld [vmem:[%s4335_s1 + $0x7ec] ss:$16 sps:$4 sm:$0xff]  }
  0xc2   :  { %2137 = vmatmul.mubr.bf16.vlgmr.msra.gmra.mrb[0].mxu0 %v3948_v26  ;;  %2342 = vmatmul.mubr.bf16.vlgmr.msra.gmra.mrb[0].mxu1 %v3948_v26 }
  0xc3   :  { %2146 = vmatpush1.bf16.msra.mxu0 %v3124_v13  ;;  %2351 = vmatpush1.bf16.msra.mxu1 %v3127_v27  ;;  %v4134_v13 = vld.sshfl [vmem:[%s4336_s0 + $0x8] sm:$0x11 pattern:$0x75316420]  ;;  %v3214_v27 = vld [vmem:[%s4335_s1 + $0x7e0] ss:$16 sps:$4 sm:$0xff]  }
  0xc4   :  { %2147 = vmatprep.subr.bf16.mxu0 %v3132_v28  ;;  %2352 = vmatprep.subr.bf16.mxu1 %v3135_v29  ;;  %v3217_v28 = vld [vmem:[%s4335_s1 + $0x7e8] ss:$16 sps:$4 sm:$0xff]   ;;  %v3222_v29 = vld [vmem:[%s4335_s1 + $0x804] ss:$16 sps:$4 sm:$0xff]  }
  0xc5   :  { %2177 = vmatprep.mubr.bf16.mxu0 %v403_v14  ;;  %2382 = vmatprep.mubr.bf16.mxu1 %v403_v14  ;;  %v3225_v14 = vld [vmem:[%s4335_s1 + $0x80c] ss:$16 sps:$4 sm:$0xff]  }
  0xc7   :  { %2148 = vmatpush1.bf16.msra.mxu0 %v3130_v30  ;;  %2353 = vmatpush1.bf16.msra.mxu1 %v3133_v31  ;;  %v411_v30 = vcombine.high %v4134_v13, %v4134_v13  ;;  %v401_v31 = vcombine.high %v3948_v26, %v3948_v26  ;;  %v3231_v26 = vld [vmem:[%s4335_s1 + $0x82c] ss:$16 sps:$4 sm:$0xff]  }
  0xc8   :  { %2149 = vmatprep.subr.bf16.mxu0 %v3138_v25  ;;  %2354 = vmatprep.subr.bf16.mxu1 %v3141_v32  ;;  %v3220_v25 = vld [vmem:[%s4335_s1 + $0x800] ss:$16 sps:$4 sm:$0xff]   ;;  %v3223_v32 = vld [vmem:[%s4335_s1 + $0x808] ss:$16 sps:$4 sm:$0xff]  }
  0xcb   :  { %2150 = vmatpush1.bf16.msra.mxu0 %v3136_v33  ;;  %2355 = vmatpush1.bf16.msra.mxu1 %v3139_v34  ;;  %v3228_v33 = vld [vmem:[%s4335_s1 + $0x824] ss:$16 sps:$4 sm:$0xff]   ;;  %v425_v34 = vrot.slane %v411_v30, %v3464_v49 }
  0xcc   :  { %2151 = vmatprep.subr.bf16.mxu0 %v3144_v35  ;;  %2356 = vmatprep.subr.bf16.mxu1 %v3147_v36  ;;  %v3226_v35 = vld [vmem:[%s4335_s1 + $0x820] ss:$16 sps:$4 sm:$0xff]   ;;  %v3229_v36 = vld [vmem:[%s4335_s1 + $0x828] ss:$16 sps:$4 sm:$0xff]  }
  0xcf   :  { %2152 = vmatpush1.bf16.msra.mxu0 %v3142_v37  ;;  %2357 = vmatpush1.bf16.msra.mxu1 %v3145_v38  ;;  %v3234_v37 = vld [vmem:[%s4335_s1 + $0x844] ss:$16 sps:$4 sm:$0xff]   ;;  %v3237_v38 = vld [vmem:[%s4335_s1 + $0x84c] ss:$16 sps:$4 sm:$0xff]  }
  0xd0   :  { %2153 = vmatprep.subr.bf16.mxu0 %v3150_v39  ;;  %2358 = vmatprep.subr.bf16.mxu1 %v3153_v40  ;;  %v3232_v39 = vld [vmem:[%s4335_s1 + $0x840] ss:$16 sps:$4 sm:$0xff]   ;;  %v3235_v40 = vld [vmem:[%s4335_s1 + $0x848] ss:$16 sps:$4 sm:$0xff]  }
  0xd3   :  { %2154 = vmatpush1.bf16.msra.mxu0 %v3148_v41  ;;  %2359 = vmatpush1.bf16.msra.mxu1 %v3151_v43  ;;  %v3240_v41 = vld [vmem:[%s4335_s1 + $0x864] ss:$16 sps:$4 sm:$0xff]   ;;  %v3243_v43 = vld [vmem:[%s4335_s1 + $0x86c] ss:$16 sps:$4 sm:$0xff]  }
  0xd4   :  { %2155 = vmatprep.subr.bf16.mxu0 %v3156_v44  ;;  %2360 = vmatprep.subr.bf16.mxu1 %v3159_v45  ;;  %v3238_v44 = vld [vmem:[%s4335_s1 + $0x860] ss:$16 sps:$4 sm:$0xff]   ;;  %v3241_v45 = vld [vmem:[%s4335_s1 + $0x868] ss:$16 sps:$4 sm:$0xff]  }
  0xd7   :  { %2156 = vmatpush1.bf16.msra.mxu0 %v3154_v46  ;;  %2361 = vmatpush1.bf16.msra.mxu1 %v3157_v47  ;;  %v3246_v46 = vld [vmem:[%s4335_s1 + $0x884] ss:$16 sps:$4 sm:$0xff]   ;;  %v3249_v47 = vld [vmem:[%s4335_s1 + $0x88c] ss:$16 sps:$4 sm:$0xff]  }
  0xd8   :  { %2157 = vmatprep.subr.bf16.mxu0 %v3162_v48  ;;  %2362 = vmatprep.subr.bf16.mxu1 %v3165_v50  ;;  %v3244_v48 = vld [vmem:[%s4335_s1 + $0x880] ss:$16 sps:$4 sm:$0xff]   ;;  %v3247_v50 = vld [vmem:[%s4335_s1 + $0x888] ss:$16 sps:$4 sm:$0xff]  }
  0xdb   :  { %2158 = vmatpush1.bf16.msra.mxu0 %v3160_v51  ;;  %2363 = vmatpush1.bf16.msra.mxu1 %v3163_v53  ;;  %v3252_v51 = vld [vmem:[%s4335_s1 + $0x8a4] ss:$16 sps:$4 sm:$0xff]   ;;  %v3255_v53 = vld [vmem:[%s4335_s1 + $0x8ac] ss:$16 sps:$4 sm:$0xff]  }
  0xdc   :  { %2159 = vmatprep.subr.bf16.mxu0 %v3168_v54  ;;  %2364 = vmatprep.subr.bf16.mxu1 %v3171_v55  ;;  %v3250_v54 = vld [vmem:[%s4335_s1 + $0x8a0] ss:$16 sps:$4 sm:$0xff]   ;;  %v3253_v55 = vld [vmem:[%s4335_s1 + $0x8a8] ss:$16 sps:$4 sm:$0xff]  }
  0xdf   :  { %2160 = vmatpush1.bf16.msra.mxu0 %v3166_v56  ;;  %2365 = vmatpush1.bf16.msra.mxu1 %v3169_v57  ;;  %v3258_v56 = vld [vmem:[%s4335_s1 + $0x8c4] ss:$16 sps:$4 sm:$0xff]   ;;  %v3261_v57 = vld [vmem:[%s4335_s1 + $0x8cc] ss:$16 sps:$4 sm:$0xff]  }
  0xe0   :  { %2161 = vmatprep.subr.bf16.mxu0 %v3174_v58  ;;  %2366 = vmatprep.subr.bf16.mxu1 %v3177_v59  ;;  %v3256_v58 = vld [vmem:[%s4335_s1 + $0x8c0] ss:$16 sps:$4 sm:$0xff]   ;;  %v3259_v59 = vld [vmem:[%s4335_s1 + $0x8c8] ss:$16 sps:$4 sm:$0xff]  }
  0xe3   :  { %2162 = vmatpush1.bf16.msra.mxu0 %v3172_v60  ;;  %2367 = vmatpush1.bf16.msra.mxu1 %v3175_v61  ;;  %v3264_v60 = vld [vmem:[%s4335_s1 + $0x8e4] ss:$16 sps:$4 sm:$0xff]   ;;  %v3267_v61 = vld [vmem:[%s4335_s1 + $0x8ec] ss:$16 sps:$4 sm:$0xff]  }
  0xe4   :  { %2163 = vmatprep.subr.bf16.mxu0 %v3180_v62  ;;  %2368 = vmatprep.subr.bf16.mxu1 %v3183_v63  ;;  %v3262_v62 = vld [vmem:[%s4335_s1 + $0x8e0] ss:$16 sps:$4 sm:$0xff]   ;;  %v3265_v63 = vld [vmem:[%s4335_s1 + $0x8e8] ss:$16 sps:$4 sm:$0xff]  }
  0xe7   :  { %2164 = vmatpush1.bf16.msra.mxu0 %v3178_v0  ;;  %2369 = vmatpush1.bf16.msra.mxu1 %v3181_v1  ;;  %v3270_v0 = vld [vmem:[%s4335_s1 + $0x904] ss:$16 sps:$4 sm:$0xff]   ;;  %v3273_v1 = vld [vmem:[%s4335_s1 + $0x90c] ss:$16 sps:$4 sm:$0xff]  }
  0xe8   :  { %2165 = vmatprep.subr.bf16.mxu0 %v3186_v2  ;;  %2370 = vmatprep.subr.bf16.mxu1 %v3189_v3  ;;  %v3268_v2 = vld [vmem:[%s4335_s1 + $0x900] ss:$16 sps:$4 sm:$0xff]   ;;  %v3271_v3 = vld [vmem:[%s4335_s1 + $0x908] ss:$16 sps:$4 sm:$0xff]  }
  0xeb   :  { %2166 = vmatpush1.bf16.msra.mxu0 %v3184_v4  ;;  %2371 = vmatpush1.bf16.msra.mxu1 %v3187_v5  ;;  %v3276_v4 = vld [vmem:[%s4335_s1 + $0x924] ss:$16 sps:$4 sm:$0xff]   ;;  %v3279_v5 = vld [vmem:[%s4335_s1 + $0x92c] ss:$16 sps:$4 sm:$0xff]  }
  0xec   :  { %2167 = vmatprep.subr.bf16.mxu0 %v3192_v6  ;;  %2372 = vmatprep.subr.bf16.mxu1 %v3195_v7  ;;  %v3274_v6 = vld [vmem:[%s4335_s1 + $0x920] ss:$16 sps:$4 sm:$0xff]   ;;  %v3277_v7 = vld [vmem:[%s4335_s1 + $0x928] ss:$16 sps:$4 sm:$0xff]  }
  0xef   :  { %2168 = vmatpush1.bf16.msra.mxu0 %v3190_v8  ;;  %2373 = vmatpush1.bf16.msra.mxu1 %v3193_v9  ;;  %v3282_v8 = vld [vmem:[%s4335_s1 + $0x944] ss:$16 sps:$4 sm:$0xff]   ;;  %v3285_v9 = vld [vmem:[%s4335_s1 + $0x94c] ss:$16 sps:$4 sm:$0xff]  }
  0xf0   :  { %2169 = vmatprep.subr.bf16.mxu0 %v3198_v10  ;;  %2374 = vmatprep.subr.bf16.mxu1 %v3201_v11  ;;  %v3280_v10 = vld [vmem:[%s4335_s1 + $0x940] ss:$16 sps:$4 sm:$0xff]   ;;  %v3283_v11 = vld [vmem:[%s4335_s1 + $0x948] ss:$16 sps:$4 sm:$0xff]  }
  0xf3   :  { %2170 = vmatpush1.bf16.msra.mxu0 %v3196_v12  ;;  %2375 = vmatpush1.bf16.msra.mxu1 %v3199_v52  ;;  %v3288_v12 = vld [vmem:[%s4335_s1 + $0x964] ss:$16 sps:$4 sm:$0xff]   ;;  %v3291_v52 = vld [vmem:[%s4335_s1 + $0x96c] ss:$16 sps:$4 sm:$0xff]  }
  0xf4   :  { %2171 = vmatprep.subr.bf16.mxu0 %v3204_v15  ;;  %2376 = vmatprep.subr.bf16.mxu1 %v3207_v16  ;;  %v3286_v15 = vld [vmem:[%s4335_s1 + $0x960] ss:$16 sps:$4 sm:$0xff]   ;;  %v3289_v16 = vld [vmem:[%s4335_s1 + $0x968] ss:$16 sps:$4 sm:$0xff]  }
  0xf7   :  { %2172 = vmatpush1.bf16.msra.mxu0 %v3202_v17  ;;  %2377 = vmatpush1.bf16.msra.mxu1 %v3205_v18  ;;  %v3294_v17 = vld [vmem:[%s4335_s1 + $0x984] ss:$16 sps:$4 sm:$0xff]   ;;  %v3297_v18 = vld [vmem:[%s4335_s1 + $0x98c] ss:$16 sps:$4 sm:$0xff]  }
  0xf8   :  { %2173 = vmatprep.subr.bf16.mxu0 %v3210_v19  ;;  %2378 = vmatprep.subr.bf16.mxu1 %v3213_v20  ;;  %v3292_v19 = vld [vmem:[%s4335_s1 + $0x980] ss:$16 sps:$4 sm:$0xff]   ;;  %v3295_v20 = vld [vmem:[%s4335_s1 + $0x988] ss:$16 sps:$4 sm:$0xff]  }
  0xfb   :  { %2174 = vmatpush1.bf16.msra.mxu0 %v3208_v21  ;;  %2379 = vmatpush1.bf16.msra.mxu1 %v3211_v22  ;;  %v3300_v21 = vld [vmem:[%s4335_s1 + $0x9a4] ss:$16 sps:$4 sm:$0xff]   ;;  %v3303_v22 = vld [vmem:[%s4335_s1 + $0x9ac] ss:$16 sps:$4 sm:$0xff]  }
  0xfc   :  { %2175 = vmatprep.subr.bf16.mxu0 %v3216_v23  ;;  %2380 = vmatprep.subr.bf16.mxu1 %v3219_v24  ;;  %v329_v23 = vld [vmem:[%s4335_s1 + $0x9c0] sm:$0x11]  ;;  %v330_v24 = vld [vmem:[%s4335_s1 + $0x9c8] sm:$0x11] }
  0xfd   :  { %v2787_v30 = vcombine.low %v329_v23, %v329_v23 }
  0xff   :  { %2176 = vmatpush1.bf16.msra.mxu0 %v3214_v27  ;;  %2381 = vmatpush1.bf16.msra.mxu1 %v3217_v28  ;;  %v3298_v27 = vld [vmem:[%s4335_s1 + $0x9a0] ss:$16 sps:$4 sm:$0xff]   ;;  %v3301_v28 = vld [vmem:[%s4335_s1 + $0x9a8] ss:$16 sps:$4 sm:$0xff]  }
 0x100   :  { %2186 = vmatprep.subr.bf16.mxu0 %v3222_v29  ;;  %2391 = vmatprep.subr.bf16.mxu1 %v3225_v14  ;;  %v2788_v29 = vcombine.high %v329_v23, %v329_v23  ;;  %v2790_v14 = vcombine.high %v330_v24, %v330_v24 }
 0x102   :  { %2178 = vmatmul.mubr.bf16.vlgmr.msra.gmra.mrb[0].mxu0 %v401_v31  ;;  %2383 = vmatmul.mubr.bf16.vlgmr.msra.gmra.mrb[0].mxu1 %v401_v31  ;;  %v2789_v31 = vcombine.low %v330_v24, %v330_v24 }
 0x103   :  { %2187 = vmatpush1.bf16.msra.mxu0 %v3220_v25  ;;  %2392 = vmatpush1.bf16.msra.mxu1 %v3223_v32  ;;  %v2011_v25 = vsel %vm2009_vm1, %v2787_v30, 0 }
 0x104   :  { %2188 = vmatprep.subr.bf16.mxu0 %v3228_v33  ;;  %2393 = vmatprep.subr.bf16.mxu1 %v3231_v26  ;;  %v2017_v32 = vsel %vm2009_vm1, %v2789_v31, 0  ;;  %v418_v33 = vrot.slane %v4134_v13, %v3464_v49  ;;  %v335_v26 = vsub.s32 0, %v3446_v42 }
 0x105   :  { %2792 = vmatprep.mubr.msk.bf16.mxu0 %vm2005_vm0, %v425_v34  ;;  %2794 = vmatprep.mubr.msk.bf16.mxu1 %vm2005_vm0, %v425_v34  ;;  %v343_v34 = vsub.s32 2, %v3446_v42 }
 0x107   :  { %2189 = vmatpush1.bf16.msra.mxu0 %v3226_v35  ;;  %2394 = vmatpush1.bf16.msra.mxu1 %v3229_v36  ;;  %v331_v35 = vld [vmem:[%s4337_s2] sm:$0xf]  ;;  %v339_v36 = vsub.s32 1, %v3446_v42 }
 0x108   :  { %2190 = vmatprep.subr.bf16.mxu0 %v3234_v37  ;;  %2395 = vmatprep.subr.bf16.mxu1 %v3237_v38  ;;  %v347_v37 = vsub.s32 3, %v3446_v42  ;;  %v336_v38 = vrot.slane %v331_v35, %v335_v26 }
 0x10a   :  { %v348_v13 = vrot.slane %v331_v35, %v347_v37 }
 0x10b   :  { %2191 = vmatpush1.bf16.msra.mxu0 %v3232_v39  ;;  %2396 = vmatpush1.bf16.msra.mxu1 %v3235_v40  ;;  %v344_v39 = vrot.slane %v331_v35, %v343_v34  ;;  %v340_v40 = vrot.slane %v331_v35, %v339_v36 }
 0x10c   :  { %2192 = vmatprep.subr.bf16.mxu0 %v3240_v41  ;;  %2397 = vmatprep.subr.bf16.mxu1 %v3243_v43 }
 0x10f   :  { %2193 = vmatpush1.bf16.msra.mxu0 %v3238_v44  ;;  %2398 = vmatpush1.bf16.msra.mxu1 %v3241_v45 }
 0x110   :  { %2194 = vmatprep.subr.bf16.mxu0 %v3246_v46  ;;  %2399 = vmatprep.subr.bf16.mxu1 %v3249_v47 }
 0x113   :  { %2195 = vmatpush1.bf16.msra.mxu0 %v3244_v48  ;;  %2400 = vmatpush1.bf16.msra.mxu1 %v3247_v50 }
 0x114   :  { %2196 = vmatprep.subr.bf16.mxu0 %v3252_v51  ;;  %2401 = vmatprep.subr.bf16.mxu1 %v3255_v53 }
 0x117   :  { %2197 = vmatpush1.bf16.msra.mxu0 %v3250_v54  ;;  %2402 = vmatpush1.bf16.msra.mxu1 %v3253_v55 }
 0x118   :  { %2198 = vmatprep.subr.bf16.mxu0 %v3258_v56  ;;  %2403 = vmatprep.subr.bf16.mxu1 %v3261_v57 }
 0x11b   :  { %2199 = vmatpush1.bf16.msra.mxu0 %v3256_v58  ;;  %2404 = vmatpush1.bf16.msra.mxu1 %v3259_v59 }
 0x11c   :  { %2200 = vmatprep.subr.bf16.mxu0 %v3264_v60  ;;  %2405 = vmatprep.subr.bf16.mxu1 %v3267_v61 }
 0x11f   :  { %2201 = vmatpush1.bf16.msra.mxu0 %v3262_v62  ;;  %2406 = vmatpush1.bf16.msra.mxu1 %v3265_v63 }
 0x120   :  { %2202 = vmatprep.subr.bf16.mxu0 %v3270_v0  ;;  %2407 = vmatprep.subr.bf16.mxu1 %v3273_v1 }
 0x123   :  { %2203 = vmatpush1.bf16.msra.mxu0 %v3268_v2  ;;  %2408 = vmatpush1.bf16.msra.mxu1 %v3271_v3 }
 0x124   :  { %2204 = vmatprep.subr.bf16.mxu0 %v3276_v4  ;;  %2409 = vmatprep.subr.bf16.mxu1 %v3279_v5 }
 0x127   :  { %2205 = vmatpush1.bf16.msra.mxu0 %v3274_v6  ;;  %2410 = vmatpush1.bf16.msra.mxu1 %v3277_v7 }
 0x128   :  { %2206 = vmatprep.subr.bf16.mxu0 %v3282_v8  ;;  %2411 = vmatprep.subr.bf16.mxu1 %v3285_v9 }
 0x12b   :  { %2207 = vmatpush1.bf16.msra.mxu0 %v3280_v10  ;;  %2412 = vmatpush1.bf16.msra.mxu1 %v3283_v11 }
 0x12c   :  { %2208 = vmatprep.subr.bf16.mxu0 %v3288_v12  ;;  %2413 = vmatprep.subr.bf16.mxu1 %v3291_v52 }
 0x12f   :  { %2209 = vmatpush1.bf16.msra.mxu0 %v3286_v15  ;;  %2414 = vmatpush1.bf16.msra.mxu1 %v3289_v16 }
 0x130   :  { %2210 = vmatprep.subr.bf16.mxu0 %v3294_v17  ;;  %2415 = vmatprep.subr.bf16.mxu1 %v3297_v18 }
 0x133   :  { %2211 = vmatpush1.bf16.msra.mxu0 %v3292_v19  ;;  %2416 = vmatpush1.bf16.msra.mxu1 %v3295_v20 }
 0x134   :  { %2212 = vmatprep.subr.bf16.mxu0 %v3300_v21  ;;  %2417 = vmatprep.subr.bf16.mxu1 %v3303_v22 }
 0x137   :  { %2213 = vmatpush1.bf16.msra.mxu0 %v3298_v27  ;;  %2418 = vmatpush1.bf16.msra.mxu1 %v3301_v28 }
 0x138   :  { %2791 = vmatprep.subr.msk.bf16.mxu0 %vm2009_vm1, %v2788_v29  ;;  %2793 = vmatprep.subr.msk.bf16.mxu1 %vm2009_vm1, %v2790_v14 }
 0x13b   :  { %2215 = vmatpush1.bf16.msra.mxu0 %v2011_v25  ;;  %2420 = vmatpush1.bf16.msra.mxu1 %v2017_v32 }
 0x13e   :  { %2219 = vmatmul.mubr.bf16.vlgmr.msra.gmra.mrb[0].mxu0 %v418_v33  ;;  %2424 = vmatmul.mubr.bf16.vlgmr.msra.gmra.mrb[0].mxu1 %v418_v33 }
 0x211   :  { %v2220_v41 = vpop.f32.mrb[0].mxu0  ;;  %v2425_v43 = vpop.f32.mrb[0].mxu1 }
 0x212   :  { %v2798_v44 = vadd.f32 %v2220_v41, %v336_v38  ;;  %v2800_v45 = vadd.f32 %v2425_v43, %v344_v39  ;;  %v2222_v46 = vpop.f32.mrb[1].mxu0  ;;  %v2427_v47 = vpop.f32.mrb[1].mxu1 }
 0x213   :  { %v2799_v48 = vadd.f32 %v2222_v46, %v340_v40  ;;  %v2801_v50 = vadd.f32 %v2427_v47, %v348_v13  ;;  %v2224_v51 = vpop.f32.mrb[2].mxu0  ;;  %v2429_v53 = vpop.f32.mrb[2].mxu1 }
 0x214   :  { %v2432_v54 = vmax.f32 %v2798_v44, 0.0  ;;  %v2434_v55 = vmax.f32 %v2800_v45, 0.0  ;;  %v2225_v56 = vpop.f32.mrb[3].mxu0  ;;  %v2430_v57 = vpop.f32.mrb[3].mxu1 }
 0x215   :  { %v2433_v58 = vmax.f32 %v2799_v48, 0.0  ;;  %v2435_v42 = vmax.f32 %v2801_v50, 0.0 }
 0x217   :  { %v2795_v59 = vpack.c.bf16 %v2433_v58, %v2432_v54  ;;  %v2796_v60 = vpack.c.bf16 %v2435_v42, %v2434_v55 }
 0x219   :  { %v2452_v61 = vrot.slane %v2795_v59, %v3464_v49  ;;  %v2459_v62 = vrot.slane %v2796_v60, %v3464_v49 }
 0x21b   :  { %v2460_v63 = vcombine.low %v2452_v61, %v2459_v62 }
 0x21d   :  { %2797 = vst.sshfl [vmem:[%s4338_s3] sm:$0x55 pattern:$0x73625140] %v2460_v63 }

</bundles_post_ra>
